<compile_context>
chip_gen: v7x
topology: tpu7x:2x2x1
jax: 0.10.0
libtpu: 0.0.40
codegen_flags: <defaults>
</compile_context>

<pallas_src>
from typing import NamedTuple

import numpy as np
import jax
import jax.numpy as jnp
from jax.experimental import pallas as pl
from jax.experimental.pallas import tpu as pltpu

LANES = 128  # fixed lane width; all packed channel counts fit one lane tile


class LayerMeta(NamedTuple):
    m_out: int    # output rows per grid block (= h_out * w_out)
    h_out: int
    w_out: int
    c_out: int
    act: bool     # apply leaky_relu(0.2)
    taps: int     # kernel_size ** 2


# ----------------------------- Pallas kernel ---------------------------------

def _make_fused_kernel(metas):
    """Whole-network kernel: conv/bias/act for every layer, all in VMEM."""
    n_layers = len(metas)

    def kernel(*refs):
        x_ref = refs[0]
        s_refs = refs[1:1 + n_layers]                 # (taps, m_out, m_in) 0/1
        w_ref = refs[1 + n_layers]                    # (n_layers, taps*128, 128)
        b_ref = refs[2 + n_layers]                    # (n_layers, 1, 128)
        o_refs = refs[3 + n_layers:3 + 2 * n_layers]  # per-layer activations
        p_ref = refs[3 + 2 * n_layers]                # VMEM im2col slab scratch

        x = x_ref[...]                                # (m_in0, 128) f32
        for l in range(n_layers):
            meta = metas[l]
            m = meta.m_out
            # im2col: each tap's spatial gather (stride + zero padding baked
            # into S) lands in its own 128-lane column block of the P slab.
            for t in range(meta.taps):
                p_ref[0:m, t * LANES:(t + 1) * LANES] = jnp.dot(
                    s_refs[l][t], x, preferred_element_type=jnp.float32)
            # Single wide-K matmul mixes all taps/channels at once; bias add
            # is fused on the result (padded lanes stay exactly zero).
            acc = jnp.dot(p_ref[0:m, 0:meta.taps * LANES], w_ref[l],
                          preferred_element_type=jnp.float32) + b_ref[l]
            if meta.act:
                acc = jnp.where(acc >= 0.0, acc, 0.2 * acc)
            o_refs[l][...] = acc
            x = acc

    return kernel


# ------------------------------ Fused forward ---------------------------------

def _forward(x_nchw, s_mats, w_stacked, bias, metas, n_groups, group_stride):
    """Forward pass. Returns (output NCHW, features list of NCHW tensors)."""
    n, c, h, w = x_nchw.shape
    m_in0 = h * w
    n_blocks = n // n_groups
    taps = metas[0].taps
    max_m = max(m.m_out for m in metas)

    # NCHW -> lane-dense matrix; n_groups batch elements packed side-by-side
    # in the 128 lanes (block-diagonal weights keep them independent).
    x_nhwc = jnp.transpose(x_nchw, (0, 2, 3, 1)).reshape(
        n_blocks, n_groups, m_in0, c)
    x_mat = jnp.zeros((n_blocks, m_in0, LANES), jnp.float32)
    for g in range(n_groups):
        x_mat = x_mat.at[:, :, g * group_stride:g * group_stride + c].set(
            x_nhwc[:, g])
    x_mat = x_mat.reshape(n_blocks * m_in0, LANES)

    kernel = _make_fused_kernel(metas)

    in_specs = [pl.BlockSpec((m_in0, LANES), lambda i: (i, 0))]
    for s in s_mats:
        in_specs.append(pl.BlockSpec(s.shape, lambda i: (0, 0, 0)))
    in_specs.append(pl.BlockSpec(w_stacked.shape, lambda i: (0, 0, 0)))
    in_specs.append(pl.BlockSpec(bias.shape, lambda i: (0, 0, 0)))

    out_shapes = tuple(
        jax.ShapeDtypeStruct((n_blocks * m.m_out, LANES), jnp.float32)
        for m in metas)
    out_specs = tuple(
        pl.BlockSpec((m.m_out, LANES), lambda i: (i, 0)) for m in metas)

    outs = pl.pallas_call(
        kernel,
        out_shape=out_shapes,
        grid=(n_blocks,),
        in_specs=in_specs,
        out_specs=out_specs,
        scratch_shapes=[pltpu.VMEM((max_m, taps * LANES), jnp.float32)],
        compiler_params=pltpu.CompilerParams(
            dimension_semantics=("parallel",)),
    )(x_mat, *s_mats, w_stacked, bias)

    # Tiny layout conversions back to the module's NCHW semantics.
    feats = []
    for meta, o in zip(metas, outs):
        o3 = o.reshape(n_blocks, meta.m_out, LANES)
        parts = [o3[:, :, g * group_stride:g * group_stride + meta.c_out]
                 for g in range(n_groups)]
        y = jnp.stack(parts, axis=1).reshape(
            n, meta.h_out, meta.w_out, meta.c_out)
        feats.append(jnp.transpose(y, (0, 3, 1, 2)))
    return feats[-1], feats[:-1]


forward_jit = jax.jit(
    _forward, static_argnames=("metas", "n_groups", "group_stride"))


# ----------------------- Parameter construction / packing ---------------------

def build_params(key, kernel_size, num_input_channels, num_filters,
                 num_layers, max_num_filters):
    pad = int(np.floor((kernel_size - 1.0) / 2))
    # (c_in, c_out, kernel, stride, apply_act)
    specs = [(num_input_channels, num_filters, kernel_size, 2, True)]
    cur = num_filters
    for n in range(num_layers):
        prev = cur
        cur = min(cur * 2, max_num_filters)
        stride = 2 if n < num_layers - 1 else 1
        specs.append((prev, cur, kernel_size, stride, True))
    specs.append((cur, 1, 3, 1, False))   # final Conv2dBlock: no nonlinearity

    params = []
    for (ci, co, k, s, act) in specs:
        key, kw_, kb_ = jax.random.split(key, 3)
        fan_in = ci * k * k
        w = jax.random.normal(kw_, (co, ci, k, k), jnp.float32) / np.sqrt(fan_in)
        b = 0.01 * jax.random.normal(kb_, (co,), jnp.float32)
        params.append(dict(w=w, b=b, stride=s, pad=pad, act=act))
    return params


def _build_selection(h_in, w_in, h_out, w_out, k, stride, pad):
    """0/1 tap-selection matrices (k*k, h_out*w_out, h_in*w_in)."""
    s = np.zeros((k * k, h_out * w_out, h_in * w_in), np.float32)
    for di in range(k):
        for dj in range(k):
            t = di * k + dj
            for ho in range(h_out):
                hi = ho * stride + di - pad
                if hi < 0 or hi >= h_in:
                    continue
                for wo in range(w_out):
                    wi = wo * stride + dj - pad
                    if wi < 0 or wi >= w_in:
                        continue
                    s[t, ho * w_out + wo, hi * w_in + wi] = 1.0
    return s


def prepare_fused_params(params, height, width, n_groups):
    """Pack selection matrices, stacked block-diagonal weights and biases once."""
    group_stride = LANES // n_groups
    n_layers = len(params)
    s_mats, metas, w_list = [], [], []
    bias = np.zeros((n_layers, 1, LANES), np.float32)
    h_in, w_in = height, width
    taps_ref = None
    for l, p in enumerate(params):
        w_oihw = np.asarray(p['w'])
        co, ci, kh, kw = w_oihw.shape
        assert ci <= group_stride and co <= group_stride
        stride, pad = p['stride'], p['pad']
        h_out = (h_in + 2 * pad - kh) // stride + 1
        w_out = (w_in + 2 * pad - kw) // stride + 1
        assert (h_out * w_out) % 8 == 0, "per-block row count must be 8-aligned"
        taps = kh * kw
        if taps_ref is None:
            taps_ref = taps
        assert taps == taps_ref, "all layers must share kernel_size"

        s_mats.append(jnp.asarray(
            _build_selection(h_in, w_in, h_out, w_out, kh, stride, pad)))

        # Stacked (taps*128, 128) weight, block-diagonal over batch groups so
        # lanes outside every group's channel block stay exactly zero.
        w_stack = np.zeros((taps * LANES, LANES), np.float32)
        for di in range(kh):
            for dj in range(kw):
                t = di * kw + dj
                wt = w_oihw[:, :, di, dj].T          # (ci, co)
                for g in range(n_groups):
                    r0 = t * LANES + g * group_stride
                    c0 = g * group_stride
                    w_stack[r0:r0 + ci, c0:c0 + co] = wt
        w_list.append(w_stack)

        for g in range(n_groups):
            bias[l, 0, g * group_stride:g * group_stride + co] = np.asarray(p['b'])

        metas.append(LayerMeta(m_out=h_out * w_out, h_out=h_out, w_out=w_out,
                               c_out=int(co), act=bool(p['act']),
                               taps=int(taps)))
        h_in, w_in = h_out, w_out

    w_stacked = jnp.asarray(np.stack(w_list, axis=0))   # (n_layers, taps*128, 128)
    return tuple(s_mats), w_stacked, jnp.asarray(bias), tuple(metas)


# ----------------------------- Reference (XLA) ---------------------------------

def reference_forward(x_nchw, params):
    x = x_nchw
    feats = []
    for p in params:
        y = jax.lax.conv_general_dilated(
            x, p['w'], (p['stride'], p['stride']),
            [(p['pad'], p['pad']), (p['pad'], p['pad'])],
            dimension_numbers=('NCHW', 'OIHW', 'NCHW'))
        y = y + p['b'][None, :, None, None]
        if p['act']:
            y = jnp.where(y >= 0, y, 0.2 * y)
        feats.append(y)
        x = y
    return feats[-1], feats[:-1]


if __name__ == "__main__":
    key = jax.random.PRNGKey(0)
    k_x, k_p = jax.random.split(key)

    # Small shapes consistent with the module: N=2, C=4, H=W=16
    x = jax.random.normal(k_x, (2, 4, 16, 16), jnp.float32)
    params = build_params(k_p, kernel_size=3, num_input_channels=4,
                          num_filters=8, num_layers=2, max_num_filters=32)

    # Batch-in-lanes packing: how many batch elements share the 128 lanes.
    n = x.shape[0]
    max_c = max(max(int(p['w'].shape[0]), int(p['w'].shape[1])) for p in params)
    n_groups = max(1, min(n, LANES // max_c))
    while n % n_groups != 0:
        n_groups -= 1
    group_stride = LANES // n_groups

    s_mats, w_stacked, bias, metas = prepare_fused_params(params, 16, 16,
                                                          n_groups)

    output, features = forward_jit(x, s_mats, w_stacked, bias, metas=metas,
                                   n_groups=n_groups,
                                   group_stride=group_stride)
    output = jax.block_until_ready(output)
    features = [jax.block_until_ready(f) for f in features]

    # Sanity-check against the XLA conv reference.
    ref_out, ref_feats = reference_forward(x, params)
    np.testing.assert_allclose(np.asarray(output), np.asarray(ref_out),
                               rtol=1e-4, atol=1e-4)
    for f, rf in zip(features, ref_feats):
        np.testing.assert_allclose(np.asarray(f), np.asarray(rf),
                                   rtol=1e-4, atol=1e-4)
    assert output.shape == (2, 1, 4, 4)
    assert len(features) == 3  # num_layers + 1 intermediate activations

    print("KERNEL_OK")
</pallas_src>

<mosaic_0001>
module attributes {stable_mosaic.version = 11 : i64} {
  func.func @kernel(%arg0: i32, %arg1: memref<256x128xf32, #tpu.memory_space<vmem>>, %arg2: memref<9x64x256xf32, #tpu.memory_space<vmem>>, %arg3: memref<9x16x64xf32, #tpu.memory_space<vmem>>, %arg4: memref<9x16x16xf32, #tpu.memory_space<vmem>>, %arg5: memref<9x16x16xf32, #tpu.memory_space<vmem>>, %arg6: memref<4x1152x128xf32, #tpu.memory_space<vmem>>, %arg7: memref<4x1x128xf32, #tpu.memory_space<vmem>>, %arg8: memref<64x128xf32, #tpu.memory_space<vmem>>, %arg9: memref<16x128xf32, #tpu.memory_space<vmem>>, %arg10: memref<16x128xf32, #tpu.memory_space<vmem>>, %arg11: memref<16x128xf32, #tpu.memory_space<vmem>>, %arg12: memref<64x1152xf32, #tpu.memory_space<vmem>>) attributes {dimension_semantics = [#tpu.dimension_semantics<parallel>], iteration_bounds = array<i64: 1>, scalar_prefetch = 0 : i64, scratch_operands = 1 : i64, tpu.core_type = #tpu.core_type<tc>, window_params = [{transform_indices = @transform_0, window_bounds = array<i64: 256, 128>}, {pipeline_mode = #tpu.pipeline_mode<synchronous>, transform_indices = @transform_1, window_bounds = array<i64: 9, 64, 256>}, {pipeline_mode = #tpu.pipeline_mode<synchronous>, transform_indices = @transform_2, window_bounds = array<i64: 9, 16, 64>}, {pipeline_mode = #tpu.pipeline_mode<synchronous>, transform_indices = @transform_3, window_bounds = array<i64: 9, 16, 16>}, {pipeline_mode = #tpu.pipeline_mode<synchronous>, transform_indices = @transform_4, window_bounds = array<i64: 9, 16, 16>}, {pipeline_mode = #tpu.pipeline_mode<synchronous>, transform_indices = @transform_5, window_bounds = array<i64: 4, 1152, 128>}, {pipeline_mode = #tpu.pipeline_mode<synchronous>, transform_indices = @transform_6, window_bounds = array<i64: 4, 1, 128>}, {transform_indices = @transform_7, window_bounds = array<i64: 64, 128>}, {transform_indices = @transform_8, window_bounds = array<i64: 16, 128>}, {transform_indices = @transform_9, window_bounds = array<i64: 16, 128>}, {transform_indices = @transform_10, window_bounds = array<i64: 16, 128>}]} {
    %c0 = arith.constant 0 : index
    %c0_0 = arith.constant 0 : index
    %0 = vector.load %arg1[%c0, %c0_0] : memref<256x128xf32, #tpu.memory_space<vmem>>, vector<256x128xf32>
    %c0_1 = arith.constant 0 : index
    %c0_2 = arith.constant 0 : index
    %c0_3 = arith.constant 0 : index
    %1 = vector.load %arg2[%c0_1, %c0_2, %c0_3] : memref<9x64x256xf32, #tpu.memory_space<vmem>>, vector<1x64x256xf32>
    %2 = vector.shape_cast %1 : vector<1x64x256xf32> to vector<64x256xf32>
    %cst = arith.constant dense<0.000000e+00> : vector<64x128xf32>
    %3 = tpu.matmul %2, %0, %cst {dimension_numbers = #tpu.dot_dimension_numbers<[1], [0], [0], [1], [0, 0, 1, 1], [], []>} : vector<64x256xf32>, vector<256x128xf32>, vector<64x128xf32> -> vector<64x128xf32>
    %c0_4 = arith.constant 0 : index
    %c0_5 = arith.constant 0 : index
    %4 = vector.load %arg12[%c0_4, %c0_5] : memref<64x1152xf32, #tpu.memory_space<vmem>>, vector<64x128xf32>
    tpu.vector_store %arg12[%c0_4, %c0_5], %3 {strides = array<i32>} : memref<64x1152xf32, #tpu.memory_space<vmem>>, vector<64x128xf32>,
    %c1 = arith.constant 1 : index
    %c0_6 = arith.constant 0 : index
    %c0_7 = arith.constant 0 : index
    %5 = vector.load %arg2[%c1, %c0_6, %c0_7] : memref<9x64x256xf32, #tpu.memory_space<vmem>>, vector<1x64x256xf32>
    %6 = vector.shape_cast %5 : vector<1x64x256xf32> to vector<64x256xf32>
    %cst_8 = arith.constant dense<0.000000e+00> : vector<64x128xf32>
    %7 = tpu.matmul %6, %0, %cst_8 {dimension_numbers = #tpu.dot_dimension_numbers<[1], [0], [0], [1], [0, 0, 1, 1], [], []>} : vector<64x256xf32>, vector<256x128xf32>, vector<64x128xf32> -> vector<64x128xf32>
    %c0_9 = arith.constant 0 : index
    %c128 = arith.constant 128 : index
    %8 = vector.load %arg12[%c0_9, %c128] : memref<64x1152xf32, #tpu.memory_space<vmem>>, vector<64x128xf32>
    tpu.vector_store %arg12[%c0_9, %c128], %7 {strides = array<i32>} : memref<64x1152xf32, #tpu.memory_space<vmem>>, vector<64x128xf32>,
    %c2 = arith.constant 2 : index
    %c0_10 = arith.constant 0 : index
    %c0_11 = arith.constant 0 : index
    %9 = vector.load %arg2[%c2, %c0_10, %c0_11] : memref<9x64x256xf32, #tpu.memory_space<vmem>>, vector<1x64x256xf32>
    %10 = vector.shape_cast %9 : vector<1x64x256xf32> to vector<64x256xf32>
    %cst_12 = arith.constant dense<0.000000e+00> : vector<64x128xf32>
    %11 = tpu.matmul %10, %0, %cst_12 {dimension_numbers = #tpu.dot_dimension_numbers<[1], [0], [0], [1], [0, 0, 1, 1], [], []>} : vector<64x256xf32>, vector<256x128xf32>, vector<64x128xf32> -> vector<64x128xf32>
    %c0_13 = arith.constant 0 : index
    %c256 = arith.constant 256 : index
    %12 = vector.load %arg12[%c0_13, %c256] : memref<64x1152xf32, #tpu.memory_space<vmem>>, vector<64x128xf32>
    tpu.vector_store %arg12[%c0_13, %c256], %11 {strides = array<i32>} : memref<64x1152xf32, #tpu.memory_space<vmem>>, vector<64x128xf32>,
    %c3 = arith.constant 3 : index
    %c0_14 = arith.constant 0 : index
    %c0_15 = arith.constant 0 : index
    %13 = vector.load %arg2[%c3, %c0_14, %c0_15] : memref<9x64x256xf32, #tpu.memory_space<vmem>>, vector<1x64x256xf32>
    %14 = vector.shape_cast %13 : vector<1x64x256xf32> to vector<64x256xf32>
    %cst_16 = arith.constant dense<0.000000e+00> : vector<64x128xf32>
    %15 = tpu.matmul %14, %0, %cst_16 {dimension_numbers = #tpu.dot_dimension_numbers<[1], [0], [0], [1], [0, 0, 1, 1], [], []>} : vector<64x256xf32>, vector<256x128xf32>, vector<64x128xf32> -> vector<64x128xf32>
    %c0_17 = arith.constant 0 : index
    %c384 = arith.constant 384 : index
    %16 = vector.load %arg12[%c0_17, %c384] : memref<64x1152xf32, #tpu.memory_space<vmem>>, vector<64x128xf32>
    tpu.vector_store %arg12[%c0_17, %c384], %15 {strides = array<i32>} : memref<64x1152xf32, #tpu.memory_space<vmem>>, vector<64x128xf32>,
    %c4 = arith.constant 4 : index
    %c0_18 = arith.constant 0 : index
    %c0_19 = arith.constant 0 : index
    %17 = vector.load %arg2[%c4, %c0_18, %c0_19] : memref<9x64x256xf32, #tpu.memory_space<vmem>>, vector<1x64x256xf32>
    %18 = vector.shape_cast %17 : vector<1x64x256xf32> to vector<64x256xf32>
    %cst_20 = arith.constant dense<0.000000e+00> : vector<64x128xf32>
    %19 = tpu.matmul %18, %0, %cst_20 {dimension_numbers = #tpu.dot_dimension_numbers<[1], [0], [0], [1], [0, 0, 1, 1], [], []>} : vector<64x256xf32>, vector<256x128xf32>, vector<64x128xf32> -> vector<64x128xf32>
    %c0_21 = arith.constant 0 : index
    %c512 = arith.constant 512 : index
    %20 = vector.load %arg12[%c0_21, %c512] : memref<64x1152xf32, #tpu.memory_space<vmem>>, vector<64x128xf32>
    tpu.vector_store %arg12[%c0_21, %c512], %19 {strides = array<i32>} : memref<64x1152xf32, #tpu.memory_space<vmem>>, vector<64x128xf32>,
    %c5 = arith.constant 5 : index
    %c0_22 = arith.constant 0 : index
    %c0_23 = arith.constant 0 : index
    %21 = vector.load %arg2[%c5, %c0_22, %c0_23] : memref<9x64x256xf32, #tpu.memory_space<vmem>>, vector<1x64x256xf32>
    %22 = vector.shape_cast %21 : vector<1x64x256xf32> to vector<64x256xf32>
    %cst_24 = arith.constant dense<0.000000e+00> : vector<64x128xf32>
    %23 = tpu.matmul %22, %0, %cst_24 {dimension_numbers = #tpu.dot_dimension_numbers<[1], [0], [0], [1], [0, 0, 1, 1], [], []>} : vector<64x256xf32>, vector<256x128xf32>, vector<64x128xf32> -> vector<64x128xf32>
    %c0_25 = arith.constant 0 : index
    %c640 = arith.constant 640 : index
    %24 = vector.load %arg12[%c0_25, %c640] : memref<64x1152xf32, #tpu.memory_space<vmem>>, vector<64x128xf32>
    tpu.vector_store %arg12[%c0_25, %c640], %23 {strides = array<i32>} : memref<64x1152xf32, #tpu.memory_space<vmem>>, vector<64x128xf32>,
    %c6 = arith.constant 6 : index
    %c0_26 = arith.constant 0 : index
    %c0_27 = arith.constant 0 : index
    %25 = vector.load %arg2[%c6, %c0_26, %c0_27] : memref<9x64x256xf32, #tpu.memory_space<vmem>>, vector<1x64x256xf32>
    %26 = vector.shape_cast %25 : vector<1x64x256xf32> to vector<64x256xf32>
    %cst_28 = arith.constant dense<0.000000e+00> : vector<64x128xf32>
    %27 = tpu.matmul %26, %0, %cst_28 {dimension_numbers = #tpu.dot_dimension_numbers<[1], [0], [0], [1], [0, 0, 1, 1], [], []>} : vector<64x256xf32>, vector<256x128xf32>, vector<64x128xf32> -> vector<64x128xf32>
    %c0_29 = arith.constant 0 : index
    %c768 = arith.constant 768 : index
    %28 = vector.load %arg12[%c0_29, %c768] : memref<64x1152xf32, #tpu.memory_space<vmem>>, vector<64x128xf32>
    tpu.vector_store %arg12[%c0_29, %c768], %27 {strides = array<i32>} : memref<64x1152xf32, #tpu.memory_space<vmem>>, vector<64x128xf32>,
    %c7 = arith.constant 7 : index
    %c0_30 = arith.constant 0 : index
    %c0_31 = arith.constant 0 : index
    %29 = vector.load %arg2[%c7, %c0_30, %c0_31] : memref<9x64x256xf32, #tpu.memory_space<vmem>>, vector<1x64x256xf32>
    %30 = vector.shape_cast %29 : vector<1x64x256xf32> to vector<64x256xf32>
    %cst_32 = arith.constant dense<0.000000e+00> : vector<64x128xf32>
    %31 = tpu.matmul %30, %0, %cst_32 {dimension_numbers = #tpu.dot_dimension_numbers<[1], [0], [0], [1], [0, 0, 1, 1], [], []>} : vector<64x256xf32>, vector<256x128xf32>, vector<64x128xf32> -> vector<64x128xf32>
    %c0_33 = arith.constant 0 : index
    %c896 = arith.constant 896 : index
    %32 = vector.load %arg12[%c0_33, %c896] : memref<64x1152xf32, #tpu.memory_space<vmem>>, vector<64x128xf32>
    tpu.vector_store %arg12[%c0_33, %c896], %31 {strides = array<i32>} : memref<64x1152xf32, #tpu.memory_space<vmem>>, vector<64x128xf32>,
    %c8 = arith.constant 8 : index
    %c0_34 = arith.constant 0 : index
    %c0_35 = arith.constant 0 : index
    %33 = vector.load %arg2[%c8, %c0_34, %c0_35] : memref<9x64x256xf32, #tpu.memory_space<vmem>>, vector<1x64x256xf32>
    %34 = vector.shape_cast %33 : vector<1x64x256xf32> to vector<64x256xf32>
    %cst_36 = arith.constant dense<0.000000e+00> : vector<64x128xf32>
    %35 = tpu.matmul %34, %0, %cst_36 {dimension_numbers = #tpu.dot_dimension_numbers<[1], [0], [0], [1], [0, 0, 1, 1], [], []>} : vector<64x256xf32>, vector<256x128xf32>, vector<64x128xf32> -> vector<64x128xf32>
    %c0_37 = arith.constant 0 : index
    %c1024 = arith.constant 1024 : index
    %36 = vector.load %arg12[%c0_37, %c1024] : memref<64x1152xf32, #tpu.memory_space<vmem>>, vector<64x128xf32>
    tpu.vector_store %arg12[%c0_37, %c1024], %35 {strides = array<i32>} : memref<64x1152xf32, #tpu.memory_space<vmem>>, vector<64x128xf32>,
    %c0_38 = arith.constant 0 : index
    %c0_39 = arith.constant 0 : index
    %37 = vector.load %arg12[%c0_38, %c0_39] : memref<64x1152xf32, #tpu.memory_space<vmem>>, vector<64x1152xf32>
    %c0_40 = arith.constant 0 : index
    %c0_41 = arith.constant 0 : index
    %c0_42 = arith.constant 0 : index
    %38 = vector.load %arg6[%c0_40, %c0_41, %c0_42] : memref<4x1152x128xf32, #tpu.memory_space<vmem>>, vector<1x1152x128xf32>
    %39 = vector.shape_cast %38 : vector<1x1152x128xf32> to vector<1152x128xf32>
    %cst_43 = arith.constant dense<0.000000e+00> : vector<64x128xf32>
    %40 = tpu.matmul %37, %39, %cst_43 {dimension_numbers = #tpu.dot_dimension_numbers<[1], [0], [0], [1], [0, 0, 1, 1], [], []>} : vector<64x1152xf32>, vector<1152x128xf32>, vector<64x128xf32> -> vector<64x128xf32>
    %c0_44 = arith.constant 0 : index
    %c0_45 = arith.constant 0 : index
    %c0_46 = arith.constant 0 : index
    %41 = vector.load %arg7[%c0_44, %c0_45, %c0_46] : memref<4x1x128xf32, #tpu.memory_space<vmem>>, vector<1x1x128xf32>
    %42 = vector.shape_cast %41 : vector<1x1x128xf32> to vector<1x128xf32>
    %43 = vector.broadcast %42 : vector<1x128xf32> to vector<64x128xf32>
    %44 = arith.addf %40, %43 : vector<64x128xf32>
    %cst_47 = arith.constant 0.000000e+00 : f32
    %45 = vector.broadcast %cst_47 : f32 to vector<64x128xf32>
    %46 = arith.cmpf oge, %44, %45 : vector<64x128xf32>
    %cst_48 = arith.constant 2.000000e-01 : f32
    %47 = vector.broadcast %cst_48 : f32 to vector<64x128xf32>
    %48 = arith.mulf %47, %44 : vector<64x128xf32>
    %49 = arith.select %46, %44, %48 : vector<64x128xi1>, vector<64x128xf32>
    %c0_49 = arith.constant 0 : index
    %c0_50 = arith.constant 0 : index
    %50 = vector.load %arg8[%c0_49, %c0_50] : memref<64x128xf32, #tpu.memory_space<vmem>>, vector<64x128xf32>
    tpu.vector_store %arg8[%c0_49, %c0_50], %49 {strides = array<i32>} : memref<64x128xf32, #tpu.memory_space<vmem>>, vector<64x128xf32>,
    %c0_51 = arith.constant 0 : index
    %c0_52 = arith.constant 0 : index
    %c0_53 = arith.constant 0 : index
    %51 = vector.load %arg3[%c0_51, %c0_52, %c0_53] : memref<9x16x64xf32, #tpu.memory_space<vmem>>, vector<1x16x64xf32>
    %52 = vector.shape_cast %51 : vector<1x16x64xf32> to vector<16x64xf32>
    %cst_54 = arith.constant dense<0.000000e+00> : vector<16x128xf32>
    %53 = tpu.matmul %52, %49, %cst_54 {dimension_numbers = #tpu.dot_dimension_numbers<[1], [0], [0], [1], [0, 0, 1, 1], [], []>} : vector<16x64xf32>, vector<64x128xf32>, vector<16x128xf32> -> vector<16x128xf32>
    %c0_55 = arith.constant 0 : index
    %c0_56 = arith.constant 0 : index
    %54 = vector.load %arg12[%c0_55, %c0_56] : memref<64x1152xf32, #tpu.memory_space<vmem>>, vector<16x128xf32>
    tpu.vector_store %arg12[%c0_55, %c0_56], %53 {strides = array<i32>} : memref<64x1152xf32, #tpu.memory_space<vmem>>, vector<16x128xf32>,
    %c1_57 = arith.constant 1 : index
    %c0_58 = arith.constant 0 : index
    %c0_59 = arith.constant 0 : index
    %55 = vector.load %arg3[%c1_57, %c0_58, %c0_59] : memref<9x16x64xf32, #tpu.memory_space<vmem>>, vector<1x16x64xf32>
    %56 = vector.shape_cast %55 : vector<1x16x64xf32> to vector<16x64xf32>
    %cst_60 = arith.constant dense<0.000000e+00> : vector<16x128xf32>
    %57 = tpu.matmul %56, %49, %cst_60 {dimension_numbers = #tpu.dot_dimension_numbers<[1], [0], [0], [1], [0, 0, 1, 1], [], []>} : vector<16x64xf32>, vector<64x128xf32>, vector<16x128xf32> -> vector<16x128xf32>
    %c0_61 = arith.constant 0 : index
    %c128_62 = arith.constant 128 : index
    %58 = vector.load %arg12[%c0_61, %c128_62] : memref<64x1152xf32, #tpu.memory_space<vmem>>, vector<16x128xf32>
    tpu.vector_store %arg12[%c0_61, %c128_62], %57 {strides = array<i32>} : memref<64x1152xf32, #tpu.memory_space<vmem>>, vector<16x128xf32>,
    %c2_63 = arith.constant 2 : index
    %c0_64 = arith.constant 0 : index
    %c0_65 = arith.constant 0 : index
    %59 = vector.load %arg3[%c2_63, %c0_64, %c0_65] : memref<9x16x64xf32, #tpu.memory_space<vmem>>, vector<1x16x64xf32>
    %60 = vector.shape_cast %59 : vector<1x16x64xf32> to vector<16x64xf32>
    %cst_66 = arith.constant dense<0.000000e+00> : vector<16x128xf32>
    %61 = tpu.matmul %60, %49, %cst_66 {dimension_numbers = #tpu.dot_dimension_numbers<[1], [0], [0], [1], [0, 0, 1, 1], [], []>} : vector<16x64xf32>, vector<64x128xf32>, vector<16x128xf32> -> vector<16x128xf32>
    %c0_67 = arith.constant 0 : index
    %c256_68 = arith.constant 256 : index
    %62 = vector.load %arg12[%c0_67, %c256_68] : memref<64x1152xf32, #tpu.memory_space<vmem>>, vector<16x128xf32>
    tpu.vector_store %arg12[%c0_67, %c256_68], %61 {strides = array<i32>} : memref<64x1152xf32, #tpu.memory_space<vmem>>, vector<16x128xf32>,
    %c3_69 = arith.constant 3 : index
    %c0_70 = arith.constant 0 : index
    %c0_71 = arith.constant 0 : index
    %63 = vector.load %arg3[%c3_69, %c0_70, %c0_71] : memref<9x16x64xf32, #tpu.memory_space<vmem>>, vector<1x16x64xf32>
    %64 = vector.shape_cast %63 : vector<1x16x64xf32> to vector<16x64xf32>
    %cst_72 = arith.constant dense<0.000000e+00> : vector<16x128xf32>
    %65 = tpu.matmul %64, %49, %cst_72 {dimension_numbers = #tpu.dot_dimension_numbers<[1], [0], [0], [1], [0, 0, 1, 1], [], []>} : vector<16x64xf32>, vector<64x128xf32>, vector<16x128xf32> -> vector<16x128xf32>
    %c0_73 = arith.constant 0 : index
    %c384_74 = arith.constant 384 : index
    %66 = vector.load %arg12[%c0_73, %c384_74] : memref<64x1152xf32, #tpu.memory_space<vmem>>, vector<16x128xf32>
    tpu.vector_store %arg12[%c0_73, %c384_74], %65 {strides = array<i32>} : memref<64x1152xf32, #tpu.memory_space<vmem>>, vector<16x128xf32>,
    %c4_75 = arith.constant 4 : index
    %c0_76 = arith.constant 0 : index
    %c0_77 = arith.constant 0 : index
    %67 = vector.load %arg3[%c4_75, %c0_76, %c0_77] : memref<9x16x64xf32, #tpu.memory_space<vmem>>, vector<1x16x64xf32>
    %68 = vector.shape_cast %67 : vector<1x16x64xf32> to vector<16x64xf32>
    %cst_78 = arith.constant dense<0.000000e+00> : vector<16x128xf32>
    %69 = tpu.matmul %68, %49, %cst_78 {dimension_numbers = #tpu.dot_dimension_numbers<[1], [0], [0], [1], [0, 0, 1, 1], [], []>} : vector<16x64xf32>, vector<64x128xf32>, vector<16x128xf32> -> vector<16x128xf32>
    %c0_79 = arith.constant 0 : index
    %c512_80 = arith.constant 512 : index
    %70 = vector.load %arg12[%c0_79, %c512_80] : memref<64x1152xf32, #tpu.memory_space<vmem>>, vector<16x128xf32>
    tpu.vector_store %arg12[%c0_79, %c512_80], %69 {strides = array<i32>} : memref<64x1152xf32, #tpu.memory_space<vmem>>, vector<16x128xf32>,
    %c5_81 = arith.constant 5 : index
    %c0_82 = arith.constant 0 : index
    %c0_83 = arith.constant 0 : index
    %71 = vector.load %arg3[%c5_81, %c0_82, %c0_83] : memref<9x16x64xf32, #tpu.memory_space<vmem>>, vector<1x16x64xf32>
    %72 = vector.shape_cast %71 : vector<1x16x64xf32> to vector<16x64xf32>
    %cst_84 = arith.constant dense<0.000000e+00> : vector<16x128xf32>
    %73 = tpu.matmul %72, %49, %cst_84 {dimension_numbers = #tpu.dot_dimension_numbers<[1], [0], [0], [1], [0, 0, 1, 1], [], []>} : vector<16x64xf32>, vector<64x128xf32>, vector<16x128xf32> -> vector<16x128xf32>
    %c0_85 = arith.constant 0 : index
    %c640_86 = arith.constant 640 : index
    %74 = vector.load %arg12[%c0_85, %c640_86] : memref<64x1152xf32, #tpu.memory_space<vmem>>, vector<16x128xf32>
    tpu.vector_store %arg12[%c0_85, %c640_86], %73 {strides = array<i32>} : memref<64x1152xf32, #tpu.memory_space<vmem>>, vector<16x128xf32>,
    %c6_87 = arith.constant 6 : index
    %c0_88 = arith.constant 0 : index
    %c0_89 = arith.constant 0 : index
    %75 = vector.load %arg3[%c6_87, %c0_88, %c0_89] : memref<9x16x64xf32, #tpu.memory_space<vmem>>, vector<1x16x64xf32>
    %76 = vector.shape_cast %75 : vector<1x16x64xf32> to vector<16x64xf32>
    %cst_90 = arith.constant dense<0.000000e+00> : vector<16x128xf32>
    %77 = tpu.matmul %76, %49, %cst_90 {dimension_numbers = #tpu.dot_dimension_numbers<[1], [0], [0], [1], [0, 0, 1, 1], [], []>} : vector<16x64xf32>, vector<64x128xf32>, vector<16x128xf32> -> vector<16x128xf32>
    %c0_91 = arith.constant 0 : index
    %c768_92 = arith.constant 768 : index
    %78 = vector.load %arg12[%c0_91, %c768_92] : memref<64x1152xf32, #tpu.memory_space<vmem>>, vector<16x128xf32>
    tpu.vector_store %arg12[%c0_91, %c768_92], %77 {strides = array<i32>} : memref<64x1152xf32, #tpu.memory_space<vmem>>, vector<16x128xf32>,
    %c7_93 = arith.constant 7 : index
    %c0_94 = arith.constant 0 : index
    %c0_95 = arith.constant 0 : index
    %79 = vector.load %arg3[%c7_93, %c0_94, %c0_95] : memref<9x16x64xf32, #tpu.memory_space<vmem>>, vector<1x16x64xf32>
    %80 = vector.shape_cast %79 : vector<1x16x64xf32> to vector<16x64xf32>
    %cst_96 = arith.constant dense<0.000000e+00> : vector<16x128xf32>
    %81 = tpu.matmul %80, %49, %cst_96 {dimension_numbers = #tpu.dot_dimension_numbers<[1], [0], [0], [1], [0, 0, 1, 1], [], []>} : vector<16x64xf32>, vector<64x128xf32>, vector<16x128xf32> -> vector<16x128xf32>
    %c0_97 = arith.constant 0 : index
    %c896_98 = arith.constant 896 : index
    %82 = vector.load %arg12[%c0_97, %c896_98] : memref<64x1152xf32, #tpu.memory_space<vmem>>, vector<16x128xf32>
    tpu.vector_store %arg12[%c0_97, %c896_98], %81 {strides = array<i32>} : memref<64x1152xf32, #tpu.memory_space<vmem>>, vector<16x128xf32>,
    %c8_99 = arith.constant 8 : index
    %c0_100 = arith.constant 0 : index
    %c0_101 = arith.constant 0 : index
    %83 = vector.load %arg3[%c8_99, %c0_100, %c0_101] : memref<9x16x64xf32, #tpu.memory_space<vmem>>, vector<1x16x64xf32>
    %84 = vector.shape_cast %83 : vector<1x16x64xf32> to vector<16x64xf32>
    %cst_102 = arith.constant dense<0.000000e+00> : vector<16x128xf32>
    %85 = tpu.matmul %84, %49, %cst_102 {dimension_numbers = #tpu.dot_dimension_numbers<[1], [0], [0], [1], [0, 0, 1, 1], [], []>} : vector<16x64xf32>, vector<64x128xf32>, vector<16x128xf32> -> vector<16x128xf32>
    %c0_103 = arith.constant 0 : index
    %c1024_104 = arith.constant 1024 : index
    %86 = vector.load %arg12[%c0_103, %c1024_104] : memref<64x1152xf32, #tpu.memory_space<vmem>>, vector<16x128xf32>
    tpu.vector_store %arg12[%c0_103, %c1024_104], %85 {strides = array<i32>} : memref<64x1152xf32, #tpu.memory_space<vmem>>, vector<16x128xf32>,
    %c0_105 = arith.constant 0 : index
    %c0_106 = arith.constant 0 : index
    %87 = vector.load %arg12[%c0_105, %c0_106] : memref<64x1152xf32, #tpu.memory_space<vmem>>, vector<16x1152xf32>
    %c1_107 = arith.constant 1 : index
    %c0_108 = arith.constant 0 : index
    %c0_109 = arith.constant 0 : index
    %88 = vector.load %arg6[%c1_107, %c0_108, %c0_109] : memref<4x1152x128xf32, #tpu.memory_space<vmem>>, vector<1x1152x128xf32>
    %89 = vector.shape_cast %88 : vector<1x1152x128xf32> to vector<1152x128xf32>
    %cst_110 = arith.constant dense<0.000000e+00> : vector<16x128xf32>
    %90 = tpu.matmul %87, %89, %cst_110 {dimension_numbers = #tpu.dot_dimension_numbers<[1], [0], [0], [1], [0, 0, 1, 1], [], []>} : vector<16x1152xf32>, vector<1152x128xf32>, vector<16x128xf32> -> vector<16x128xf32>
    %c1_111 = arith.constant 1 : index
    %c0_112 = arith.constant 0 : index
    %c0_113 = arith.constant 0 : index
    %91 = vector.load %arg7[%c1_111, %c0_112, %c0_113] : memref<4x1x128xf32, #tpu.memory_space<vmem>>, vector<1x1x128xf32>
    %92 = vector.shape_cast %91 : vector<1x1x128xf32> to vector<1x128xf32>
    %93 = vector.broadcast %92 : vector<1x128xf32> to vector<16x128xf32>
    %94 = arith.addf %90, %93 : vector<16x128xf32>
    %cst_114 = arith.constant 0.000000e+00 : f32
    %95 = vector.broadcast %cst_114 : f32 to vector<16x128xf32>
    %96 = arith.cmpf oge, %94, %95 : vector<16x128xf32>
    %cst_115 = arith.constant 2.000000e-01 : f32
    %97 = vector.broadcast %cst_115 : f32 to vector<16x128xf32>
    %98 = arith.mulf %97, %94 : vector<16x128xf32>
    %99 = arith.select %96, %94, %98 : vector<16x128xi1>, vector<16x128xf32>
    %c0_116 = arith.constant 0 : index
    %c0_117 = arith.constant 0 : index
    %100 = vector.load %arg9[%c0_116, %c0_117] : memref<16x128xf32, #tpu.memory_space<vmem>>, vector<16x128xf32>
    tpu.vector_store %arg9[%c0_116, %c0_117], %99 {strides = array<i32>} : memref<16x128xf32, #tpu.memory_space<vmem>>, vector<16x128xf32>,
    %c0_118 = arith.constant 0 : index
    %c0_119 = arith.constant 0 : index
    %c0_120 = arith.constant 0 : index
    %101 = vector.load %arg4[%c0_118, %c0_119, %c0_120] : memref<9x16x16xf32, #tpu.memory_space<vmem>>, vector<1x16x16xf32>
    %102 = vector.shape_cast %101 : vector<1x16x16xf32> to vector<16x16xf32>
    %cst_121 = arith.constant dense<0.000000e+00> : vector<16x128xf32>
    %103 = tpu.matmul %102, %99, %cst_121 {dimension_numbers = #tpu.dot_dimension_numbers<[1], [0], [0], [1], [0, 0, 1, 1], [], []>} : vector<16x16xf32>, vector<16x128xf32>, vector<16x128xf32> -> vector<16x128xf32>
    %c0_122 = arith.constant 0 : index
    %c0_123 = arith.constant 0 : index
    %104 = vector.load %arg12[%c0_122, %c0_123] : memref<64x1152xf32, #tpu.memory_space<vmem>>, vector<16x128xf32>
    tpu.vector_store %arg12[%c0_122, %c0_123], %103 {strides = array<i32>} : memref<64x1152xf32, #tpu.memory_space<vmem>>, vector<16x128xf32>,
    %c1_124 = arith.constant 1 : index
    %c0_125 = arith.constant 0 : index
    %c0_126 = arith.constant 0 : index
    %105 = vector.load %arg4[%c1_124, %c0_125, %c0_126] : memref<9x16x16xf32, #tpu.memory_space<vmem>>, vector<1x16x16xf32>
    %106 = vector.shape_cast %105 : vector<1x16x16xf32> to vector<16x16xf32>
    %cst_127 = arith.constant dense<0.000000e+00> : vector<16x128xf32>
    %107 = tpu.matmul %106, %99, %cst_127 {dimension_numbers = #tpu.dot_dimension_numbers<[1], [0], [0], [1], [0, 0, 1, 1], [], []>} : vector<16x16xf32>, vector<16x128xf32>, vector<16x128xf32> -> vector<16x128xf32>
    %c0_128 = arith.constant 0 : index
    %c128_129 = arith.constant 128 : index
    %108 = vector.load %arg12[%c0_128, %c128_129] : memref<64x1152xf32, #tpu.memory_space<vmem>>, vector<16x128xf32>
    tpu.vector_store %arg12[%c0_128, %c128_129], %107 {strides = array<i32>} : memref<64x1152xf32, #tpu.memory_space<vmem>>, vector<16x128xf32>,
    %c2_130 = arith.constant 2 : index
    %c0_131 = arith.constant 0 : index
    %c0_132 = arith.constant 0 : index
    %109 = vector.load %arg4[%c2_130, %c0_131, %c0_132] : memref<9x16x16xf32, #tpu.memory_space<vmem>>, vector<1x16x16xf32>
    %110 = vector.shape_cast %109 : vector<1x16x16xf32> to vector<16x16xf32>
    %cst_133 = arith.constant dense<0.000000e+00> : vector<16x128xf32>
    %111 = tpu.matmul %110, %99, %cst_133 {dimension_numbers = #tpu.dot_dimension_numbers<[1], [0], [0], [1], [0, 0, 1, 1], [], []>} : vector<16x16xf32>, vector<16x128xf32>, vector<16x128xf32> -> vector<16x128xf32>
    %c0_134 = arith.constant 0 : index
    %c256_135 = arith.constant 256 : index
    %112 = vector.load %arg12[%c0_134, %c256_135] : memref<64x1152xf32, #tpu.memory_space<vmem>>, vector<16x128xf32>
    tpu.vector_store %arg12[%c0_134, %c256_135], %111 {strides = array<i32>} : memref<64x1152xf32, #tpu.memory_space<vmem>>, vector<16x128xf32>,
    %c3_136 = arith.constant 3 : index
    %c0_137 = arith.constant 0 : index
    %c0_138 = arith.constant 0 : index
    %113 = vector.load %arg4[%c3_136, %c0_137, %c0_138] : memref<9x16x16xf32, #tpu.memory_space<vmem>>, vector<1x16x16xf32>
    %114 = vector.shape_cast %113 : vector<1x16x16xf32> to vector<16x16xf32>
    %cst_139 = arith.constant dense<0.000000e+00> : vector<16x128xf32>
    %115 = tpu.matmul %114, %99, %cst_139 {dimension_numbers = #tpu.dot_dimension_numbers<[1], [0], [0], [1], [0, 0, 1, 1], [], []>} : vector<16x16xf32>, vector<16x128xf32>, vector<16x128xf32> -> vector<16x128xf32>
    %c0_140 = arith.constant 0 : index
    %c384_141 = arith.constant 384 : index
    %116 = vector.load %arg12[%c0_140, %c384_141] : memref<64x1152xf32, #tpu.memory_space<vmem>>, vector<16x128xf32>
    tpu.vector_store %arg12[%c0_140, %c384_141], %115 {strides = array<i32>} : memref<64x1152xf32, #tpu.memory_space<vmem>>, vector<16x128xf32>,
    %c4_142 = arith.constant 4 : index
    %c0_143 = arith.constant 0 : index
    %c0_144 = arith.constant 0 : index
    %117 = vector.load %arg4[%c4_142, %c0_143, %c0_144] : memref<9x16x16xf32, #tpu.memory_space<vmem>>, vector<1x16x16xf32>
    %118 = vector.shape_cast %117 : vector<1x16x16xf32> to vector<16x16xf32>
    %cst_145 = arith.constant dense<0.000000e+00> : vector<16x128xf32>
    %119 = tpu.matmul %118, %99, %cst_145 {dimension_numbers = #tpu.dot_dimension_numbers<[1], [0], [0], [1], [0, 0, 1, 1], [], []>} : vector<16x16xf32>, vector<16x128xf32>, vector<16x128xf32> -> vector<16x128xf32>
    %c0_146 = arith.constant 0 : index
    %c512_147 = arith.constant 512 : index
    %120 = vector.load %arg12[%c0_146, %c512_147] : memref<64x1152xf32, #tpu.memory_space<vmem>>, vector<16x128xf32>
    tpu.vector_store %arg12[%c0_146, %c512_147], %119 {strides = array<i32>} : memref<64x1152xf32, #tpu.memory_space<vmem>>, vector<16x128xf32>,
    %c5_148 = arith.constant 5 : index
    %c0_149 = arith.constant 0 : index
    %c0_150 = arith.constant 0 : index
    %121 = vector.load %arg4[%c5_148, %c0_149, %c0_150] : memref<9x16x16xf32, #tpu.memory_space<vmem>>, vector<1x16x16xf32>
    %122 = vector.shape_cast %121 : vector<1x16x16xf32> to vector<16x16xf32>
    %cst_151 = arith.constant dense<0.000000e+00> : vector<16x128xf32>
    %123 = tpu.matmul %122, %99, %cst_151 {dimension_numbers = #tpu.dot_dimension_numbers<[1], [0], [0], [1], [0, 0, 1, 1], [], []>} : vector<16x16xf32>, vector<16x128xf32>, vector<16x128xf32> -> vector<16x128xf32>
    %c0_152 = arith.constant 0 : index
    %c640_153 = arith.constant 640 : index
    %124 = vector.load %arg12[%c0_152, %c640_153] : memref<64x1152xf32, #tpu.memory_space<vmem>>, vector<16x128xf32>
    tpu.vector_store %arg12[%c0_152, %c640_153], %123 {strides = array<i32>} : memref<64x1152xf32, #tpu.memory_space<vmem>>, vector<16x128xf32>,
    %c6_154 = arith.constant 6 : index
    %c0_155 = arith.constant 0 : index
    %c0_156 = arith.constant 0 : index
    %125 = vector.load %arg4[%c6_154, %c0_155, %c0_156] : memref<9x16x16xf32, #tpu.memory_space<vmem>>, vector<1x16x16xf32>
    %126 = vector.shape_cast %125 : vector<1x16x16xf32> to vector<16x16xf32>
    %cst_157 = arith.constant dense<0.000000e+00> : vector<16x128xf32>
    %127 = tpu.matmul %126, %99, %cst_157 {dimension_numbers = #tpu.dot_dimension_numbers<[1], [0], [0], [1], [0, 0, 1, 1], [], []>} : vector<16x16xf32>, vector<16x128xf32>, vector<16x128xf32> -> vector<16x128xf32>
    %c0_158 = arith.constant 0 : index
    %c768_159 = arith.constant 768 : index
    %128 = vector.load %arg12[%c0_158, %c768_159] : memref<64x1152xf32, #tpu.memory_space<vmem>>, vector<16x128xf32>
    tpu.vector_store %arg12[%c0_158, %c768_159], %127 {strides = array<i32>} : memref<64x1152xf32, #tpu.memory_space<vmem>>, vector<16x128xf32>,
    %c7_160 = arith.constant 7 : index
    %c0_161 = arith.constant 0 : index
    %c0_162 = arith.constant 0 : index
    %129 = vector.load %arg4[%c7_160, %c0_161, %c0_162] : memref<9x16x16xf32, #tpu.memory_space<vmem>>, vector<1x16x16xf32>
    %130 = vector.shape_cast %129 : vector<1x16x16xf32> to vector<16x16xf32>
    %cst_163 = arith.constant dense<0.000000e+00> : vector<16x128xf32>
    %131 = tpu.matmul %130, %99, %cst_163 {dimension_numbers = #tpu.dot_dimension_numbers<[1], [0], [0], [1], [0, 0, 1, 1], [], []>} : vector<16x16xf32>, vector<16x128xf32>, vector<16x128xf32> -> vector<16x128xf32>
    %c0_164 = arith.constant 0 : index
    %c896_165 = arith.constant 896 : index
    %132 = vector.load %arg12[%c0_164, %c896_165] : memref<64x1152xf32, #tpu.memory_space<vmem>>, vector<16x128xf32>
    tpu.vector_store %arg12[%c0_164, %c896_165], %131 {strides = array<i32>} : memref<64x1152xf32, #tpu.memory_space<vmem>>, vector<16x128xf32>,
    %c8_166 = arith.constant 8 : index
    %c0_167 = arith.constant 0 : index
    %c0_168 = arith.constant 0 : index
    %133 = vector.load %arg4[%c8_166, %c0_167, %c0_168] : memref<9x16x16xf32, #tpu.memory_space<vmem>>, vector<1x16x16xf32>
    %134 = vector.shape_cast %133 : vector<1x16x16xf32> to vector<16x16xf32>
    %cst_169 = arith.constant dense<0.000000e+00> : vector<16x128xf32>
    %135 = tpu.matmul %134, %99, %cst_169 {dimension_numbers = #tpu.dot_dimension_numbers<[1], [0], [0], [1], [0, 0, 1, 1], [], []>} : vector<16x16xf32>, vector<16x128xf32>, vector<16x128xf32> -> vector<16x128xf32>
    %c0_170 = arith.constant 0 : index
    %c1024_171 = arith.constant 1024 : index
    %136 = vector.load %arg12[%c0_170, %c1024_171] : memref<64x1152xf32, #tpu.memory_space<vmem>>, vector<16x128xf32>
    tpu.vector_store %arg12[%c0_170, %c1024_171], %135 {strides = array<i32>} : memref<64x1152xf32, #tpu.memory_space<vmem>>, vector<16x128xf32>,
    %c0_172 = arith.constant 0 : index
    %c0_173 = arith.constant 0 : index
    %137 = vector.load %arg12[%c0_172, %c0_173] : memref<64x1152xf32, #tpu.memory_space<vmem>>, vector<16x1152xf32>
    %c2_174 = arith.constant 2 : index
    %c0_175 = arith.constant 0 : index
    %c0_176 = arith.constant 0 : index
    %138 = vector.load %arg6[%c2_174, %c0_175, %c0_176] : memref<4x1152x128xf32, #tpu.memory_space<vmem>>, vector<1x1152x128xf32>
    %139 = vector.shape_cast %138 : vector<1x1152x128xf32> to vector<1152x128xf32>
    %cst_177 = arith.constant dense<0.000000e+00> : vector<16x128xf32>
    %140 = tpu.matmul %137, %139, %cst_177 {dimension_numbers = #tpu.dot_dimension_numbers<[1], [0], [0], [1], [0, 0, 1, 1], [], []>} : vector<16x1152xf32>, vector<1152x128xf32>, vector<16x128xf32> -> vector<16x128xf32>
    %c2_178 = arith.constant 2 : index
    %c0_179 = arith.constant 0 : index
    %c0_180 = arith.constant 0 : index
    %141 = vector.load %arg7[%c2_178, %c0_179, %c0_180] : memref<4x1x128xf32, #tpu.memory_space<vmem>>, vector<1x1x128xf32>
    %142 = vector.shape_cast %141 : vector<1x1x128xf32> to vector<1x128xf32>
    %143 = vector.broadcast %142 : vector<1x128xf32> to vector<16x128xf32>
    %144 = arith.addf %140, %143 : vector<16x128xf32>
    %cst_181 = arith.constant 0.000000e+00 : f32
    %145 = vector.broadcast %cst_181 : f32 to vector<16x128xf32>
    %146 = arith.cmpf oge, %144, %145 : vector<16x128xf32>
    %cst_182 = arith.constant 2.000000e-01 : f32
    %147 = vector.broadcast %cst_182 : f32 to vector<16x128xf32>
    %148 = arith.mulf %147, %144 : vector<16x128xf32>
    %149 = arith.select %146, %144, %148 : vector<16x128xi1>, vector<16x128xf32>
    %c0_183 = arith.constant 0 : index
    %c0_184 = arith.constant 0 : index
    %150 = vector.load %arg10[%c0_183, %c0_184] : memref<16x128xf32, #tpu.memory_space<vmem>>, vector<16x128xf32>
    tpu.vector_store %arg10[%c0_183, %c0_184], %149 {strides = array<i32>} : memref<16x128xf32, #tpu.memory_space<vmem>>, vector<16x128xf32>,
    %c0_185 = arith.constant 0 : index
    %c0_186 = arith.constant 0 : index
    %c0_187 = arith.constant 0 : index
    %151 = vector.load %arg5[%c0_185, %c0_186, %c0_187] : memref<9x16x16xf32, #tpu.memory_space<vmem>>, vector<1x16x16xf32>
    %152 = vector.shape_cast %151 : vector<1x16x16xf32> to vector<16x16xf32>
    %cst_188 = arith.constant dense<0.000000e+00> : vector<16x128xf32>
    %153 = tpu.matmul %152, %149, %cst_188 {dimension_numbers = #tpu.dot_dimension_numbers<[1], [0], [0], [1], [0, 0, 1, 1], [], []>} : vector<16x16xf32>, vector<16x128xf32>, vector<16x128xf32> -> vector<16x128xf32>
    %c0_189 = arith.constant 0 : index
    %c0_190 = arith.constant 0 : index
    %154 = vector.load %arg12[%c0_189, %c0_190] : memref<64x1152xf32, #tpu.memory_space<vmem>>, vector<16x128xf32>
    tpu.vector_store %arg12[%c0_189, %c0_190], %153 {strides = array<i32>} : memref<64x1152xf32, #tpu.memory_space<vmem>>, vector<16x128xf32>,
    %c1_191 = arith.constant 1 : index
    %c0_192 = arith.constant 0 : index
    %c0_193 = arith.constant 0 : index
    %155 = vector.load %arg5[%c1_191, %c0_192, %c0_193] : memref<9x16x16xf32, #tpu.memory_space<vmem>>, vector<1x16x16xf32>
    %156 = vector.shape_cast %155 : vector<1x16x16xf32> to vector<16x16xf32>
    %cst_194 = arith.constant dense<0.000000e+00> : vector<16x128xf32>
    %157 = tpu.matmul %156, %149, %cst_194 {dimension_numbers = #tpu.dot_dimension_numbers<[1], [0], [0], [1], [0, 0, 1, 1], [], []>} : vector<16x16xf32>, vector<16x128xf32>, vector<16x128xf32> -> vector<16x128xf32>
    %c0_195 = arith.constant 0 : index
    %c128_196 = arith.constant 128 : index
    %158 = vector.load %arg12[%c0_195, %c128_196] : memref<64x1152xf32, #tpu.memory_space<vmem>>, vector<16x128xf32>
    tpu.vector_store %arg12[%c0_195, %c128_196], %157 {strides = array<i32>} : memref<64x1152xf32, #tpu.memory_space<vmem>>, vector<16x128xf32>,
    %c2_197 = arith.constant 2 : index
    %c0_198 = arith.constant 0 : index
    %c0_199 = arith.constant 0 : index
    %159 = vector.load %arg5[%c2_197, %c0_198, %c0_199] : memref<9x16x16xf32, #tpu.memory_space<vmem>>, vector<1x16x16xf32>
    %160 = vector.shape_cast %159 : vector<1x16x16xf32> to vector<16x16xf32>
    %cst_200 = arith.constant dense<0.000000e+00> : vector<16x128xf32>
    %161 = tpu.matmul %160, %149, %cst_200 {dimension_numbers = #tpu.dot_dimension_numbers<[1], [0], [0], [1], [0, 0, 1, 1], [], []>} : vector<16x16xf32>, vector<16x128xf32>, vector<16x128xf32> -> vector<16x128xf32>
    %c0_201 = arith.constant 0 : index
    %c256_202 = arith.constant 256 : index
    %162 = vector.load %arg12[%c0_201, %c256_202] : memref<64x1152xf32, #tpu.memory_space<vmem>>, vector<16x128xf32>
    tpu.vector_store %arg12[%c0_201, %c256_202], %161 {strides = array<i32>} : memref<64x1152xf32, #tpu.memory_space<vmem>>, vector<16x128xf32>,
    %c3_203 = arith.constant 3 : index
    %c0_204 = arith.constant 0 : index
    %c0_205 = arith.constant 0 : index
    %163 = vector.load %arg5[%c3_203, %c0_204, %c0_205] : memref<9x16x16xf32, #tpu.memory_space<vmem>>, vector<1x16x16xf32>
    %164 = vector.shape_cast %163 : vector<1x16x16xf32> to vector<16x16xf32>
    %cst_206 = arith.constant dense<0.000000e+00> : vector<16x128xf32>
    %165 = tpu.matmul %164, %149, %cst_206 {dimension_numbers = #tpu.dot_dimension_numbers<[1], [0], [0], [1], [0, 0, 1, 1], [], []>} : vector<16x16xf32>, vector<16x128xf32>, vector<16x128xf32> -> vector<16x128xf32>
    %c0_207 = arith.constant 0 : index
    %c384_208 = arith.constant 384 : index
    %166 = vector.load %arg12[%c0_207, %c384_208] : memref<64x1152xf32, #tpu.memory_space<vmem>>, vector<16x128xf32>
    tpu.vector_store %arg12[%c0_207, %c384_208], %165 {strides = array<i32>} : memref<64x1152xf32, #tpu.memory_space<vmem>>, vector<16x128xf32>,
    %c4_209 = arith.constant 4 : index
    %c0_210 = arith.constant 0 : index
    %c0_211 = arith.constant 0 : index
    %167 = vector.load %arg5[%c4_209, %c0_210, %c0_211] : memref<9x16x16xf32, #tpu.memory_space<vmem>>, vector<1x16x16xf32>
    %168 = vector.shape_cast %167 : vector<1x16x16xf32> to vector<16x16xf32>
    %cst_212 = arith.constant dense<0.000000e+00> : vector<16x128xf32>
    %169 = tpu.matmul %168, %149, %cst_212 {dimension_numbers = #tpu.dot_dimension_numbers<[1], [0], [0], [1], [0, 0, 1, 1], [], []>} : vector<16x16xf32>, vector<16x128xf32>, vector<16x128xf32> -> vector<16x128xf32>
    %c0_213 = arith.constant 0 : index
    %c512_214 = arith.constant 512 : index
    %170 = vector.load %arg12[%c0_213, %c512_214] : memref<64x1152xf32, #tpu.memory_space<vmem>>, vector<16x128xf32>
    tpu.vector_store %arg12[%c0_213, %c512_214], %169 {strides = array<i32>} : memref<64x1152xf32, #tpu.memory_space<vmem>>, vector<16x128xf32>,
    %c5_215 = arith.constant 5 : index
    %c0_216 = arith.constant 0 : index
    %c0_217 = arith.constant 0 : index
    %171 = vector.load %arg5[%c5_215, %c0_216, %c0_217] : memref<9x16x16xf32, #tpu.memory_space<vmem>>, vector<1x16x16xf32>
    %172 = vector.shape_cast %171 : vector<1x16x16xf32> to vector<16x16xf32>
    %cst_218 = arith.constant dense<0.000000e+00> : vector<16x128xf32>
    %173 = tpu.matmul %172, %149, %cst_218 {dimension_numbers = #tpu.dot_dimension_numbers<[1], [0], [0], [1], [0, 0, 1, 1], [], []>} : vector<16x16xf32>, vector<16x128xf32>, vector<16x128xf32> -> vector<16x128xf32>
    %c0_219 = arith.constant 0 : index
    %c640_220 = arith.constant 640 : index
    %174 = vector.load %arg12[%c0_219, %c640_220] : memref<64x1152xf32, #tpu.memory_space<vmem>>, vector<16x128xf32>
    tpu.vector_store %arg12[%c0_219, %c640_220], %173 {strides = array<i32>} : memref<64x1152xf32, #tpu.memory_space<vmem>>, vector<16x128xf32>,
    %c6_221 = arith.constant 6 : index
    %c0_222 = arith.constant 0 : index
    %c0_223 = arith.constant 0 : index
    %175 = vector.load %arg5[%c6_221, %c0_222, %c0_223] : memref<9x16x16xf32, #tpu.memory_space<vmem>>, vector<1x16x16xf32>
    %176 = vector.shape_cast %175 : vector<1x16x16xf32> to vector<16x16xf32>
    %cst_224 = arith.constant dense<0.000000e+00> : vector<16x128xf32>
    %177 = tpu.matmul %176, %149, %cst_224 {dimension_numbers = #tpu.dot_dimension_numbers<[1], [0], [0], [1], [0, 0, 1, 1], [], []>} : vector<16x16xf32>, vector<16x128xf32>, vector<16x128xf32> -> vector<16x128xf32>
    %c0_225 = arith.constant 0 : index
    %c768_226 = arith.constant 768 : index
    %178 = vector.load %arg12[%c0_225, %c768_226] : memref<64x1152xf32, #tpu.memory_space<vmem>>, vector<16x128xf32>
    tpu.vector_store %arg12[%c0_225, %c768_226], %177 {strides = array<i32>} : memref<64x1152xf32, #tpu.memory_space<vmem>>, vector<16x128xf32>,
    %c7_227 = arith.constant 7 : index
    %c0_228 = arith.constant 0 : index
    %c0_229 = arith.constant 0 : index
    %179 = vector.load %arg5[%c7_227, %c0_228, %c0_229] : memref<9x16x16xf32, #tpu.memory_space<vmem>>, vector<1x16x16xf32>
    %180 = vector.shape_cast %179 : vector<1x16x16xf32> to vector<16x16xf32>
    %cst_230 = arith.constant dense<0.000000e+00> : vector<16x128xf32>
    %181 = tpu.matmul %180, %149, %cst_230 {dimension_numbers = #tpu.dot_dimension_numbers<[1], [0], [0], [1], [0, 0, 1, 1], [], []>} : vector<16x16xf32>, vector<16x128xf32>, vector<16x128xf32> -> vector<16x128xf32>
    %c0_231 = arith.constant 0 : index
    %c896_232 = arith.constant 896 : index
    %182 = vector.load %arg12[%c0_231, %c896_232] : memref<64x1152xf32, #tpu.memory_space<vmem>>, vector<16x128xf32>
    tpu.vector_store %arg12[%c0_231, %c896_232], %181 {strides = array<i32>} : memref<64x1152xf32, #tpu.memory_space<vmem>>, vector<16x128xf32>,
    %c8_233 = arith.constant 8 : index
    %c0_234 = arith.constant 0 : index
    %c0_235 = arith.constant 0 : index
    %183 = vector.load %arg5[%c8_233, %c0_234, %c0_235] : memref<9x16x16xf32, #tpu.memory_space<vmem>>, vector<1x16x16xf32>
    %184 = vector.shape_cast %183 : vector<1x16x16xf32> to vector<16x16xf32>
    %cst_236 = arith.constant dense<0.000000e+00> : vector<16x128xf32>
    %185 = tpu.matmul %184, %149, %cst_236 {dimension_numbers = #tpu.dot_dimension_numbers<[1], [0], [0], [1], [0, 0, 1, 1], [], []>} : vector<16x16xf32>, vector<16x128xf32>, vector<16x128xf32> -> vector<16x128xf32>
    %c0_237 = arith.constant 0 : index
    %c1024_238 = arith.constant 1024 : index
    %186 = vector.load %arg12[%c0_237, %c1024_238] : memref<64x1152xf32, #tpu.memory_space<vmem>>, vector<16x128xf32>
    tpu.vector_store %arg12[%c0_237, %c1024_238], %185 {strides = array<i32>} : memref<64x1152xf32, #tpu.memory_space<vmem>>, vector<16x128xf32>,
    %c0_239 = arith.constant 0 : index
    %c0_240 = arith.constant 0 : index
    %187 = vector.load %arg12[%c0_239, %c0_240] : memref<64x1152xf32, #tpu.memory_space<vmem>>, vector<16x1152xf32>
    %c3_241 = arith.constant 3 : index
    %c0_242 = arith.constant 0 : index
    %c0_243 = arith.constant 0 : index
    %188 = vector.load %arg6[%c3_241, %c0_242, %c0_243] : memref<4x1152x128xf32, #tpu.memory_space<vmem>>, vector<1x1152x128xf32>
    %189 = vector.shape_cast %188 : vector<1x1152x128xf32> to vector<1152x128xf32>
    %cst_244 = arith.constant dense<0.000000e+00> : vector<16x128xf32>
    %190 = tpu.matmul %187, %189, %cst_244 {dimension_numbers = #tpu.dot_dimension_numbers<[1], [0], [0], [1], [0, 0, 1, 1], [], []>} : vector<16x1152xf32>, vector<1152x128xf32>, vector<16x128xf32> -> vector<16x128xf32>
    %c3_245 = arith.constant 3 : index
    %c0_246 = arith.constant 0 : index
    %c0_247 = arith.constant 0 : index
    %191 = vector.load %arg7[%c3_245, %c0_246, %c0_247] : memref<4x1x128xf32, #tpu.memory_space<vmem>>, vector<1x1x128xf32>
    %192 = vector.shape_cast %191 : vector<1x1x128xf32> to vector<1x128xf32>
    %193 = vector.broadcast %192 : vector<1x128xf32> to vector<16x128xf32>
    %194 = arith.addf %190, %193 : vector<16x128xf32>
    %c0_248 = arith.constant 0 : index
    %c0_249 = arith.constant 0 : index
    %195 = vector.load %arg11[%c0_248, %c0_249] : memref<16x128xf32, #tpu.memory_space<vmem>>, vector<16x128xf32>
    tpu.vector_store %arg11[%c0_248, %c0_249], %194 {strides = array<i32>} : memref<16x128xf32, #tpu.memory_space<vmem>>, vector<16x128xf32>,
    return
  }
  func.func @transform_0(%arg0: i32) -> (i32, i32) {
    %c0_i32 = arith.constant 0 : i32
    %c0_i32_0 = arith.constant 0 : i32
    return %arg0, %c0_i32 : i32, i32
  }
  func.func @transform_1(%arg0: i32) -> (i32, i32, i32) {
    %c0_i32 = arith.constant 0 : i32
    %c0_i32_0 = arith.constant 0 : i32
    %c0_i32_1 = arith.constant 0 : i32
    %c0_i32_2 = arith.constant 0 : i32
    return %c0_i32, %c0_i32_0, %c0_i32_1 : i32, i32, i32
  }
  func.func @transform_2(%arg0: i32) -> (i32, i32, i32) {
    %c0_i32 = arith.constant 0 : i32
    %c0_i32_0 = arith.constant 0 : i32
    %c0_i32_1 = arith.constant 0 : i32
    %c0_i32_2 = arith.constant 0 : i32
    return %c0_i32, %c0_i32_0, %c0_i32_1 : i32, i32, i32
  }
  func.func @transform_3(%arg0: i32) -> (i32, i32, i32) {
    %c0_i32 = arith.constant 0 : i32
    %c0_i32_0 = arith.constant 0 : i32
    %c0_i32_1 = arith.constant 0 : i32
    %c0_i32_2 = arith.constant 0 : i32
    return %c0_i32, %c0_i32_0, %c0_i32_1 : i32, i32, i32
  }
  func.func @transform_4(%arg0: i32) -> (i32, i32, i32) {
    %c0_i32 = arith.constant 0 : i32
    %c0_i32_0 = arith.constant 0 : i32
    %c0_i32_1 = arith.constant 0 : i32
    %c0_i32_2 = arith.constant 0 : i32
    return %c0_i32, %c0_i32_0, %c0_i32_1 : i32, i32, i32
  }
  func.func @transform_5(%arg0: i32) -> (i32, i32, i32) {
    %c0_i32 = arith.constant 0 : i32
    %c0_i32_0 = arith.constant 0 : i32
    %c0_i32_1 = arith.constant 0 : i32
    %c0_i32_2 = arith.constant 0 : i32
    return %c0_i32, %c0_i32_0, %c0_i32_1 : i32, i32, i32
  }
  func.func @transform_6(%arg0: i32) -> (i32, i32, i32) {
    %c0_i32 = arith.constant 0 : i32
    %c0_i32_0 = arith.constant 0 : i32
    %c0_i32_1 = arith.constant 0 : i32
    %c0_i32_2 = arith.constant 0 : i32
    return %c0_i32, %c0_i32_0, %c0_i32_1 : i32, i32, i32
  }
  func.func @transform_7(%arg0: i32) -> (i32, i32) {
    %c0_i32 = arith.constant 0 : i32
    %c0_i32_0 = arith.constant 0 : i32
    return %arg0, %c0_i32 : i32, i32
  }
  func.func @transform_8(%arg0: i32) -> (i32, i32) {
    %c0_i32 = arith.constant 0 : i32
    %c0_i32_0 = arith.constant 0 : i32
    return %arg0, %c0_i32 : i32, i32
  }
  func.func @transform_9(%arg0: i32) -> (i32, i32) {
    %c0_i32 = arith.constant 0 : i32
    %c0_i32_0 = arith.constant 0 : i32
    return %arg0, %c0_i32 : i32, i32
  }
  func.func @transform_10(%arg0: i32) -> (i32, i32) {
    %c0_i32 = arith.constant 0 : i32
    %c0_i32_0 = arith.constant 0 : i32
    return %arg0, %c0_i32 : i32, i32
  }
}

</mosaic_0001>

<bundles_post_ra>
// kernel: _forward.1
= control target key start
LH: loop header
LB: loop body
LE: loop exit
PB: predicated region body
PF: predicated region fallthrough
CT: control target
= control target key end

     0   :  { %16 = vsyncpa [#allocation4], 0  ;;  %s10015_s0 = inlined_call_operand.vmem [shape: f32[256,128], index: 0, kind: input, shape index: {}]   ;;  %s10016_s1 = inlined_call_operand.hbm [shape: f32[9,64,256], index: 1, kind: input, shape index: {}]   ;;  %s10017_s2 = inlined_call_operand.hbm [shape: f32[9,16,64], index: 2, kind: input, shape index: {}]   ;;  %s10018_s3 = inlined_call_operand.hbm [shape: f32[9,16,16], index: 3, kind: input, shape index: {}]   ;;  %s10019_s4 = inlined_call_operand.hbm [shape: f32[9,16,16], index: 4, kind: input, shape index: {}]   ;;  %s10020_s5 = inlined_call_operand.hbm [shape: f32[4,1152,128], index: 5, kind: input, shape index: {}]   ;;  %s10021_s6 = inlined_call_operand.hbm [shape: f32[4,1,128], index: 6, kind: input, shape index: {}]   ;;  %s10022_s7 = inlined_call_operand.vmem [shape: f32[64,128], index: 7, kind: output, shape index: {0}]   ;;  %s10023_s8 = inlined_call_operand.vmem [shape: f32[16,128], index: 8, kind: output, shape index: {1}]   ;;  %s10024_s9 = inlined_call_operand.vmem [shape: f32[16,128], index: 9, kind: output, shape index: {2}]   ;;  %s10025_s10 = inlined_call_operand.vmem [shape: f32[16,128], index: 10, kind: output, shape index: {3}]  }
   0x1   :  { %17 = vsyncpa [#allocation6], 0 }
   0x2   :  { %18 = vsyncpa [#allocation9], 0 }
   0x3   :  { %19 = vsyncpa [#allocation12], 0  ;;  %s9313_s13 = smov [#allocation5]   ;;  %s9173_s17 = scalar_lea.hbm %s10017_s2, 2304 }
   0x4   :  { %s39_s14 = sshll.u32 %s9313_s13, 4  ;;  %p9174_p0 = scmp.ne.s32.totalorder %s10017_s2, %s9173_s17  ;;  %s40_s14 = int_to_ptr.vmem [resolvable:$true] %s39_s14 }
   0x5   :  { %p9177_p1 = scmp.lt.u32.totalorder %s9173_s17, %s10017_s2 }
   0x7   :  { %p9179_p2 = pnand %p9177_p1, %p9174_p0 }
   0x9   :  { %9182 = shalt.err (!%p9179_p2)
}
   0xa   :  { %s9183_s22 = scalar_lea.vmem %s40_s14, 2304  ;;  %p9188_p4 = scmp.lt.s32.totalorder %s40_s14, %s40_s14 }
   0xb   :  { %p9184_p3 = scmp.ne.s32.totalorder %s40_s14, %s9183_s22  ;;  %p9189_p5 = scmp.lt.s32.totalorder %s9183_s22, %s9183_s22 }
   0xd   :  { %p9190_p6 = por %p9189_p5, %p9188_p4 }
   0xf   :  { %p9191_p7 = pnand %p9190_p6, %p9184_p3 }
  0x11   :  { %9194 = shalt.err (!%p9191_p7)
}
  0x12   :  { %s9314_s23 = smov 128   ;;  %s9315_s24 = smov 8  }
  0x13   :  { %45 = dma.hbm_to_vmem [thread:$0]  %s10017_s2, 2304, %s40_s14, [#allocation6], %s9314_s23, %s9314_s23, %s9315_s24  }
  0x14   :  { %s9316_s27 = smov [#allocation8]   ;;  %s9317_s29 = smov [#allocation3]  }
  0x15   :  { %s63_s28 = sshll.u32 %s9316_s27, 4  ;;  %s27_s30 = sshll.u32 %s9317_s29, 4  ;;  %s64_s28 = int_to_ptr.vmem [resolvable:$true] %s63_s28  ;;  %s28_s30 = int_to_ptr.vmem [resolvable:$true] %s27_s30 }
  0x16   :  { %s9195_s13 = scalar_lea.hbm %s10019_s4, 2304 }
  0x17   :  { %p9196_p8 = scmp.ne.s32.totalorder %s10019_s4, %s9195_s13  ;;  %p9199_p9 = scmp.lt.u32.totalorder %s9195_s13, %s10019_s4 }
  0x19   :  { %p9201_p10 = pnand %p9199_p9, %p9196_p8 }
  0x1b   :  { %9204 = shalt.err (!%p9201_p10)
}
  0x1c   :  { %s9205_s2 = scalar_lea.vmem %s64_s28, 2304  ;;  %p9210_p12 = scmp.lt.s32.totalorder %s64_s28, %s64_s28 }
  0x1d   :  { %p9206_p11 = scmp.ne.s32.totalorder %s64_s28, %s9205_s2  ;;  %p9211_p13 = scmp.lt.s32.totalorder %s9205_s2, %s9205_s2 }
  0x1f   :  { %p9212_p0 = por %p9211_p13, %p9210_p12 }
  0x21   :  { %p9213_p1 = pnand %p9212_p0, %p9206_p11 }
  0x23   :  { %9216 = shalt.err (!%p9213_p1)
}
  0x24   :  { %69 = dma.hbm_to_vmem [thread:$0]  %s10019_s4, 2304, %s64_s28, [#allocation9], %s9314_s23, %s9314_s23, %s9315_s24  }
  0x25   :  { %s9217_s22 = scalar_lea.hbm %s10016_s1, 18432 }
  0x26   :  { %p9218_p2 = scmp.ne.s32.totalorder %s10016_s1, %s9217_s22  ;;  %p9221_p3 = scmp.lt.u32.totalorder %s9217_s22, %s10016_s1 }
  0x28   :  { %p9223_p4 = pnand %p9221_p3, %p9218_p2 }
  0x2a   :  { %9226 = shalt.err (!%p9223_p4)
}
  0x2b   :  { %s9227_s11 = scalar_lea.vmem %s28_s30, 18432  ;;  %p9232_p6 = scmp.lt.s32.totalorder %s28_s30, %s28_s30 }
  0x2c   :  { %p9228_p5 = scmp.ne.s32.totalorder %s28_s30, %s9227_s11  ;;  %p9233_p7 = scmp.lt.s32.totalorder %s9227_s11, %s9227_s11 }
  0x2e   :  { %p9234_p8 = por %p9233_p7, %p9232_p6 }
  0x30   :  { %p9235_p9 = pnand %p9234_p8, %p9228_p5 }
  0x32   :  { %9238 = shalt.err (!%p9235_p9)
}
  0x33   :  { %s9318_s4 = smov 256   ;;  %s9319_s28 = smov 16  }
  0x34   :  { %33 = dma.hbm_to_vmem [thread:$0]  %s10016_s1, 18432, %s28_s30, [#allocation4], %s9318_s4, %s9318_s4, %s9319_s28  }
  0x35   :  { %s9320_s15 = smov [#allocation7]   ;;  %s9321_s17 = smov [#allocation10]  }
  0x36   :  { %s51_s16 = sshll.u32 %s9320_s15, 4  ;;  %s75_s18 = sshll.u32 %s9321_s17, 4  ;;  %s52_s16 = int_to_ptr.vmem [resolvable:$true] %s51_s16  ;;  %s76_s18 = int_to_ptr.vmem [resolvable:$true] %s75_s18 }
  0x37   :  { %s9239_s19 = scalar_lea.hbm %s10018_s3, 2304 }
  0x38   :  { %p9240_p10 = scmp.ne.s32.totalorder %s10018_s3, %s9239_s19  ;;  %p9243_p11 = scmp.lt.u32.totalorder %s9239_s19, %s10018_s3 }
  0x3a   :  { %p9245_p12 = pnand %p9243_p11, %p9240_p10 }
  0x3c   :  { %9248 = shalt.err (!%p9245_p12)
}
  0x3d   :  { %s9249_s1 = scalar_lea.vmem %s52_s16, 2304  ;;  %p9254_p0 = scmp.lt.s32.totalorder %s52_s16, %s52_s16 }
  0x3e   :  { %p9250_p13 = scmp.ne.s32.totalorder %s52_s16, %s9249_s1  ;;  %p9255_p1 = scmp.lt.s32.totalorder %s9249_s1, %s9249_s1 }
  0x40   :  { %p9256_p2 = por %p9255_p1, %p9254_p0 }
  0x42   :  { %p9257_p3 = pnand %p9256_p2, %p9250_p13 }
  0x44   :  { %9260 = shalt.err (!%p9257_p3)
}
  0x45   :  { %57 = dma.hbm_to_vmem [thread:$0]  %s10018_s3, 2304, %s52_s16, [#allocation6], %s9314_s23, %s9314_s23, %s9315_s24  }
  0x46   :  { %s9261_s11 = scalar_lea.hbm %s10020_s5, 73728 }
  0x47   :  { %p9262_p4 = scmp.ne.s32.totalorder %s10020_s5, %s9261_s11  ;;  %p9265_p5 = scmp.lt.u32.totalorder %s9261_s11, %s10020_s5 }
  0x49   :  { %p9267_p6 = pnand %p9265_p5, %p9262_p4 }
  0x4b   :  { %9270 = shalt.err (!%p9267_p6)
}
  0x4c   :  { %s9271_s17 = scalar_lea.vmem %s76_s18, 73728  ;;  %p9276_p8 = scmp.lt.s32.totalorder %s76_s18, %s76_s18 }
  0x4d   :  { %p9272_p7 = scmp.ne.s32.totalorder %s76_s18, %s9271_s17  ;;  %p9277_p9 = scmp.lt.s32.totalorder %s9271_s17, %s9271_s17 }
  0x4f   :  { %p9278_p10 = por %p9277_p9, %p9276_p8 }
  0x51   :  { %p9279_p11 = pnand %p9278_p10, %p9272_p7 }
  0x53   :  { %9282 = shalt.err (!%p9279_p11)
}
  0x54   :  { %81 = dma.hbm_to_vmem [thread:$0]  %s10020_s5, 73728, %s76_s18, [#allocation9], %s9314_s23, %s9314_s23, %s9315_s24  }
  0x55   :  { %s9322_s2 = smov [#allocation11]   ;;  %s9283_s21 = scalar_lea.hbm %s10021_s6, 64 }
  0x56   :  { %s87_s14 = sshll.u32 %s9322_s2, 4  ;;  %p9284_p12 = scmp.ne.s32.totalorder %s10021_s6, %s9283_s21  ;;  %s88_s14 = int_to_ptr.vmem [resolvable:$true] %s87_s14 }
  0x57   :  { %p9287_p13 = scmp.lt.u32.totalorder %s9283_s21, %s10021_s6 }
  0x59   :  { %p9289_p0 = pnand %p9287_p13, %p9284_p12 }
  0x5b   :  { %9292 = shalt.err (!%p9289_p0)
}
  0x5c   :  { %s9293_s26 = scalar_lea.vmem %s88_s14, 64  ;;  %p9298_p2 = scmp.lt.s32.totalorder %s88_s14, %s88_s14 }
  0x5d   :  { %p9294_p1 = scmp.ne.s32.totalorder %s88_s14, %s9293_s26  ;;  %p9299_p3 = scmp.lt.s32.totalorder %s9293_s26, %s9293_s26 }
  0x5f   :  { %p9300_p4 = por %p9299_p3, %p9298_p2 }
  0x61   :  { %p9301_p5 = pnand %p9300_p4, %p9294_p1 }
  0x63   :  { %9304 = shalt.err (!%p9301_p5)
}
  0x64   :  { %s9323_s5 = smov 1  }
  0x65   :  { %93 = dma.hbm_to_vmem [thread:$0]  %s10021_s6, 64, %s88_s14, [#allocation12], %s9319_s28, %s9319_s28, %s9323_s5  }
  0x66   :  { %9305 = dma.done.wait [#allocation4], 18432  }
  0x67   :  { %9306 = vsyncadd [#allocation4], 4294948864 }
  0x68   :  { %9307 = dma.done.wait [#allocation6], 4608  }
  0x69   :  { %9308 = vsyncadd [#allocation6], 4294962688 }
  0x6a   :  { %9309 = dma.done.wait [#allocation9], 76032  }
  0x6b   :  { %9310 = vsyncadd [#allocation9], 4294891264 }
  0x6c   :  { %9311 = dma.done.wait [#allocation12], 64  }
  0x6d   :  { %9312 = vsyncadd [#allocation12], 4294967232  ;;  %v128_v0 = vld [vmem:[%s10015_s0 + $0x80] sm:$0xff]  ;;  %v129_v1 = vld [vmem:[%s10015_s0 + $0x88] sm:$0xff]  ;;  %vm2095_vm0 = vcmask 523264   ;;  %vm3423_vm9 = vcmask 130048  }
  0x6e   :  { %v112_v2 = vld [vmem:[%s10015_s0] sm:$0xff]  ;;  %v9475_v3 = vpack.c.bf16 %v129_v1, %v128_v0  ;;  %v113_v4 = vld [vmem:[%s10015_s0 + $0x8] sm:$0xff]  ;;  %v130_v5 = vld [vmem:[%s10015_s0 + $0x90] sm:$0xff] }
  0x6f   :  { %v131_v6 = vld [vmem:[%s10015_s0 + $0x98] sm:$0xff]  ;;  %v9486_v7 = vpack.c.bf16 %v113_v4, %v112_v2  ;;  %v114_v9 = vld [vmem:[%s10015_s0 + $0x10] sm:$0xff]  ;;  %v132_v11 = vld [vmem:[%s10015_s0 + $0xa0] sm:$0xff] }
  0x70   :  { %v9488_v8 = vpack.c.bf16 %v131_v6, %v130_v5  ;;  %v115_v10 = vld [vmem:[%s10015_s0 + $0x18] sm:$0xff]  ;;  %8019 = vmatprep.subr.bf16.mxu0 %v9475_v3  ;;  %8051 = vmatprep.subr.bf16.mxu1 %v9475_v3  ;;  %v133_v12 = vld [vmem:[%s10015_s0 + $0xa8] sm:$0xff]  ;;  %v116_v15 = vld [vmem:[%s10015_s0 + $0x20] sm:$0xff] }
  0x71   :  { %8021 = vmatpush3.bf16.msra.mxu0 %v9486_v7  ;;  %8053 = vmatpush3.bf16.msra.mxu1 %v9486_v7  ;;  %v9506_v13 = vpack.c.bf16 %v115_v10, %v114_v9  ;;  %v9510_v14 = vpack.c.bf16 %v133_v12, %v132_v11  ;;  %v117_v16 = vld [vmem:[%s10015_s0 + $0x28] sm:$0xff]  ;;  %v134_v17 = vld [vmem:[%s10015_s0 + $0xb0] sm:$0xff]  ;;  %v135_v18 = vld [vmem:[%s10015_s0 + $0xb8] sm:$0xff] }
  0x72   :  { %8023 = vmatprep.subr.bf16.mxu0 %v9488_v8  ;;  %8055 = vmatprep.subr.bf16.mxu1 %v9488_v8  ;;  %v9526_v19 = vpack.c.bf16 %v117_v16, %v116_v15  ;;  %v9530_v20 = vpack.c.bf16 %v135_v18, %v134_v17  ;;  %v118_v21 = vld [vmem:[%s10015_s0 + $0x30] sm:$0xff]  ;;  %v119_v22 = vld [vmem:[%s10015_s0 + $0x38] sm:$0xff]  ;;  %v136_v23 = vld [vmem:[%s10015_s0 + $0xc0] sm:$0xff] }
  0x73   :  { %v137_v24 = vld [vmem:[%s10015_s0 + $0xc8] sm:$0xff]  ;;  %v9546_v27 = vpack.c.bf16 %v119_v22, %v118_v21  ;;  %v120_v29 = vld [vmem:[%s10015_s0 + $0x40] sm:$0xff]  ;;  %v138_v31 = vld [vmem:[%s10015_s0 + $0xd0] sm:$0xff] }
  0x74   :  { %v145_v25 = vld [vmem:[#allocation3 + $0x8] sm:$0xff]  ;;  %v9550_v28 = vpack.c.bf16 %v137_v24, %v136_v23  ;;  %v139_v32 = vld [vmem:[%s10015_s0 + $0xd8] sm:$0xff]  ;;  %v122_v35 = vld [vmem:[%s10015_s0 + $0x50] sm:$0xff] }
  0x75   :  { %8025 = vmatpush3.bf16.msra.mxu0 %v9506_v13  ;;  %8057 = vmatpush3.bf16.msra.mxu1 %v9506_v13  ;;  %v275_v26 = vld [vmem:[#allocation3 + $0x88] sm:$0xff]  ;;  %v9570_v34 = vpack.c.bf16 %v139_v32, %v138_v31  ;;  %v123_v36 = vld [vmem:[%s10015_s0 + $0x58] sm:$0xff]  ;;  %v140_v37 = vld [vmem:[%s10015_s0 + $0xe0] sm:$0xff] }
  0x76   :  { %8027 = vmatprep.subr.bf16.mxu0 %v9510_v14  ;;  %8059 = vmatprep.subr.bf16.mxu1 %v9510_v14  ;;  %v121_v30 = vld [vmem:[%s10015_s0 + $0x48] sm:$0xff]  ;;  %v9586_v39 = vpack.c.bf16 %v123_v36, %v122_v35  ;;  %v124_v41 = vld [vmem:[%s10015_s0 + $0x60] sm:$0xff]  ;;  %v142_v43 = vld [vmem:[%s10015_s0 + $0xf0] sm:$0xff] }
  0x77   :  { %224 = vmatprep.mubr.f32.mxu0 %v145_v25  ;;  %354 = vmatprep.mubr.f32.mxu1 %v275_v26  ;;  %v9566_v33 = vpack.c.bf16 %v121_v30, %v120_v29  ;;  %v141_v38 = vld [vmem:[%s10015_s0 + $0xe8] sm:$0xff]  ;;  %v143_v44 = vld [vmem:[%s10015_s0 + $0xf8] sm:$0xff]  ;;  %v126_v47 = vld [vmem:[%s10015_s0 + $0x70] sm:$0xff] }
  0x78   :  { %v9590_v40 = vpack.c.bf16 %v141_v38, %v140_v37  ;;  %v125_v42 = vld [vmem:[%s10015_s0 + $0x68] sm:$0xff]  ;;  %v9610_v46 = vpack.c.bf16 %v143_v44, %v142_v43  ;;  %v127_v48 = vld [vmem:[%s10015_s0 + $0x78] sm:$0xff]  ;;  %v144_v50 = vld [vmem:[#allocation3] sm:$0xff] }
  0x79   :  { %8029 = vmatpush3.bf16.msra.mxu0 %v9526_v19  ;;  %8061 = vmatpush3.bf16.msra.mxu1 %v9526_v19  ;;  %v9606_v45 = vpack.c.bf16 %v125_v42, %v124_v41  ;;  %v9620_v49 = vpack.c.bf16 %v127_v48, %v126_v47  ;;  %v274_v51 = vld [vmem:[#allocation3 + $0x80] sm:$0xff]  ;;  %v147_v52 = vld [vmem:[#allocation3 + $0x18] sm:$0xff]  ;;  %v146_v54 = vld [vmem:[#allocation3 + $0x10] sm:$0xff] }
  0x7a   :  { %8031 = vmatprep.subr.bf16.mxu0 %v9530_v20  ;;  %8063 = vmatprep.subr.bf16.mxu1 %v9530_v20  ;;  %v277_v53 = vld [vmem:[#allocation3 + $0x98] sm:$0xff]  ;;  %v276_v55 = vld [vmem:[#allocation3 + $0x90] sm:$0xff]  ;;  %v149_v56 = vld [vmem:[#allocation3 + $0x28] sm:$0xff] }
  0x7b   :  { %v279_v57 = vld [vmem:[#allocation3 + $0xa8] sm:$0xff]  ;;  %v148_v58 = vld [vmem:[#allocation3 + $0x20] sm:$0xff]  ;;  %v151_v60 = vld [vmem:[#allocation3 + $0x38] sm:$0xff] }
  0x7c   :  { %v278_v59 = vld [vmem:[#allocation3 + $0xa0] sm:$0xff]  ;;  %v281_v61 = vld [vmem:[#allocation3 + $0xb8] sm:$0xff]  ;;  %v150_v62 = vld [vmem:[#allocation3 + $0x30] sm:$0xff] }
  0x7d   :  { %8033 = vmatpush3.bf16.msra.mxu0 %v9546_v27  ;;  %8065 = vmatpush3.bf16.msra.mxu1 %v9546_v27  ;;  %v280_v63 = vld [vmem:[#allocation3 + $0xb0] sm:$0xff]  ;;  %v153_v0 = vld [vmem:[#allocation3 + $0x48] sm:$0xff]  ;;  %v152_v2 = vld [vmem:[#allocation3 + $0x40] sm:$0xff] }
  0x7e   :  { %8035 = vmatprep.subr.bf16.mxu0 %v9550_v28  ;;  %8067 = vmatprep.subr.bf16.mxu1 %v9550_v28  ;;  %v283_v1 = vld [vmem:[#allocation3 + $0xc8] sm:$0xff]  ;;  %v282_v4 = vld [vmem:[#allocation3 + $0xc0] sm:$0xff]  ;;  %v155_v5 = vld [vmem:[#allocation3 + $0x58] sm:$0xff] }
  0x7f   :  { %v285_v6 = vld [vmem:[#allocation3 + $0xd8] sm:$0xff]  ;;  %v154_v9 = vld [vmem:[#allocation3 + $0x50] sm:$0xff]  ;;  %v157_v11 = vld [vmem:[#allocation3 + $0x68] sm:$0xff] }
  0x80   :  { %v284_v10 = vld [vmem:[#allocation3 + $0xd0] sm:$0xff]  ;;  %v287_v12 = vld [vmem:[#allocation3 + $0xe8] sm:$0xff]  ;;  %v156_v15 = vld [vmem:[#allocation3 + $0x60] sm:$0xff] }
  0x81   :  { %8037 = vmatpush3.bf16.msra.mxu0 %v9566_v33  ;;  %8069 = vmatpush3.bf16.msra.mxu1 %v9566_v33  ;;  %v286_v16 = vld [vmem:[#allocation3 + $0xe0] sm:$0xff]  ;;  %v159_v17 = vld [vmem:[#allocation3 + $0x78] sm:$0xff]  ;;  %v158_v21 = vld [vmem:[#allocation3 + $0x70] sm:$0xff] }
  0x82   :  { %8039 = vmatprep.subr.bf16.mxu0 %v9570_v34  ;;  %8071 = vmatprep.subr.bf16.mxu1 %v9570_v34  ;;  %v289_v18 = vld [vmem:[#allocation3 + $0xf8] sm:$0xff]  ;;  %v288_v22 = vld [vmem:[#allocation3 + $0xf0] sm:$0xff]  ;;  %v405_v23 = vld [vmem:[#allocation3 + $0x108] sm:$0xff] }
  0x83   :  { %v535_v24 = vld [vmem:[#allocation3 + $0x188] sm:$0xff]  ;;  %v404_v25 = vld [vmem:[#allocation3 + $0x100] sm:$0xff]  ;;  %v407_v29 = vld [vmem:[#allocation3 + $0x118] sm:$0xff] }
  0x84   :  { %v534_v26 = vld [vmem:[#allocation3 + $0x180] sm:$0xff]  ;;  %v537_v30 = vld [vmem:[#allocation3 + $0x198] sm:$0xff]  ;;  %v406_v31 = vld [vmem:[#allocation3 + $0x110] sm:$0xff] }
  0x85   :  { %8041 = vmatpush3.bf16.msra.mxu0 %v9586_v39  ;;  %8073 = vmatpush3.bf16.msra.mxu1 %v9586_v39  ;;  %v536_v32 = vld [vmem:[#allocation3 + $0x190] sm:$0xff]  ;;  %v409_v35 = vld [vmem:[#allocation3 + $0x128] sm:$0xff]  ;;  %v408_v37 = vld [vmem:[#allocation3 + $0x120] sm:$0xff] }
  0x86   :  { %8043 = vmatprep.subr.bf16.mxu0 %v9590_v40  ;;  %8075 = vmatprep.subr.bf16.mxu1 %v9590_v40  ;;  %v539_v36 = vld [vmem:[#allocation3 + $0x1a8] sm:$0xff]  ;;  %v538_v38 = vld [vmem:[#allocation3 + $0x1a0] sm:$0xff]  ;;  %v411_v41 = vld [vmem:[#allocation3 + $0x138] sm:$0xff] }
  0x87   :  { %v541_v42 = vld [vmem:[#allocation3 + $0x1b8] sm:$0xff]  ;;  %v410_v43 = vld [vmem:[#allocation3 + $0x130] sm:$0xff]  ;;  %v413_v47 = vld [vmem:[#allocation3 + $0x148] sm:$0xff] }
  0x88   :  { %v540_v44 = vld [vmem:[#allocation3 + $0x1b0] sm:$0xff]  ;;  %v543_v48 = vld [vmem:[#allocation3 + $0x1c8] sm:$0xff] }
  0x89   :  { %8045 = vmatpush3.bf16.msra.mxu0 %v9606_v45  ;;  %8077 = vmatpush3.bf16.msra.mxu1 %v9606_v45 }
  0x8a   :  { %8047 = vmatprep.subr.bf16.mxu0 %v9610_v46  ;;  %8079 = vmatprep.subr.bf16.mxu1 %v9610_v46 }
  0x8d   :  { %8049 = vmatpush3.bf16.msra.mxu0 %v9620_v49  ;;  %8081 = vmatpush3.bf16.msra.mxu1 %v9620_v49 }
  0x8e   :  { %8083 = vmatprep.subr.bf16.mxu0 %v9475_v3  ;;  %8115 = vmatprep.subr.bf16.mxu1 %v9475_v3 }
  0x90   :  { %225 = vmatmul.mubr.f32.vlgmr.msra.gmra.mrb[0].mxu0 %v144_v50  ;;  %355 = vmatmul.mubr.f32.vlgmr.msra.gmra.mrb[0].mxu1 %v274_v51  ;;  %v412_v50 = vld [vmem:[#allocation3 + $0x140] sm:$0xff] }
  0x91   :  { %8085 = vmatpush3.bf16.msra.mxu0 %v9486_v7  ;;  %8117 = vmatpush3.bf16.msra.mxu1 %v9486_v7  ;;  %v542_v51 = vld [vmem:[#allocation3 + $0x1c0] sm:$0xff] }
  0x92   :  { %229 = vmatprep.mubr.f32.mxu0 %v147_v52  ;;  %359 = vmatprep.mubr.f32.mxu1 %v277_v53  ;;  %v415_v52 = vld [vmem:[#allocation3 + $0x158] sm:$0xff] }
  0x93   :  { %8087 = vmatprep.subr.bf16.mxu0 %v9488_v8  ;;  %8119 = vmatprep.subr.bf16.mxu1 %v9488_v8  ;;  %v545_v53 = vld [vmem:[#allocation3 + $0x1d8] sm:$0xff] }
  0x94   :  { %230 = vmatmul.mubr.f32.gmra.mrb[2].mxu0 %v146_v54  ;;  %360 = vmatmul.mubr.f32.gmra.mrb[2].mxu1 %v276_v55  ;;  %v414_v54 = vld [vmem:[#allocation3 + $0x150] sm:$0xff] }
  0x95   :  { %8089 = vmatpush3.bf16.msra.mxu0 %v9506_v13  ;;  %8121 = vmatpush3.bf16.msra.mxu1 %v9506_v13  ;;  %v544_v55 = vld [vmem:[#allocation3 + $0x1d0] sm:$0xff] }
  0x96   :  { %234 = vmatprep.mubr.f32.mxu0 %v149_v56  ;;  %364 = vmatprep.mubr.f32.mxu1 %v279_v57  ;;  %v417_v56 = vld [vmem:[#allocation3 + $0x168] sm:$0xff] }
  0x97   :  { %8091 = vmatprep.subr.bf16.mxu0 %v9510_v14  ;;  %8123 = vmatprep.subr.bf16.mxu1 %v9510_v14  ;;  %v547_v57 = vld [vmem:[#allocation3 + $0x1e8] sm:$0xff] }
  0x98   :  { %235 = vmatmul.mubr.f32.gmra.mrb[4].mxu0 %v148_v58  ;;  %365 = vmatmul.mubr.f32.gmra.mrb[4].mxu1 %v278_v59  ;;  %v416_v58 = vld [vmem:[#allocation3 + $0x160] sm:$0xff] }
  0x99   :  { %8093 = vmatpush3.bf16.msra.mxu0 %v9526_v19  ;;  %8125 = vmatpush3.bf16.msra.mxu1 %v9526_v19  ;;  %v546_v59 = vld [vmem:[#allocation3 + $0x1e0] sm:$0xff] }
  0x9a   :  { %239 = vmatprep.mubr.f32.mxu0 %v151_v60  ;;  %369 = vmatprep.mubr.f32.mxu1 %v281_v61  ;;  %v419_v60 = vld [vmem:[#allocation3 + $0x178] sm:$0xff] }
  0x9b   :  { %8095 = vmatprep.subr.bf16.mxu0 %v9530_v20  ;;  %8127 = vmatprep.subr.bf16.mxu1 %v9530_v20  ;;  %v549_v61 = vld [vmem:[#allocation3 + $0x1f8] sm:$0xff] }
  0x9c   :  { %240 = vmatmul.mubr.f32.gmra.mrb[6].mxu0 %v150_v62  ;;  %370 = vmatmul.mubr.f32.gmra.mrb[6].mxu1 %v280_v63  ;;  %v418_v62 = vld [vmem:[#allocation3 + $0x170] sm:$0xff] }
  0x9d   :  { %8097 = vmatpush3.bf16.msra.mxu0 %v9546_v27  ;;  %8129 = vmatpush3.bf16.msra.mxu1 %v9546_v27  ;;  %v548_v63 = vld [vmem:[#allocation3 + $0x1f0] sm:$0xff] }
  0x9e   :  { %244 = vmatprep.mubr.f32.mxu0 %v153_v0  ;;  %374 = vmatprep.mubr.f32.mxu1 %v283_v1  ;;  %v665_v0 = vld [vmem:[#allocation3 + $0x208] sm:$0xff] }
  0x9f   :  { %8099 = vmatprep.subr.bf16.mxu0 %v9550_v28  ;;  %8131 = vmatprep.subr.bf16.mxu1 %v9550_v28  ;;  %v795_v1 = vld [vmem:[#allocation3 + $0x288] sm:$0xff] }
  0xa0   :  { %245 = vmatmul.mubr.f32.gmra.mrb[8].mxu0 %v152_v2  ;;  %375 = vmatmul.mubr.f32.gmra.mrb[8].mxu1 %v282_v4  ;;  %v664_v2 = vld [vmem:[#allocation3 + $0x200] sm:$0xff] }
  0xa1   :  { %8101 = vmatpush3.bf16.msra.mxu0 %v9566_v33  ;;  %8133 = vmatpush3.bf16.msra.mxu1 %v9566_v33  ;;  %v794_v4 = vld [vmem:[#allocation3 + $0x280] sm:$0xff] }
  0xa2   :  { %249 = vmatprep.mubr.f32.mxu0 %v155_v5  ;;  %379 = vmatprep.mubr.f32.mxu1 %v285_v6  ;;  %v667_v5 = vld [vmem:[#allocation3 + $0x218] sm:$0xff] }
  0xa3   :  { %8103 = vmatprep.subr.bf16.mxu0 %v9570_v34  ;;  %8135 = vmatprep.subr.bf16.mxu1 %v9570_v34  ;;  %v797_v6 = vld [vmem:[#allocation3 + $0x298] sm:$0xff] }
  0xa4   :  { %250 = vmatmul.mubr.f32.gmra.mrb[10].mxu0 %v154_v9  ;;  %380 = vmatmul.mubr.f32.gmra.mrb[10].mxu1 %v284_v10  ;;  %v666_v9 = vld [vmem:[#allocation3 + $0x210] sm:$0xff] }
  0xa5   :  { %8105 = vmatpush3.bf16.msra.mxu0 %v9586_v39  ;;  %8137 = vmatpush3.bf16.msra.mxu1 %v9586_v39  ;;  %v796_v10 = vld [vmem:[#allocation3 + $0x290] sm:$0xff] }
  0xa6   :  { %254 = vmatprep.mubr.f32.mxu0 %v157_v11  ;;  %384 = vmatprep.mubr.f32.mxu1 %v287_v12  ;;  %v669_v11 = vld [vmem:[#allocation3 + $0x228] sm:$0xff] }
  0xa7   :  { %8107 = vmatprep.subr.bf16.mxu0 %v9590_v40  ;;  %8139 = vmatprep.subr.bf16.mxu1 %v9590_v40  ;;  %v799_v12 = vld [vmem:[#allocation3 + $0x2a8] sm:$0xff] }
  0xa8   :  { %255 = vmatmul.mubr.f32.gmra.mrb[12].mxu0 %v156_v15  ;;  %385 = vmatmul.mubr.f32.gmra.mrb[12].mxu1 %v286_v16  ;;  %v668_v15 = vld [vmem:[#allocation3 + $0x220] sm:$0xff] }
  0xa9   :  { %8109 = vmatpush3.bf16.msra.mxu0 %v9606_v45  ;;  %8141 = vmatpush3.bf16.msra.mxu1 %v9606_v45  ;;  %v798_v16 = vld [vmem:[#allocation3 + $0x2a0] sm:$0xff] }
  0xaa   :  { %259 = vmatprep.mubr.f32.mxu0 %v159_v17  ;;  %389 = vmatprep.mubr.f32.mxu1 %v289_v18  ;;  %v671_v17 = vld [vmem:[#allocation3 + $0x238] sm:$0xff] }
  0xab   :  { %8111 = vmatprep.subr.bf16.mxu0 %v9610_v46  ;;  %8143 = vmatprep.subr.bf16.mxu1 %v9610_v46  ;;  %v801_v18 = vld [vmem:[#allocation3 + $0x2b8] sm:$0xff] }
  0xac   :  { %260 = vmatmul.mubr.f32.gmra.mrb[14].mxu0 %v158_v21  ;;  %390 = vmatmul.mubr.f32.gmra.mrb[14].mxu1 %v288_v22  ;;  %v670_v21 = vld [vmem:[#allocation3 + $0x230] sm:$0xff] }
  0xad   :  { %8113 = vmatpush3.bf16.msra.mxu0 %v9620_v49  ;;  %8145 = vmatpush3.bf16.msra.mxu1 %v9620_v49  ;;  %v800_v22 = vld [vmem:[#allocation3 + $0x2b0] sm:$0xff] }
  0xae   :  { %484 = vmatprep.mubr.f32.mxu0 %v405_v23  ;;  %614 = vmatprep.mubr.f32.mxu1 %v535_v24  ;;  %v673_v23 = vld [vmem:[#allocation3 + $0x248] sm:$0xff] }
  0xaf   :  { %8147 = vmatprep.subr.bf16.mxu0 %v9475_v3  ;;  %8179 = vmatprep.subr.bf16.mxu1 %v9475_v3  ;;  %v803_v24 = vld [vmem:[#allocation3 + $0x2c8] sm:$0xff] }
  0xb0   :  { %485 = vmatmul.mubr.f32.vlgmr.msra.gmra.mrb[16].mxu0 %v404_v25  ;;  %615 = vmatmul.mubr.f32.vlgmr.msra.gmra.mrb[16].mxu1 %v534_v26  ;;  %v672_v25 = vld [vmem:[#allocation3 + $0x240] sm:$0xff] }
  0xb1   :  { %8149 = vmatpush3.bf16.msra.mxu0 %v9486_v7  ;;  %8181 = vmatpush3.bf16.msra.mxu1 %v9486_v7  ;;  %v802_v26 = vld [vmem:[#allocation3 + $0x2c0] sm:$0xff] }
  0xb2   :  { %489 = vmatprep.mubr.f32.mxu0 %v407_v29  ;;  %619 = vmatprep.mubr.f32.mxu1 %v537_v30  ;;  %v675_v29 = vld [vmem:[#allocation3 + $0x258] sm:$0xff] }
  0xb3   :  { %8151 = vmatprep.subr.bf16.mxu0 %v9488_v8  ;;  %8183 = vmatprep.subr.bf16.mxu1 %v9488_v8  ;;  %v805_v30 = vld [vmem:[#allocation3 + $0x2d8] sm:$0xff] }
  0xb4   :  { %490 = vmatmul.mubr.f32.gmra.mrb[18].mxu0 %v406_v31  ;;  %620 = vmatmul.mubr.f32.gmra.mrb[18].mxu1 %v536_v32  ;;  %v674_v31 = vld [vmem:[#allocation3 + $0x250] sm:$0xff] }
  0xb5   :  { %8153 = vmatpush3.bf16.msra.mxu0 %v9506_v13  ;;  %8185 = vmatpush3.bf16.msra.mxu1 %v9506_v13  ;;  %v804_v32 = vld [vmem:[#allocation3 + $0x2d0] sm:$0xff] }
  0xb6   :  { %494 = vmatprep.mubr.f32.mxu0 %v409_v35  ;;  %624 = vmatprep.mubr.f32.mxu1 %v539_v36  ;;  %v677_v35 = vld [vmem:[#allocation3 + $0x268] sm:$0xff] }
  0xb7   :  { %8155 = vmatprep.subr.bf16.mxu0 %v9510_v14  ;;  %8187 = vmatprep.subr.bf16.mxu1 %v9510_v14  ;;  %v807_v36 = vld [vmem:[#allocation3 + $0x2e8] sm:$0xff] }
  0xb8   :  { %495 = vmatmul.mubr.f32.gmra.mrb[20].mxu0 %v408_v37  ;;  %625 = vmatmul.mubr.f32.gmra.mrb[20].mxu1 %v538_v38  ;;  %v676_v37 = vld [vmem:[#allocation3 + $0x260] sm:$0xff] }
  0xb9   :  { %8157 = vmatpush3.bf16.msra.mxu0 %v9526_v19  ;;  %8189 = vmatpush3.bf16.msra.mxu1 %v9526_v19  ;;  %v806_v38 = vld [vmem:[#allocation3 + $0x2e0] sm:$0xff] }
  0xba   :  { %499 = vmatprep.mubr.f32.mxu0 %v411_v41  ;;  %629 = vmatprep.mubr.f32.mxu1 %v541_v42  ;;  %v679_v41 = vld [vmem:[#allocation3 + $0x278] sm:$0xff] }
  0xbb   :  { %8159 = vmatprep.subr.bf16.mxu0 %v9530_v20  ;;  %8191 = vmatprep.subr.bf16.mxu1 %v9530_v20  ;;  %v809_v42 = vld [vmem:[#allocation3 + $0x2f8] sm:$0xff] }
  0xbc   :  { %500 = vmatmul.mubr.f32.gmra.mrb[22].mxu0 %v410_v43  ;;  %630 = vmatmul.mubr.f32.gmra.mrb[22].mxu1 %v540_v44  ;;  %v1401_v43 = vld [vmem:[#allocation10 + $0x80] sm:$0xff]  ;;  %v1402_v44 = vld [vmem:[#allocation10 + $0x88] sm:$0xff] }
  0xbd   :  { %8161 = vmatpush3.bf16.msra.mxu0 %v9546_v27  ;;  %8193 = vmatpush3.bf16.msra.mxu1 %v9546_v27 }
  0xbe   :  { %504 = vmatprep.mubr.f32.mxu0 %v413_v47  ;;  %634 = vmatprep.mubr.f32.mxu1 %v543_v48  ;;  %v678_v47 = vld [vmem:[#allocation3 + $0x270] sm:$0xff] }
  0xbf   :  { %8163 = vmatprep.subr.bf16.mxu0 %v9550_v28  ;;  %8195 = vmatprep.subr.bf16.mxu1 %v9550_v28  ;;  %v808_v48 = vld [vmem:[#allocation3 + $0x2f0] sm:$0xff] }
  0xc0   :  { %505 = vmatmul.mubr.f32.gmra.mrb[24].mxu0 %v412_v50  ;;  %635 = vmatmul.mubr.f32.gmra.mrb[24].mxu1 %v542_v51  ;;  %v925_v50 = vld [vmem:[#allocation3 + $0x308] sm:$0xff] }
  0xc1   :  { %8165 = vmatpush3.bf16.msra.mxu0 %v9566_v33  ;;  %8197 = vmatpush3.bf16.msra.mxu1 %v9566_v33  ;;  %v1055_v51 = vld [vmem:[#allocation3 + $0x388] sm:$0xff] }
  0xc2   :  { %509 = vmatprep.mubr.f32.mxu0 %v415_v52  ;;  %639 = vmatprep.mubr.f32.mxu1 %v545_v53  ;;  %v8306_v52 = vpack.c.bf16 %v1402_v44, %v1401_v43  ;;  %v1385_v53 = vld [vmem:[#allocation10] sm:$0xff]  ;;  %v1434_v43 = vld [vmem:[#allocation10 + $0x188] sm:$0xff] }
  0xc3   :  { %8167 = vmatprep.subr.bf16.mxu0 %v9570_v34  ;;  %8199 = vmatprep.subr.bf16.mxu1 %v9570_v34  ;;  %v938_v44 = vld [vmem:[#allocation3 + $0x370] sm:$0xff] }
  0xc4   :  { %510 = vmatmul.mubr.f32.gmra.mrb[26].mxu0 %v414_v54  ;;  %640 = vmatmul.mubr.f32.gmra.mrb[26].mxu1 %v544_v55  ;;  %v1386_v54 = vld [vmem:[#allocation10 + $0x8] sm:$0xff]  ;;  %v924_v55 = vld [vmem:[#allocation3 + $0x300] sm:$0xff] }
  0xc5   :  { %8169 = vmatpush3.bf16.msra.mxu0 %v9586_v39  ;;  %8201 = vmatpush3.bf16.msra.mxu1 %v9586_v39 }
  0xc6   :  { %514 = vmatprep.mubr.f32.mxu0 %v417_v56  ;;  %644 = vmatprep.mubr.f32.mxu1 %v547_v57  ;;  %v1054_v56 = vld [vmem:[#allocation3 + $0x380] sm:$0xff]  ;;  %v927_v57 = vld [vmem:[#allocation3 + $0x318] sm:$0xff] }
  0xc7   :  { %8171 = vmatprep.subr.bf16.mxu0 %v9590_v40  ;;  %8203 = vmatprep.subr.bf16.mxu1 %v9590_v40 }
  0xc8   :  { %515 = vmatmul.mubr.f32.gmra.mrb[28].mxu0 %v416_v58  ;;  %645 = vmatmul.mubr.f32.gmra.mrb[28].mxu1 %v546_v59  ;;  %v1057_v58 = vld [vmem:[#allocation3 + $0x398] sm:$0xff]  ;;  %v8308_v59 = vpack.c.bf16 %v1386_v54, %v1385_v53  ;;  %v1417_v54 = vld [vmem:[#allocation10 + $0x100] sm:$0xff] }
  0xc9   :  { %8173 = vmatpush3.bf16.msra.mxu0 %v9606_v45  ;;  %8205 = vmatpush3.bf16.msra.mxu1 %v9606_v45 }
  0xca   :  { %519 = vmatprep.mubr.f32.mxu0 %v419_v60  ;;  %649 = vmatprep.mubr.f32.mxu1 %v549_v61  ;;  %v1403_v60 = vld [vmem:[#allocation10 + $0x90] sm:$0xff]  ;;  %v1404_v61 = vld [vmem:[#allocation10 + $0x98] sm:$0xff] }
  0xcb   :  { %8175 = vmatprep.subr.bf16.mxu0 %v9610_v46  ;;  %8207 = vmatprep.subr.bf16.mxu1 %v9610_v46 }
  0xcc   :  { %520 = vmatmul.mubr.f32.gmra.mrb[30].mxu0 %v418_v62  ;;  %650 = vmatmul.mubr.f32.gmra.mrb[30].mxu1 %v548_v63  ;;  %v926_v62 = vld [vmem:[#allocation3 + $0x310] sm:$0xff] }
  0xcd   :  { %8177 = vmatpush3.bf16.msra.mxu0 %v9620_v49  ;;  %8209 = vmatpush3.bf16.msra.mxu1 %v9620_v49  ;;  %v1056_v63 = vld [vmem:[#allocation3 + $0x390] sm:$0xff] }
  0xce   :  { %744 = vmatprep.mubr.f32.mxu0 %v665_v0  ;;  %874 = vmatprep.mubr.f32.mxu1 %v795_v1  ;;  %v929_v0 = vld [vmem:[#allocation3 + $0x328] sm:$0xff] }
  0xcf   :  { %8211 = vmatprep.subr.bf16.mxu0 %v9475_v3  ;;  %8243 = vmatprep.subr.bf16.mxu1 %v9475_v3  ;;  %v1059_v1 = vld [vmem:[#allocation3 + $0x3a8] sm:$0xff] }
  0xd0   :  { %745 = vmatmul.mubr.f32.vlgmr.msra.gmra.mrb[32].mxu0 %v664_v2  ;;  %875 = vmatmul.mubr.f32.vlgmr.msra.gmra.mrb[32].mxu1 %v794_v4  ;;  %v8310_v2 = vpack.c.bf16 %v1404_v61, %v1403_v60  ;;  %v1388_v4 = vld [vmem:[#allocation10 + $0x18] sm:$0xff]  ;;  %v1184_v61 = vld [vmem:[#allocation3 + $0x400] sm:$0xff] }
  0xd1   :  { %8213 = vmatpush3.bf16.msra.mxu0 %v9486_v7  ;;  %8245 = vmatpush3.bf16.msra.mxu1 %v9486_v7  ;;  %v1396_v60 = vld [vmem:[#allocation10 + $0x58] sm:$0xff] }
  0xd2   :  { %749 = vmatprep.mubr.f32.mxu0 %v667_v5  ;;  %879 = vmatprep.mubr.f32.mxu1 %v797_v6  ;;  %v928_v5 = vld [vmem:[#allocation3 + $0x320] sm:$0xff] }
  0xd3   :  { %8215 = vmatprep.subr.bf16.mxu0 %v9488_v8  ;;  %8247 = vmatprep.subr.bf16.mxu1 %v9488_v8  ;;  %v1058_v6 = vld [vmem:[#allocation3 + $0x3a0] sm:$0xff] }
  0xd4   :  { %750 = vmatmul.mubr.f32.gmra.mrb[34].mxu0 %v666_v9  ;;  %880 = vmatmul.mubr.f32.gmra.mrb[34].mxu1 %v796_v10  ;;  %v1061_v9 = vld [vmem:[#allocation3 + $0x3b8] sm:$0xff]  ;;  %v1405_v10 = vld [vmem:[#allocation10 + $0xa0] sm:$0xff] }
  0xd5   :  { %8217 = vmatpush3.bf16.msra.mxu0 %v9506_v13  ;;  %8249 = vmatpush3.bf16.msra.mxu1 %v9506_v13 }
  0xd6   :  { %754 = vmatprep.mubr.f32.mxu0 %v669_v11  ;;  %884 = vmatprep.mubr.f32.mxu1 %v799_v12  ;;  %v1406_v11 = vld [vmem:[#allocation10 + $0xa8] sm:$0xff]  ;;  %v930_v12 = vld [vmem:[#allocation3 + $0x330] sm:$0xff] }
  0xd7   :  { %8219 = vmatprep.subr.bf16.mxu0 %v9510_v14  ;;  %8251 = vmatprep.subr.bf16.mxu1 %v9510_v14 }
  0xd8   :  { %755 = vmatmul.mubr.f32.gmra.mrb[36].mxu0 %v668_v15  ;;  %885 = vmatmul.mubr.f32.gmra.mrb[36].mxu1 %v798_v16  ;;  %v1060_v15 = vld [vmem:[#allocation3 + $0x3b0] sm:$0xff]  ;;  %v1063_v16 = vld [vmem:[#allocation3 + $0x3c8] sm:$0xff] }
  0xd9   :  { %8221 = vmatpush3.bf16.msra.mxu0 %v9526_v19  ;;  %8253 = vmatpush3.bf16.msra.mxu1 %v9526_v19 }
  0xda   :  { %759 = vmatprep.mubr.f32.mxu0 %v671_v17  ;;  %889 = vmatprep.mubr.f32.mxu1 %v801_v18  ;;  %v1389_v17 = vld [vmem:[#allocation10 + $0x20] sm:$0xff]  ;;  %v1390_v18 = vld [vmem:[#allocation10 + $0x28] sm:$0xff] }
  0xdb   :  { %8223 = vmatprep.subr.bf16.mxu0 %v9530_v20  ;;  %8255 = vmatprep.subr.bf16.mxu1 %v9530_v20 }
  0xdc   :  { %760 = vmatmul.mubr.f32.gmra.mrb[38].mxu0 %v670_v21  ;;  %890 = vmatmul.mubr.f32.gmra.mrb[38].mxu1 %v800_v22  ;;  %v932_v21 = vld [vmem:[#allocation3 + $0x340] sm:$0xff] }
  0xdd   :  { %8225 = vmatpush3.bf16.msra.mxu0 %v9546_v27  ;;  %8257 = vmatpush3.bf16.msra.mxu1 %v9546_v27  ;;  %v1062_v22 = vld [vmem:[#allocation3 + $0x3c0] sm:$0xff] }
  0xde   :  { %764 = vmatprep.mubr.f32.mxu0 %v673_v23  ;;  %894 = vmatprep.mubr.f32.mxu1 %v803_v24  ;;  %v1065_v23 = vld [vmem:[#allocation3 + $0x3d8] sm:$0xff]  ;;  %v1407_v24 = vld [vmem:[#allocation10 + $0xb0] sm:$0xff] }
  0xdf   :  { %8227 = vmatprep.subr.bf16.mxu0 %v9550_v28  ;;  %8259 = vmatprep.subr.bf16.mxu1 %v9550_v28 }
  0xe0   :  { %765 = vmatmul.mubr.f32.gmra.mrb[40].mxu0 %v672_v25  ;;  %895 = vmatmul.mubr.f32.gmra.mrb[40].mxu1 %v802_v26  ;;  %v1408_v25 = vld [vmem:[#allocation10 + $0xb8] sm:$0xff]  ;;  %v934_v26 = vld [vmem:[#allocation3 + $0x350] sm:$0xff] }
  0xe1   :  { %8229 = vmatpush3.bf16.msra.mxu0 %v9566_v33  ;;  %8261 = vmatpush3.bf16.msra.mxu1 %v9566_v33 }
  0xe2   :  { %769 = vmatprep.mubr.f32.mxu0 %v675_v29  ;;  %899 = vmatprep.mubr.f32.mxu1 %v805_v30  ;;  %v1064_v29 = vld [vmem:[#allocation3 + $0x3d0] sm:$0xff]  ;;  %v1067_v30 = vld [vmem:[#allocation3 + $0x3e8] sm:$0xff] }
  0xe3   :  { %8231 = vmatprep.subr.bf16.mxu0 %v9570_v34  ;;  %8263 = vmatprep.subr.bf16.mxu1 %v9570_v34 }
  0xe4   :  { %770 = vmatmul.mubr.f32.gmra.mrb[42].mxu0 %v674_v31  ;;  %900 = vmatmul.mubr.f32.gmra.mrb[42].mxu1 %v804_v32  ;;  %v1391_v31 = vld [vmem:[#allocation10 + $0x30] sm:$0xff]  ;;  %v1392_v32 = vld [vmem:[#allocation10 + $0x38] sm:$0xff] }
  0xe5   :  { %8233 = vmatpush3.bf16.msra.mxu0 %v9586_v39  ;;  %8265 = vmatpush3.bf16.msra.mxu1 %v9586_v39 }
  0xe6   :  { %774 = vmatprep.mubr.f32.mxu0 %v677_v35  ;;  %904 = vmatprep.mubr.f32.mxu1 %v807_v36  ;;  %v936_v35 = vld [vmem:[#allocation3 + $0x360] sm:$0xff] }
  0xe7   :  { %8235 = vmatprep.subr.bf16.mxu0 %v9590_v40  ;;  %8267 = vmatprep.subr.bf16.mxu1 %v9590_v40  ;;  %v1066_v36 = vld [vmem:[#allocation3 + $0x3e0] sm:$0xff] }
  0xe8   :  { %775 = vmatmul.mubr.f32.gmra.mrb[44].mxu0 %v676_v37  ;;  %905 = vmatmul.mubr.f32.gmra.mrb[44].mxu1 %v806_v38  ;;  %v1069_v37 = vld [vmem:[#allocation3 + $0x3f8] sm:$0xff]  ;;  %v1409_v38 = vld [vmem:[#allocation10 + $0xc0] sm:$0xff] }
  0xe9   :  { %8237 = vmatpush3.bf16.msra.mxu0 %v9606_v45  ;;  %8269 = vmatpush3.bf16.msra.mxu1 %v9606_v45 }
  0xea   :  { %779 = vmatprep.mubr.f32.mxu0 %v679_v41  ;;  %909 = vmatprep.mubr.f32.mxu1 %v809_v42  ;;  %v1410_v41 = vld [vmem:[#allocation10 + $0xc8] sm:$0xff]  ;;  %v1433_v42 = vld [vmem:[#allocation10 + $0x180] sm:$0xff] }
  0xeb   :  { %8239 = vmatprep.subr.bf16.mxu0 %v9610_v46  ;;  %8271 = vmatprep.subr.bf16.mxu1 %v9610_v46  ;;  %v8338_v53 = vpack.c.bf16 %v1434_v43, %v1433_v42  ;;  %v1426_v42 = vld [vmem:[#allocation10 + $0x148] sm:$0xff]  ;;  %v1443_v43 = vld [vmem:[#allocation10 + $0x1d0] sm:$0xff] }
  0xec   :  { %780 = vmatmul.mubr.f32.gmra.mrb[46].mxu0 %v678_v47  ;;  %910 = vmatmul.mubr.f32.gmra.mrb[46].mxu1 %v808_v48  ;;  %v1393_v47 = vld [vmem:[#allocation10 + $0x40] sm:$0xff]  ;;  %v1394_v48 = vld [vmem:[#allocation10 + $0x48] sm:$0xff] }
  0xed   :  { %8241 = vmatpush3.bf16.msra.mxu0 %v9620_v49  ;;  %8273 = vmatpush3.bf16.msra.mxu1 %v9620_v49 }
  0xee   :  { %1004 = vmatprep.mubr.f32.mxu0 %v925_v50  ;;  %1134 = vmatprep.mubr.f32.mxu1 %v1055_v51  ;;  %v1411_v50 = vld [vmem:[#allocation10 + $0xd0] sm:$0xff]  ;;  %v1412_v51 = vld [vmem:[#allocation10 + $0xd8] sm:$0xff] }
  0xef   :  { %8275 = vmatprep.subr.bf16.mxu0 %v9475_v3  ;;  %8307 = vmatprep.subr.bf16.mxu1 %v8306_v52  ;;  %v1387_v3 = vld [vmem:[#allocation10 + $0x10] sm:$0xff]  ;;  %v8322_v52 = vpack.c.bf16 %v1410_v41, %v1409_v38  ;;  %v1193_v38 = vld [vmem:[#allocation3 + $0x448] sm:$0xff]  ;;  %v1425_v41 = vld [vmem:[#allocation10 + $0x140] sm:$0xff] }
  0xf0   :  { %1005 = vmatmul.mubr.f32.vlgmr.msra.gmra.mrb[48].mxu0 %v924_v55  ;;  %1135 = vmatmul.mubr.f32.vlgmr.msra.gmra.mrb[48].mxu1 %v1054_v56  ;;  %v1418_v55 = vld [vmem:[#allocation10 + $0x108] sm:$0xff]  ;;  %v8324_v56 = vpack.c.bf16 %v1394_v48, %v1393_v47  ;;  %v1192_v47 = vld [vmem:[#allocation3 + $0x440] sm:$0xff]  ;;  %v8356_v48 = vpack.c.bf16 %v1426_v42, %v1425_v41 }
  0xf1   :  { %8277 = vmatpush3.bf16.msra.mxu0 %v9486_v7  ;;  %1009 = vmatprep.mubr.f32.mxu0 %v927_v57  ;;  %v931_v7 = vld [vmem:[#allocation3 + $0x338] sm:$0xff]  ;;  %v1435_v57 = vld [vmem:[#allocation10 + $0x190] sm:$0xff] }
  0xf2   :  { %1139 = vmatprep.mubr.f32.mxu1 %v1057_v58  ;;  %8279 = vmatprep.subr.bf16.mxu0 %v9488_v8  ;;  %v8312_v8 = vpack.c.bf16 %v1388_v4, %v1387_v3  ;;  %v1436_v58 = vld [vmem:[#allocation10 + $0x198] sm:$0xff] }
  0xf3   :  { %8309 = vmatpush3.bf16.msra.mxu1 %v8308_v59  ;;  %v8326_v59 = vpack.c.bf16 %v1412_v51, %v1411_v50  ;;  %v1420_v3 = vld [vmem:[#allocation10 + $0x118] sm:$0xff]  ;;  %v1427_v51 = vld [vmem:[#allocation10 + $0x150] sm:$0xff] }
  0xf4   :  { %1010 = vmatmul.mubr.f32.gmra.mrb[50].mxu0 %v926_v62  ;;  %1140 = vmatmul.mubr.f32.gmra.mrb[50].mxu1 %v1056_v63  ;;  %v1413_v62 = vld [vmem:[#allocation10 + $0xe0] sm:$0xff]  ;;  %v8340_v63 = vpack.c.bf16 %v1418_v55, %v1417_v54 }
  0xf5   :  { %8281 = vmatpush3.bf16.msra.mxu0 %v9506_v13  ;;  %1014 = vmatprep.mubr.f32.mxu0 %v929_v0  ;;  %v933_v13 = vld [vmem:[#allocation3 + $0x348] sm:$0xff]  ;;  %v1187_v0 = vld [vmem:[#allocation3 + $0x418] sm:$0xff]  ;;  %v1194_v54 = vld [vmem:[#allocation3 + $0x450] sm:$0xff] }
  0xf6   :  { %1144 = vmatprep.mubr.f32.mxu1 %v1059_v1  ;;  %8283 = vmatprep.subr.bf16.mxu0 %v9510_v14  ;;  %v8314_v14 = vpack.c.bf16 %v1406_v11, %v1405_v10  ;;  %v8342_v1 = vpack.c.bf16 %v1436_v58, %v1435_v57  ;;  %v1415_v10 = vld [vmem:[#allocation10 + $0xf0] sm:$0xff]  ;;  %v1416_v11 = vld [vmem:[#allocation10 + $0xf8] sm:$0xff]  ;;  %v1429_v58 = vld [vmem:[#allocation10 + $0x160] sm:$0xff] }
  0xf7   :  { %8311 = vmatprep.subr.bf16.mxu1 %v8310_v2  ;;  %v1419_v2 = vld [vmem:[#allocation10 + $0x110] sm:$0xff] }
  0xf8   :  { %1015 = vmatmul.mubr.f32.gmra.mrb[52].mxu0 %v928_v5  ;;  %1145 = vmatmul.mubr.f32.gmra.mrb[52].mxu1 %v1058_v6  ;;  %v1437_v5 = vld [vmem:[#allocation10 + $0x1a0] sm:$0xff]  ;;  %v1438_v6 = vld [vmem:[#allocation10 + $0x1a8] sm:$0xff] }
  0xf9   :  { %8285 = vmatpush3.bf16.msra.mxu0 %v9526_v19  ;;  %1019 = vmatprep.mubr.f32.mxu0 %v931_v7  ;;  %v935_v19 = vld [vmem:[#allocation3 + $0x358] sm:$0xff] }
  0xfa   :  { %1149 = vmatprep.mubr.f32.mxu1 %v1061_v9  ;;  %8287 = vmatprep.subr.bf16.mxu0 %v9530_v20  ;;  %v8316_v20 = vpack.c.bf16 %v1390_v18, %v1389_v17  ;;  %v1397_v9 = vld [vmem:[#allocation10 + $0x60] sm:$0xff]  ;;  %v1439_v18 = vld [vmem:[#allocation10 + $0x1b0] sm:$0xff] }
  0xfb   :  { %8313 = vmatpush3.bf16.msra.mxu1 %v8312_v8  ;;  %v1186_v8 = vld [vmem:[#allocation3 + $0x410] sm:$0xff] }
  0xfc   :  { %1020 = vmatmul.mubr.f32.gmra.mrb[54].mxu0 %v930_v12  ;;  %1150 = vmatmul.mubr.f32.gmra.mrb[54].mxu1 %v1060_v15  ;;  %v8344_v12 = vpack.c.bf16 %v1420_v3, %v1419_v2  ;;  %v1189_v15 = vld [vmem:[#allocation3 + $0x428] sm:$0xff]  ;;  %v1497_v2 = vld [vmem:[#allocation10 + $0x380] sm:$0xff]  ;;  %v1498_v3 = vld [vmem:[#allocation10 + $0x388] sm:$0xff] }
  0xfd   :  { %8289 = vmatpush3.bf16.msra.mxu0 %v9546_v27  ;;  %1024 = vmatprep.mubr.f32.mxu0 %v933_v13  ;;  %v937_v27 = vld [vmem:[#allocation3 + $0x368] sm:$0xff]  ;;  %v8346_v13 = vpack.c.bf16 %v1438_v6, %v1437_v5  ;;  %v8402_v6 = vpack.c.bf16 %v1498_v3, %v1497_v2  ;;  %v1459_v3 = vld [vmem:[#allocation10 + $0x250] sm:$0xff] }
  0xfe   :  { %1154 = vmatprep.mubr.f32.mxu1 %v1063_v16  ;;  %8291 = vmatprep.subr.bf16.mxu0 %v9550_v28  ;;  %v8318_v28 = vpack.c.bf16 %v1408_v25, %v1407_v24  ;;  %v1421_v16 = vld [vmem:[#allocation10 + $0x120] sm:$0xff] }
  0xff   :  { %8315 = vmatprep.subr.bf16.mxu1 %v8314_v14  ;;  %v1422_v14 = vld [vmem:[#allocation10 + $0x128] sm:$0xff]  ;;  %v1465_v25 = vld [vmem:[#allocation10 + $0x280] sm:$0xff] }
 0x100   :  { %1025 = vmatmul.mubr.f32.gmra.mrb[56].mxu0 %v932_v21  ;;  %1155 = vmatmul.mubr.f32.gmra.mrb[56].mxu1 %v1062_v22  ;;  %v1440_v21 = vld [vmem:[#allocation10 + $0x1b8] sm:$0xff]  ;;  %v8334_v22 = vpack.c.bf16 %v1416_v11, %v1415_v10  ;;  %v8348_v24 = vpack.c.bf16 %v1422_v14, %v1421_v16  ;;  %v1467_v10 = vld [vmem:[#allocation10 + $0x290] sm:$0xff] }
 0x101   :  { %8293 = vmatpush3.bf16.msra.mxu0 %v9566_v33  ;;  %1029 = vmatprep.mubr.f32.mxu0 %v935_v19  ;;  %v939_v33 = vld [vmem:[#allocation3 + $0x378] sm:$0xff]  ;;  %v1399_v19 = vld [vmem:[#allocation10 + $0x70] sm:$0xff]  ;;  %v1468_v11 = vld [vmem:[#allocation10 + $0x298] sm:$0xff] }
 0x102   :  { %1159 = vmatprep.mubr.f32.mxu1 %v1065_v23  ;;  %8295 = vmatprep.subr.bf16.mxu0 %v9570_v34  ;;  %v8320_v34 = vpack.c.bf16 %v1392_v32, %v1391_v31  ;;  %v1400_v23 = vld [vmem:[#allocation10 + $0x78] sm:$0xff]  ;;  %v1441_v32 = vld [vmem:[#allocation10 + $0x1c0] sm:$0xff] }
 0x103   :  { %8317 = vmatpush3.bf16.msra.mxu1 %v8316_v20  ;;  %v1188_v20 = vld [vmem:[#allocation3 + $0x420] sm:$0xff]  ;;  %v8336_v31 = vpack.c.bf16 %v1400_v23, %v1399_v19  ;;  %v1469_v23 = vld [vmem:[#allocation10 + $0x2a0] sm:$0xff] }
 0x104   :  { %1030 = vmatmul.mubr.f32.gmra.mrb[58].mxu0 %v934_v26  ;;  %1160 = vmatmul.mubr.f32.gmra.mrb[58].mxu1 %v1064_v29  ;;  %v1466_v26 = vld [vmem:[#allocation10 + $0x288] sm:$0xff] }
 0x105   :  { %8297 = vmatpush3.bf16.msra.mxu0 %v9586_v39  ;;  %1034 = vmatprep.mubr.f32.mxu0 %v937_v27  ;;  %v1068_v39 = vld [vmem:[#allocation3 + $0x3f0] sm:$0xff]  ;;  %v1191_v29 = vld [vmem:[#allocation3 + $0x438] sm:$0xff]  ;;  %v8350_v27 = vpack.c.bf16 %v1440_v21, %v1439_v18  ;;  %v1451_v18 = vld [vmem:[#allocation10 + $0x210] sm:$0xff] }
 0x106   :  { %1164 = vmatprep.mubr.f32.mxu1 %v1067_v30  ;;  %8299 = vmatprep.subr.bf16.mxu0 %v9590_v40  ;;  %v1185_v40 = vld [vmem:[#allocation3 + $0x408] sm:$0xff]  ;;  %v1423_v30 = vld [vmem:[#allocation10 + $0x130] sm:$0xff] }
 0x107   :  { %8319 = vmatprep.subr.bf16.mxu1 %v8318_v28  ;;  %v1424_v28 = vld [vmem:[#allocation10 + $0x138] sm:$0xff] }
 0x108   :  { %1035 = vmatmul.mubr.f32.gmra.mrb[60].mxu0 %v936_v35  ;;  %1165 = vmatmul.mubr.f32.gmra.mrb[60].mxu1 %v1066_v36  ;;  %v1442_v35 = vld [vmem:[#allocation10 + $0x1c8] sm:$0xff]  ;;  %v8370_v36 = vpack.c.bf16 %v1466_v26, %v1465_v25  ;;  %v1452_v21 = vld [vmem:[#allocation10 + $0x218] sm:$0xff] }
 0x109   :  { %8301 = vmatpush3.bf16.msra.mxu0 %v9606_v45  ;;  %1039 = vmatprep.mubr.f32.mxu0 %v939_v33  ;;  %v1395_v45 = vld [vmem:[#allocation10 + $0x50] sm:$0xff]  ;;  %v1190_v33 = vld [vmem:[#allocation3 + $0x430] sm:$0xff] }
 0x10a   :  { %1169 = vmatprep.mubr.f32.mxu1 %v1069_v37  ;;  %8303 = vmatprep.subr.bf16.mxu0 %v9610_v46  ;;  %v1414_v46 = vld [vmem:[#allocation10 + $0xe8] sm:$0xff]  ;;  %v8328_v4 = vpack.c.bf16 %v1396_v60, %v1395_v45  ;;  %v8352_v37 = vpack.c.bf16 %v1424_v28, %v1423_v30  ;;  %v1447_v45 = vld [vmem:[#allocation10 + $0x1f0] sm:$0xff]  ;;  %v1448_v60 = vld [vmem:[#allocation10 + $0x1f8] sm:$0xff] }
 0x10b   :  { %8321 = vmatpush3.bf16.msra.mxu1 %v8320_v34  ;;  %v8330_v7 = vpack.c.bf16 %v1414_v46, %v1413_v62  ;;  %v8354_v34 = vpack.c.bf16 %v1442_v35, %v1441_v32  ;;  %v1199_v46 = vld [vmem:[#allocation3 + $0x478] sm:$0xff]  ;;  %v1453_v28 = vld [vmem:[#allocation10 + $0x220] sm:$0xff] }
 0x10c   :  { %1040 = vmatmul.mubr.f32.gmra.mrb[62].mxu0 %v938_v44  ;;  %1170 = vmatmul.mubr.f32.gmra.mrb[62].mxu1 %v1068_v39  ;;  %v1444_v44 = vld [vmem:[#allocation10 + $0x1d8] sm:$0xff]  ;;  %v1195_v39 = vld [vmem:[#allocation3 + $0x458] sm:$0xff] }
 0x10d   :  { %8305 = vmatpush3.bf16.msra.mxu0 %v9620_v49  ;;  %1264 = vmatprep.mubr.f32.mxu0 %v1185_v40  ;;  %v1398_v49 = vld [vmem:[#allocation10 + $0x68] sm:$0xff]  ;;  %v8358_v50 = vpack.c.bf16 %v1444_v44, %v1443_v43  ;;  %v1428_v40 = vld [vmem:[#allocation10 + $0x158] sm:$0xff]  ;;  %v1455_v44 = vld [vmem:[#allocation10 + $0x230] sm:$0xff] }
 0x10e   :  { %8323 = vmatprep.subr.bf16.mxu1 %v8322_v52  ;;  %8339 = vmatprep.subr.bf16.mxu0 %v8338_v53  ;;  %v8332_v17 = vpack.c.bf16 %v1398_v49, %v1397_v9  ;;  %v1445_v52 = vld [vmem:[#allocation10 + $0x1e0] sm:$0xff]  ;;  %v1446_v53 = vld [vmem:[#allocation10 + $0x1e8] sm:$0xff]  ;;  %v8360_v55 = vpack.c.bf16 %v1428_v40, %v1427_v51 }
 0x10f   :  { %8325 = vmatpush3.bf16.msra.mxu1 %v8324_v56  ;;  %v1197_v56 = vld [vmem:[#allocation3 + $0x468] sm:$0xff]  ;;  %v8362_v57 = vpack.c.bf16 %v1446_v53, %v1445_v52  ;;  %v1450_v9 = vld [vmem:[#allocation10 + $0x208] sm:$0xff] }
 0x110   :  { %1265 = vmatmul.mubr.f32.vlgmr.msra.gmra.mrb[64].mxu0 %v1184_v61  ;;  %8327 = vmatprep.subr.bf16.mxu1 %v8326_v59  ;;  %v1430_v59 = vld [vmem:[#allocation10 + $0x168] sm:$0xff]  ;;  %v1196_v61 = vld [vmem:[#allocation3 + $0x460] sm:$0xff] }
 0x111   :  { %1269 = vmatprep.mubr.f32.mxu0 %v1187_v0  ;;  %8341 = vmatpush3.bf16.msra.mxu0 %v8340_v63  ;;  %v8364_v62 = vpack.c.bf16 %v1430_v59, %v1429_v58  ;;  %v8366_v63 = vpack.c.bf16 %v1448_v60, %v1447_v45  ;;  %v1431_v0 = vld [vmem:[#allocation10 + $0x170] sm:$0xff]  ;;  %v1474_v51 = vld [vmem:[#allocation10 + $0x2c8] sm:$0xff] }
 0x112   :  { %8343 = vmatprep.subr.bf16.mxu0 %v8342_v1  ;;  %v1432_v1 = vld [vmem:[#allocation10 + $0x178] sm:$0xff]  ;;  %v1458_v58 = vld [vmem:[#allocation10 + $0x248] sm:$0xff]  ;;  %v1475_v60 = vld [vmem:[#allocation10 + $0x2d0] sm:$0xff] }
 0x113   :  { %8329 = vmatpush3.bf16.msra.mxu1 %v8328_v4  ;;  %v1198_v4 = vld [vmem:[#allocation3 + $0x470] sm:$0xff]  ;;  %v8368_v5 = vpack.c.bf16 %v1432_v1, %v1431_v0 }
 0x114   :  { %1270 = vmatmul.mubr.f32.gmra.mrb[66].mxu0 %v1186_v8  ;;  %8331 = vmatprep.subr.bf16.mxu1 %v8330_v7  ;;  %v1449_v7 = vld [vmem:[#allocation10 + $0x200] sm:$0xff] }
 0x115   :  { %1274 = vmatprep.mubr.f32.mxu0 %v1189_v15  ;;  %8345 = vmatpush3.bf16.msra.mxu0 %v8344_v12  ;;  %v8372_v14 = vpack.c.bf16 %v1450_v9, %v1449_v7  ;;  %v1477_v7 = vld [vmem:[#allocation10 + $0x2e0] sm:$0xff]  ;;  %v1478_v9 = vld [vmem:[#allocation10 + $0x2e8] sm:$0xff] }
 0x116   :  { %8347 = vmatprep.subr.bf16.mxu0 %v8346_v13 }
 0x117   :  { %8333 = vmatpush3.bf16.msra.mxu1 %v8332_v17  ;;  %v8374_v17 = vpack.c.bf16 %v1468_v11, %v1467_v10 }
 0x118   :  { %1275 = vmatmul.mubr.f32.gmra.mrb[68].mxu0 %v1188_v20  ;;  %8335 = vmatprep.subr.bf16.mxu1 %v8334_v22  ;;  %v1470_v20 = vld [vmem:[#allocation10 + $0x2a8] sm:$0xff] }
 0x119   :  { %1279 = vmatprep.mubr.f32.mxu0 %v1191_v29  ;;  %8349 = vmatpush3.bf16.msra.mxu0 %v8348_v24  ;;  %v8378_v30 = vpack.c.bf16 %v1470_v20, %v1469_v23 }
 0x11a   :  { %8351 = vmatprep.subr.bf16.mxu0 %v8350_v27  ;;  %v8376_v27 = vpack.c.bf16 %v1452_v21, %v1451_v18  ;;  %v1479_v18 = vld [vmem:[#allocation10 + $0x2f0] sm:$0xff]  ;;  %v1480_v21 = vld [vmem:[#allocation10 + $0x2f8] sm:$0xff] }
 0x11b   :  { %8337 = vmatpush3.bf16.msra.mxu1 %v8336_v31  ;;  %v1454_v31 = vld [vmem:[#allocation10 + $0x228] sm:$0xff] }
 0x11c   :  { %1280 = vmatmul.mubr.f32.gmra.mrb[70].mxu0 %v1190_v33  ;;  %8371 = vmatprep.subr.bf16.mxu1 %v8370_v36  ;;  %v1471_v36 = vld [vmem:[#allocation10 + $0x2b0] sm:$0xff]  ;;  %v1472_v33 = vld [vmem:[#allocation10 + $0x2b8] sm:$0xff]  ;;  %v8380_v42 = vpack.c.bf16 %v1454_v31, %v1453_v28  ;;  %v1513_v28 = vld [vmem:[#allocation10 + $0x400] sm:$0xff] }
 0x11d   :  { %1284 = vmatprep.mubr.f32.mxu0 %v1193_v38  ;;  %8353 = vmatpush3.bf16.msra.mxu0 %v8352_v37  ;;  %v8382_v43 = vpack.c.bf16 %v1472_v33, %v1471_v36  ;;  %v1514_v31 = vld [vmem:[#allocation10 + $0x408] sm:$0xff] }
 0x11e   :  { %8355 = vmatprep.subr.bf16.mxu0 %v8354_v34 }
 0x120   :  { %1285 = vmatmul.mubr.f32.gmra.mrb[72].mxu0 %v1192_v47  ;;  %v1456_v47 = vld [vmem:[#allocation10 + $0x238] sm:$0xff] }
 0x121   :  { %1289 = vmatprep.mubr.f32.mxu0 %v1195_v39  ;;  %8357 = vmatpush3.bf16.msra.mxu0 %v8356_v48 }
 0x122   :  { %8359 = vmatprep.subr.bf16.mxu0 %v8358_v50  ;;  %v1473_v50 = vld [vmem:[#allocation10 + $0x2c0] sm:$0xff] }
 0x124   :  { %1290 = vmatmul.mubr.f32.gmra.mrb[74].mxu0 %v1194_v54 }
 0x125   :  { %1294 = vmatprep.mubr.f32.mxu0 %v1197_v56  ;;  %8361 = vmatpush3.bf16.msra.mxu0 %v8360_v55  ;;  %v8384_v55 = vpack.c.bf16 %v1456_v47, %v1455_v44  ;;  %v8386_v56 = vpack.c.bf16 %v1474_v51, %v1473_v50  ;;  %v1499_v44 = vld [vmem:[#allocation10 + $0x390] sm:$0xff]  ;;  %v1500_v47 = vld [vmem:[#allocation10 + $0x398] sm:$0xff] }
 0x126   :  { %8363 = vmatprep.subr.bf16.mxu0 %v8362_v57  ;;  %v1457_v57 = vld [vmem:[#allocation10 + $0x240] sm:$0xff] }
 0x127   :  { %v8388_v1 = vpack.c.bf16 %v1458_v58, %v1457_v57  ;;  %v1501_v57 = vld [vmem:[#allocation10 + $0x3a0] sm:$0xff]  ;;  %v1502_v58 = vld [vmem:[#allocation10 + $0x3a8] sm:$0xff] }
 0x128   :  { %1295 = vmatmul.mubr.f32.gmra.mrb[76].mxu0 %v1196_v61  ;;  %v1476_v61 = vld [vmem:[#allocation10 + $0x2d8] sm:$0xff] }
 0x129   :  { %1299 = vmatprep.mubr.f32.mxu0 %v1199_v46  ;;  %8365 = vmatpush3.bf16.msra.mxu0 %v8364_v62  ;;  %v8390_v2 = vpack.c.bf16 %v1476_v61, %v1475_v60 }
 0x12a   :  { %8367 = vmatprep.subr.bf16.mxu0 %v8366_v63 }
 0x12c   :  { %1300 = vmatmul.mubr.f32.gmra.mrb[78].mxu0 %v1198_v4  ;;  %v1460_v4 = vld [vmem:[#allocation10 + $0x258] sm:$0xff] }
 0x12d   :  { %8369 = vmatpush3.bf16.msra.mxu0 %v8368_v5 }
 0x12e   :  { %8403 = vmatprep.subr.bf16.mxu0 %v8402_v6 }
 0x163   :  { %v6180_v49 = vpop.f32.mrb[0].mxu0  ;;  %v6236_v8 = vpop.f32.mrb[0].mxu1 }
 0x164   :  { %v6181_v12 = vpop.f32.mrb[1].mxu0  ;;  %v6237_v15 = vpop.f32.mrb[1].mxu1 }
 0x165   :  { %v6182_v13 = vadd.f32 %v6181_v12, %v6180_v49  ;;  %v6238_v16 = vadd.f32 %v6237_v15, %v6236_v8  ;;  %v8392_v12 = vpack.c.bf16 %v1460_v4, %v1459_v3  ;;  %v8394_v15 = vpack.c.bf16 %v1478_v9, %v1477_v7  ;;  %v1503_v3 = vld [vmem:[#allocation10 + $0x3b0] sm:$0xff]  ;;  %v1504_v4 = vld [vmem:[#allocation10 + $0x3b8] sm:$0xff] }
 0x167   :  { %v6183_v22 = vpop.f32.mrb[2].mxu0  ;;  %v6239_v19 = vpop.f32.mrb[2].mxu1  ;;  %1600 = vmatprep.mubr.f32.mxu1 %v6238_v16  ;;  %v1462_v16 = vld [vmem:[#allocation10 + $0x268] sm:$0xff] }
 0x168   :  { %v6184_v24 = vpop.f32.mrb[3].mxu0  ;;  %v6240_v25 = vpop.f32.mrb[3].mxu1  ;;  %1601 = vmatmul.mubr.f32.vlgmr.msra.gmra.mrb[64].mxu1 %v6182_v13  ;;  %v1461_v13 = vld [vmem:[#allocation10 + $0x260] sm:$0xff] }
 0x169   :  { %v6185_v26 = vadd.f32 %v6184_v24, %v6183_v22  ;;  %v6241_v29 = vadd.f32 %v6240_v25, %v6239_v19  ;;  %8373 = vmatpush3.bf16.msra.mxu1 %v8372_v14  ;;  %v8396_v24 = vpack.c.bf16 %v1462_v16, %v1461_v13  ;;  %v8398_v25 = vpack.c.bf16 %v1480_v21, %v1479_v18  ;;  %v1505_v13 = vld [vmem:[#allocation10 + $0x3c0] sm:$0xff]  ;;  %v1506_v16 = vld [vmem:[#allocation10 + $0x3c8] sm:$0xff] }
 0x16a   :  { %8375 = vmatprep.subr.bf16.mxu1 %v8374_v17 }
 0x16b   :  { %v6186_v32 = vpop.f32.mrb[4].mxu0  ;;  %v6242_v35 = vpop.f32.mrb[4].mxu1  ;;  %1605 = vmatprep.mubr.f32.mxu1 %v6241_v29  ;;  %v1464_v29 = vld [vmem:[#allocation10 + $0x278] sm:$0xff] }
 0x16c   :  { %v6187_v37 = vpop.f32.mrb[5].mxu0  ;;  %v6243_v38 = vpop.f32.mrb[5].mxu1  ;;  %1606 = vmatmul.mubr.f32.gmra.mrb[66].mxu1 %v6185_v26  ;;  %v1463_v26 = vld [vmem:[#allocation10 + $0x270] sm:$0xff] }
 0x16d   :  { %v6188_v34 = vadd.f32 %v6187_v37, %v6186_v32  ;;  %v6244_v41 = vadd.f32 %v6243_v38, %v6242_v35  ;;  %8377 = vmatpush3.bf16.msra.mxu1 %v8376_v27  ;;  %v8400_v37 = vpack.c.bf16 %v1464_v29, %v1463_v26  ;;  %v1481_v38 = vld [vmem:[#allocation10 + $0x300] sm:$0xff]  ;;  %v1507_v26 = vld [vmem:[#allocation10 + $0x3d0] sm:$0xff]  ;;  %v1508_v29 = vld [vmem:[#allocation10 + $0x3d8] sm:$0xff] }
 0x16e   :  { %8379 = vmatprep.subr.bf16.mxu1 %v8378_v30 }
 0x16f   :  { %v6189_v48 = vpop.f32.mrb[6].mxu0  ;;  %v6245_v39 = vpop.f32.mrb[6].mxu1  ;;  %1610 = vmatprep.mubr.f32.mxu1 %v6244_v41  ;;  %v9738_v41 = vpack.c.bf16 %v1514_v31, %v1513_v28 }
 0x170   :  { %v6190_v40 = vpop.f32.mrb[7].mxu0  ;;  %v6246_v52 = vpop.f32.mrb[7].mxu1  ;;  %1611 = vmatmul.mubr.f32.gmra.mrb[68].mxu1 %v6188_v34  ;;  %v1482_v34 = vld [vmem:[#allocation10 + $0x308] sm:$0xff] }
 0x171   :  { %v6191_v53 = vadd.f32 %v6190_v40, %v6189_v48  ;;  %v6247_v54 = vadd.f32 %v6246_v52, %v6245_v39  ;;  %8381 = vmatpush3.bf16.msra.mxu1 %v8380_v42  ;;  %v8404_v40 = vpack.c.bf16 %v1482_v34, %v1481_v38  ;;  %v8406_v52 = vpack.c.bf16 %v1500_v47, %v1499_v44  ;;  %v1509_v34 = vld [vmem:[#allocation10 + $0x3e0] sm:$0xff] }
 0x172   :  { %8383 = vmatprep.subr.bf16.mxu1 %v8382_v43 }
 0x173   :  { %v6192_v59 = vpop.f32.mrb[8].mxu0  ;;  %v6248_v45 = vpop.f32.mrb[8].mxu1  ;;  %1615 = vmatprep.mubr.f32.mxu1 %v6247_v54  ;;  %v1484_v54 = vld [vmem:[#allocation10 + $0x318] sm:$0xff] }
 0x174   :  { %v6193_v62 = vpop.f32.mrb[9].mxu0  ;;  %v6249_v46 = vpop.f32.mrb[9].mxu1  ;;  %1616 = vmatmul.mubr.f32.gmra.mrb[70].mxu1 %v6191_v53  ;;  %v1483_v53 = vld [vmem:[#allocation10 + $0x310] sm:$0xff] }
 0x175   :  { %v6194_v63 = vadd.f32 %v6193_v62, %v6192_v59  ;;  %v6250_v0 = vadd.f32 %v6249_v46, %v6248_v45  ;;  %8385 = vmatpush3.bf16.msra.mxu1 %v8384_v55  ;;  %v8408_v62 = vpack.c.bf16 %v1484_v54, %v1483_v53  ;;  %v8410_v46 = vpack.c.bf16 %v1502_v58, %v1501_v57  ;;  %v1511_v54 = vld [vmem:[#allocation10 + $0x3f0] sm:$0xff] }
 0x176   :  { %8387 = vmatprep.subr.bf16.mxu1 %v8386_v56 }
 0x177   :  { %v6195_v5 = vpop.f32.mrb[10].mxu0  ;;  %v6251_v6 = vpop.f32.mrb[10].mxu1  ;;  %1620 = vmatprep.mubr.f32.mxu1 %v6250_v0  ;;  %v1486_v0 = vld [vmem:[#allocation10 + $0x328] sm:$0xff] }
 0x178   :  { %v6196_v49 = vpop.f32.mrb[11].mxu0  ;;  %v6252_v8 = vpop.f32.mrb[11].mxu1  ;;  %1621 = vmatmul.mubr.f32.gmra.mrb[72].mxu1 %v6194_v63  ;;  %v1485_v63 = vld [vmem:[#allocation10 + $0x320] sm:$0xff] }
 0x179   :  { %v6197_v10 = vadd.f32 %v6196_v49, %v6195_v5  ;;  %v6253_v11 = vadd.f32 %v6252_v8, %v6251_v6  ;;  %8389 = vmatpush3.bf16.msra.mxu1 %v8388_v1  ;;  %v8412_v49 = vpack.c.bf16 %v1486_v0, %v1485_v63  ;;  %v8414_v8 = vpack.c.bf16 %v1504_v4, %v1503_v3 }
 0x17a   :  { %8391 = vmatprep.subr.bf16.mxu1 %v8390_v2 }
 0x17b   :  { %v6198_v14 = vpop.f32.mrb[12].mxu0  ;;  %v6254_v17 = vpop.f32.mrb[12].mxu1  ;;  %1625 = vmatprep.mubr.f32.mxu1 %v6253_v11  ;;  %v1488_v11 = vld [vmem:[#allocation10 + $0x338] sm:$0xff] }
 0x17c   :  { %v6199_v22 = vpop.f32.mrb[13].mxu0  ;;  %v6255_v19 = vpop.f32.mrb[13].mxu1  ;;  %1626 = vmatmul.mubr.f32.gmra.mrb[74].mxu1 %v6197_v10  ;;  %v1487_v10 = vld [vmem:[#allocation10 + $0x330] sm:$0xff] }
 0x17d   :  { %v6200_v23 = vadd.f32 %v6199_v22, %v6198_v14  ;;  %v6256_v20 = vadd.f32 %v6255_v19, %v6254_v17  ;;  %8393 = vmatpush3.bf16.msra.mxu1 %v8392_v12  ;;  %v8416_v22 = vpack.c.bf16 %v1488_v11, %v1487_v10  ;;  %v8418_v19 = vpack.c.bf16 %v1506_v16, %v1505_v13  ;;  %v1517_v16 = vld [vmem:[#allocation10 + $0x420] sm:$0xff] }
 0x17e   :  { %8395 = vmatprep.subr.bf16.mxu1 %v8394_v15 }
 0x17f   :  { %v6201_v27 = vpop.f32.mrb[14].mxu0  ;;  %v6257_v30 = vpop.f32.mrb[14].mxu1  ;;  %1630 = vmatprep.mubr.f32.mxu1 %v6256_v20  ;;  %v1490_v20 = vld [vmem:[#allocation10 + $0x348] sm:$0xff] }
 0x180   :  { %v6202_v32 = vpop.f32.mrb[15].mxu0  ;;  %v6258_v35 = vpop.f32.mrb[15].mxu1  ;;  %1631 = vmatmul.mubr.f32.gmra.mrb[76].mxu1 %v6200_v23  ;;  %v1489_v23 = vld [vmem:[#allocation10 + $0x340] sm:$0xff] }
 0x181   :  { %v6203_v36 = vadd.f32 %v6202_v32, %v6201_v27  ;;  %v6259_v33 = vadd.f32 %v6258_v35, %v6257_v30  ;;  %8397 = vmatpush3.bf16.msra.mxu1 %v8396_v24  ;;  %v8420_v32 = vpack.c.bf16 %v1490_v20, %v1489_v23  ;;  %v8422_v35 = vpack.c.bf16 %v1508_v29, %v1507_v26 }
 0x182   :  { %8399 = vmatprep.subr.bf16.mxu1 %v8398_v25 }
 0x183   :  { %v6292_v42 = vpop.f32.mrb[16].mxu0  ;;  %v6348_v43 = vpop.f32.mrb[16].mxu1  ;;  %1635 = vmatprep.mubr.f32.mxu1 %v6259_v33  ;;  %v1492_v33 = vld [vmem:[#allocation10 + $0x358] sm:$0xff] }
 0x184   :  { %v6293_v48 = vpop.f32.mrb[17].mxu0  ;;  %v6349_v39 = vpop.f32.mrb[17].mxu1  ;;  %1636 = vmatmul.mubr.f32.gmra.mrb[78].mxu1 %v6203_v36  ;;  %v1491_v36 = vld [vmem:[#allocation10 + $0x350] sm:$0xff] }
 0x185   :  { %v6294_v50 = vadd.f32 %v6293_v48, %v6292_v42  ;;  %v6350_v51 = vadd.f32 %v6349_v39, %v6348_v43  ;;  %8401 = vmatpush3.bf16.msra.mxu1 %v8400_v37  ;;  %v1510_v42 = vld [vmem:[#allocation10 + $0x3e8] sm:$0xff]  ;;  %v8424_v39 = vpack.c.bf16 %v1492_v33, %v1491_v36 }
 0x186   :  { %8435 = vmatprep.subr.bf16.mxu1 %v9738_v41 }
 0x187   :  { %v6295_v55 = vpop.f32.mrb[18].mxu0  ;;  %v6351_v56 = vpop.f32.mrb[18].mxu1  ;;  %1705 = vmatprep.mubr.f32.mxu0 %v6350_v51  ;;  %v1493_v51 = vld [vmem:[#allocation10 + $0x360] sm:$0xff] }
 0x188   :  { %v6296_v59 = vpop.f32.mrb[19].mxu0  ;;  %v6352_v45 = vpop.f32.mrb[19].mxu1  ;;  %1706 = vmatmul.mubr.f32.vlgmr.msra.gmra.mrb[80].mxu0 %v6294_v50  ;;  %v8426_v50 = vpack.c.bf16 %v1510_v42, %v1509_v34 }
 0x189   :  { %v6297_v60 = vadd.f32 %v6296_v59, %v6295_v55  ;;  %v6353_v61 = vadd.f32 %v6352_v45, %v6351_v56  ;;  %8405 = vmatpush3.bf16.msra.mxu0 %v8404_v40  ;;  %v1494_v40 = vld [vmem:[#allocation10 + $0x368] sm:$0xff]  ;;  %v1512_v55 = vld [vmem:[#allocation10 + $0x3f8] sm:$0xff] }
 0x18a   :  { %8407 = vmatprep.subr.bf16.mxu0 %v8406_v52  ;;  %v8428_v45 = vpack.c.bf16 %v1494_v40, %v1493_v51 }
 0x18b   :  { %v6298_v1 = vpop.f32.mrb[20].mxu0  ;;  %v6354_v2 = vpop.f32.mrb[20].mxu1  ;;  %1710 = vmatprep.mubr.f32.mxu0 %v6353_v61  ;;  %v1495_v61 = vld [vmem:[#allocation10 + $0x370] sm:$0xff] }
 0x18c   :  { %v6299_v5 = vpop.f32.mrb[21].mxu0  ;;  %v6355_v6 = vpop.f32.mrb[21].mxu1  ;;  %1711 = vmatmul.mubr.f32.gmra.mrb[82].mxu0 %v6297_v60  ;;  %v8430_v60 = vpack.c.bf16 %v1512_v55, %v1511_v54  ;;  %v1525_v54 = vld [vmem:[#allocation10 + $0x460] sm:$0xff]  ;;  %v1526_v55 = vld [vmem:[#allocation10 + $0x468] sm:$0xff] }
 0x18d   :  { %v6300_v7 = vadd.f32 %v6299_v5, %v6298_v1  ;;  %v6356_v9 = vadd.f32 %v6355_v6, %v6354_v2  ;;  %8409 = vmatpush3.bf16.msra.mxu0 %v8408_v62  ;;  %v1496_v62 = vld [vmem:[#allocation10 + $0x378] sm:$0xff] }
 0x18e   :  { %8411 = vmatprep.subr.bf16.mxu0 %v8410_v46  ;;  %v8432_v4 = vpack.c.bf16 %v1496_v62, %v1495_v61  ;;  %v1527_v62 = vld [vmem:[#allocation10 + $0x470] sm:$0xff] }
 0x18f   :  { %v6301_v12 = vpop.f32.mrb[22].mxu0  ;;  %v6357_v15 = vpop.f32.mrb[22].mxu1  ;;  %1715 = vmatprep.mubr.f32.mxu0 %v6356_v9  ;;  %v1516_v9 = vld [vmem:[#allocation10 + $0x418] sm:$0xff] }
 0x190   :  { %v6302_v14 = vpop.f32.mrb[23].mxu0  ;;  %v6358_v17 = vpop.f32.mrb[23].mxu1  ;;  %1716 = vmatmul.mubr.f32.gmra.mrb[84].mxu0 %v6300_v7  ;;  %v1515_v7 = vld [vmem:[#allocation10 + $0x410] sm:$0xff] }
 0x191   :  { %v6303_v18 = vadd.f32 %v6302_v14, %v6301_v12  ;;  %v6359_v21 = vadd.f32 %v6358_v17, %v6357_v15  ;;  %8413 = vmatpush3.bf16.msra.mxu0 %v8412_v49  ;;  %v8438_v12 = vpack.c.bf16 %v1516_v9, %v1515_v7  ;;  %v1518_v14 = vld [vmem:[#allocation10 + $0x428] sm:$0xff] }
 0x192   :  { %8415 = vmatprep.subr.bf16.mxu0 %v8414_v8 }
 0x193   :  { %v6304_v24 = vpop.f32.mrb[24].mxu0  ;;  %v6360_v25 = vpop.f32.mrb[24].mxu1  ;;  %1720 = vmatprep.mubr.f32.mxu0 %v6359_v21 }
 0x194   :  { %v6305_v27 = vpop.f32.mrb[25].mxu0  ;;  %v6361_v30 = vpop.f32.mrb[25].mxu1  ;;  %1721 = vmatmul.mubr.f32.gmra.mrb[86].mxu0 %v6303_v18 }
 0x195   :  { %v6306_v28 = vadd.f32 %v6305_v27, %v6304_v24  ;;  %v6362_v31 = vadd.f32 %v6361_v30, %v6360_v25  ;;  %8417 = vmatpush3.bf16.msra.mxu0 %v8416_v22  ;;  %v1519_v24 = vld [vmem:[#allocation10 + $0x430] sm:$0xff]  ;;  %v1520_v25 = vld [vmem:[#allocation10 + $0x438] sm:$0xff] }
 0x196   :  { %8419 = vmatprep.subr.bf16.mxu0 %v8418_v19  ;;  %v8442_v19 = vpack.c.bf16 %v1518_v14, %v1517_v16 }
 0x197   :  { %v6307_v37 = vpop.f32.mrb[26].mxu0  ;;  %v6363_v38 = vpop.f32.mrb[26].mxu1  ;;  %1725 = vmatprep.mubr.f32.mxu0 %v6362_v31 }
 0x198   :  { %v6308_v43 = vpop.f32.mrb[27].mxu0  ;;  %v6364_v44 = vpop.f32.mrb[27].mxu1  ;;  %1726 = vmatmul.mubr.f32.gmra.mrb[88].mxu0 %v6306_v28  ;;  %v8446_v28 = vpack.c.bf16 %v1520_v25, %v1519_v24 }
 0x199   :  { %v6309_v47 = vadd.f32 %v6308_v43, %v6307_v37  ;;  %v6365_v48 = vadd.f32 %v6364_v44, %v6363_v38  ;;  %8421 = vmatpush3.bf16.msra.mxu0 %v8420_v32  ;;  %v1523_v44 = vld [vmem:[#allocation10 + $0x450] sm:$0xff] }
 0x19a   :  { %8423 = vmatprep.subr.bf16.mxu0 %v8422_v35  ;;  %v1521_v35 = vld [vmem:[#allocation10 + $0x440] sm:$0xff] }
 0x19b   :  { %v6310_v52 = vpop.f32.mrb[28].mxu0  ;;  %v6366_v53 = vpop.f32.mrb[28].mxu1  ;;  %1730 = vmatprep.mubr.f32.mxu0 %v6365_v48 }
 0x19c   :  { %v6311_v56 = vpop.f32.mrb[29].mxu0  ;;  %v6367_v57 = vpop.f32.mrb[29].mxu1  ;;  %1731 = vmatmul.mubr.f32.gmra.mrb[90].mxu0 %v6309_v47  ;;  %v1524_v47 = vld [vmem:[#allocation10 + $0x458] sm:$0xff] }
 0x19d   :  { %v6312_v58 = vadd.f32 %v6311_v56, %v6310_v52  ;;  %v6368_v59 = vadd.f32 %v6367_v57, %v6366_v53  ;;  %8425 = vmatpush3.bf16.msra.mxu0 %v8424_v39  ;;  %v8454_v40 = vpack.c.bf16 %v1524_v47, %v1523_v44 }
 0x19e   :  { %8427 = vmatprep.subr.bf16.mxu0 %v8426_v50 }
 0x19f   :  { %v6313_v46 = vpop.f32.mrb[30].mxu0  ;;  %v6369_v63 = vpop.f32.mrb[30].mxu1  ;;  %1735 = vmatprep.mubr.f32.mxu0 %v6368_v59 }
 0x1a0   :  { %v6314_v0 = vpop.f32.mrb[31].mxu0  ;;  %v6370_v1 = vpop.f32.mrb[31].mxu1  ;;  %1736 = vmatmul.mubr.f32.gmra.mrb[92].mxu0 %v6312_v58 }
 0x1a1   :  { %v6315_v2 = vadd.f32 %v6314_v0, %v6313_v46  ;;  %v6371_v3 = vadd.f32 %v6370_v1, %v6369_v63  ;;  %8429 = vmatpush3.bf16.msra.mxu0 %v8428_v45  ;;  %v8458_v45 = vpack.c.bf16 %v1526_v55, %v1525_v54  ;;  %v1528_v46 = vld [vmem:[#allocation10 + $0x478] sm:$0xff] }
 0x1a2   :  { %8431 = vmatprep.subr.bf16.mxu0 %v8430_v60 }
 0x1a3   :  { %v6404_v5 = vpop.f32.mrb[32].mxu0  ;;  %v6460_v6 = vpop.f32.mrb[32].mxu1  ;;  %1740 = vmatprep.mubr.f32.mxu0 %v6371_v3  ;;  %v8462_v3 = vpack.c.bf16 %v1528_v46, %v1527_v62 }
 0x1a4   :  { %v6405_v49 = vpop.f32.mrb[33].mxu0  ;;  %v6461_v8 = vpop.f32.mrb[33].mxu1  ;;  %1741 = vmatmul.mubr.f32.gmra.mrb[94].mxu0 %v6315_v2 }
 0x1a5   :  { %v6406_v10 = vadd.f32 %v6405_v49, %v6404_v5  ;;  %v6462_v11 = vadd.f32 %v6461_v8, %v6460_v6  ;;  %8433 = vmatpush3.bf16.msra.mxu0 %v8432_v4 }
 0x1a7   :  { %v6407_v15 = vpop.f32.mrb[34].mxu0  ;;  %v6463_v13 = vpop.f32.mrb[34].mxu1  ;;  %1810 = vmatprep.mubr.f32.mxu1 %v6462_v11 }
 0x1a8   :  { %v6408_v17 = vpop.f32.mrb[35].mxu0  ;;  %v6464_v18 = vpop.f32.mrb[35].mxu1  ;;  %1811 = vmatmul.mubr.f32.vlgmr.msra.gmra.mrb[80].mxu1 %v6406_v10 }
 0x1a9   :  { %v6409_v21 = vadd.f32 %v6408_v17, %v6407_v15  ;;  %v6465_v22 = vadd.f32 %v6464_v18, %v6463_v13  ;;  %8437 = vmatpush3.bf16.msra.mxu1 %v9738_v41  ;;  %v1522_v41 = vld [vmem:[#allocation10 + $0x448] sm:$0xff] }
 0x1aa   :  { %8439 = vmatprep.subr.bf16.mxu1 %v8438_v12  ;;  %v8450_v34 = vpack.c.bf16 %v1522_v41, %v1521_v35 }
 0x1ab   :  { %v6410_v23 = vpop.f32.mrb[36].mxu0  ;;  %v6466_v20 = vpop.f32.mrb[36].mxu1  ;;  %1815 = vmatprep.mubr.f32.mxu1 %v6465_v22 }
 0x1ac   :  { %v6411_v26 = vpop.f32.mrb[37].mxu0  ;;  %v6467_v29 = vpop.f32.mrb[37].mxu1  ;;  %1816 = vmatmul.mubr.f32.gmra.mrb[82].mxu1 %v6409_v21 }
 0x1ad   :  { %v6412_v27 = vadd.f32 %v6411_v26, %v6410_v23  ;;  %v6468_v30 = vadd.f32 %v6467_v29, %v6466_v20  ;;  %8441 = vmatpush3.bf16.msra.mxu1 %v8438_v12 }
 0x1ae   :  { %8443 = vmatprep.subr.bf16.mxu1 %v8442_v19 }
 0x1af   :  { %v6413_v31 = vpop.f32.mrb[38].mxu0  ;;  %v6469_v32 = vpop.f32.mrb[38].mxu1  ;;  %1820 = vmatprep.mubr.f32.mxu1 %v6468_v30 }
 0x1b0   :  { %v6414_v36 = vpop.f32.mrb[39].mxu0  ;;  %v6470_v33 = vpop.f32.mrb[39].mxu1  ;;  %1821 = vmatmul.mubr.f32.gmra.mrb[84].mxu1 %v6412_v27 }
 0x1b1   :  { %v6415_v37 = vadd.f32 %v6414_v36, %v6413_v31  ;;  %v6471_v38 = vadd.f32 %v6470_v33, %v6469_v32  ;;  %8445 = vmatpush3.bf16.msra.mxu1 %v8442_v19 }
 0x1b2   :  { %8447 = vmatprep.subr.bf16.mxu1 %v8446_v28 }
 0x1b3   :  { %v6416_v42 = vpop.f32.mrb[40].mxu0  ;;  %v6472_v43 = vpop.f32.mrb[40].mxu1  ;;  %1825 = vmatprep.mubr.f32.mxu1 %v6471_v38 }
 0x1b4   :  { %v6417_v48 = vpop.f32.mrb[41].mxu0  ;;  %v6473_v39 = vpop.f32.mrb[41].mxu1  ;;  %1826 = vmatmul.mubr.f32.gmra.mrb[86].mxu1 %v6415_v37 }
 0x1b5   :  { %v6418_v50 = vadd.f32 %v6417_v48, %v6416_v42  ;;  %v6474_v51 = vadd.f32 %v6473_v39, %v6472_v43  ;;  %8449 = vmatpush3.bf16.msra.mxu1 %v8446_v28 }
 0x1b6   :  { %8451 = vmatprep.subr.bf16.mxu1 %v8450_v34 }
 0x1b7   :  { %v6419_v52 = vpop.f32.mrb[42].mxu0  ;;  %v6475_v53 = vpop.f32.mrb[42].mxu1  ;;  %1830 = vmatprep.mubr.f32.mxu1 %v6474_v51 }
 0x1b8   :  { %v6420_v56 = vpop.f32.mrb[43].mxu0  ;;  %v6476_v57 = vpop.f32.mrb[43].mxu1  ;;  %1831 = vmatmul.mubr.f32.gmra.mrb[88].mxu1 %v6418_v50 }
 0x1b9   :  { %v6421_v58 = vadd.f32 %v6420_v56, %v6419_v52  ;;  %v6477_v59 = vadd.f32 %v6476_v57, %v6475_v53  ;;  %8453 = vmatpush3.bf16.msra.mxu1 %v8450_v34 }
 0x1ba   :  { %8455 = vmatprep.subr.bf16.mxu1 %v8454_v40 }
 0x1bb   :  { %v6422_v60 = vpop.f32.mrb[44].mxu0  ;;  %v6478_v61 = vpop.f32.mrb[44].mxu1  ;;  %1835 = vmatprep.mubr.f32.mxu1 %v6477_v59 }
 0x1bc   :  { %v6423_v63 = vpop.f32.mrb[45].mxu0  ;;  %v6479_v0 = vpop.f32.mrb[45].mxu1  ;;  %1836 = vmatmul.mubr.f32.gmra.mrb[90].mxu1 %v6421_v58 }
 0x1bd   :  { %v6424_v1 = vadd.f32 %v6423_v63, %v6422_v60  ;;  %v6480_v2 = vadd.f32 %v6479_v0, %v6478_v61  ;;  %8457 = vmatpush3.bf16.msra.mxu1 %v8454_v40 }
 0x1be   :  { %8459 = vmatprep.subr.bf16.mxu1 %v8458_v45 }
 0x1bf   :  { %v6425_v4 = vpop.f32.mrb[46].mxu0  ;;  %v6481_v5 = vpop.f32.mrb[46].mxu1  ;;  %1840 = vmatprep.mubr.f32.mxu1 %v6480_v2 }
 0x1c0   :  { %v6426_v6 = vpop.f32.mrb[47].mxu0  ;;  %v6482_v7 = vpop.f32.mrb[47].mxu1  ;;  %1841 = vmatmul.mubr.f32.gmra.mrb[92].mxu1 %v6424_v1 }
 0x1c1   :  { %v6427_v9 = vadd.f32 %v6426_v6, %v6425_v4  ;;  %v6483_v49 = vadd.f32 %v6482_v7, %v6481_v5  ;;  %8461 = vmatpush3.bf16.msra.mxu1 %v8458_v45 }
 0x1c2   :  { %8463 = vmatprep.subr.bf16.mxu1 %v8462_v3 }
 0x1c3   :  { %v6516_v8 = vpop.f32.mrb[48].mxu0  ;;  %v6572_v10 = vpop.f32.mrb[48].mxu1  ;;  %1845 = vmatprep.mubr.f32.mxu1 %v6483_v49 }
 0x1c4   :  { %v6517_v11 = vpop.f32.mrb[49].mxu0  ;;  %v6573_v12 = vpop.f32.mrb[49].mxu1  ;;  %1846 = vmatmul.mubr.f32.gmra.mrb[94].mxu1 %v6427_v9 }
 0x1c5   :  { %v6518_v15 = vadd.f32 %v6517_v11, %v6516_v8  ;;  %v6574_v13 = vadd.f32 %v6573_v12, %v6572_v10  ;;  %8465 = vmatpush3.bf16.msra.mxu1 %v8462_v3 }
 0x1c7   :  { %v6519_v16 = vpop.f32.mrb[50].mxu0  ;;  %v6575_v14 = vpop.f32.mrb[50].mxu1  ;;  %1915 = vmatprep.mubr.f32.mxu0 %v6574_v13 }
 0x1c8   :  { %v6520_v17 = vpop.f32.mrb[51].mxu0  ;;  %v6576_v18 = vpop.f32.mrb[51].mxu1  ;;  %1916 = vmatmul.mubr.f32.vlgmr.msra.gmra.mrb[96].mxu0 %v6518_v15 }
 0x1c9   :  { %v6521_v21 = vadd.f32 %v6520_v17, %v6519_v16  ;;  %v6577_v22 = vadd.f32 %v6576_v18, %v6575_v14 }
 0x1cb   :  { %v6522_v19 = vpop.f32.mrb[52].mxu0  ;;  %v6578_v23 = vpop.f32.mrb[52].mxu1  ;;  %1920 = vmatprep.mubr.f32.mxu0 %v6577_v22 }
 0x1cc   :  { %v6523_v20 = vpop.f32.mrb[53].mxu0  ;;  %v6579_v24 = vpop.f32.mrb[53].mxu1  ;;  %1921 = vmatmul.mubr.f32.gmra.mrb[98].mxu0 %v6521_v21 }
 0x1cd   :  { %v6524_v25 = vadd.f32 %v6523_v20, %v6522_v19  ;;  %v6580_v26 = vadd.f32 %v6579_v24, %v6578_v23 }
 0x1cf   :  { %v6525_v29 = vpop.f32.mrb[54].mxu0  ;;  %v6581_v27 = vpop.f32.mrb[54].mxu1  ;;  %1925 = vmatprep.mubr.f32.mxu0 %v6580_v26 }
 0x1d0   :  { %v6526_v30 = vpop.f32.mrb[55].mxu0  ;;  %v6582_v28 = vpop.f32.mrb[55].mxu1  ;;  %1926 = vmatmul.mubr.f32.gmra.mrb[100].mxu0 %v6524_v25 }
 0x1d1   :  { %v6527_v31 = vadd.f32 %v6526_v30, %v6525_v29  ;;  %v6583_v32 = vadd.f32 %v6582_v28, %v6581_v27 }
 0x1d3   :  { %v6528_v35 = vpop.f32.mrb[56].mxu0  ;;  %v6584_v41 = vpop.f32.mrb[56].mxu1  ;;  %1930 = vmatprep.mubr.f32.mxu0 %v6583_v32 }
 0x1d4   :  { %v6529_v36 = vpop.f32.mrb[57].mxu0  ;;  %v6585_v33 = vpop.f32.mrb[57].mxu1  ;;  %1931 = vmatmul.mubr.f32.gmra.mrb[102].mxu0 %v6527_v31 }
 0x1d5   :  { %v6530_v37 = vadd.f32 %v6529_v36, %v6528_v35  ;;  %v6586_v38 = vadd.f32 %v6585_v33, %v6584_v41 }
 0x1d7   :  { %v6531_v34 = vpop.f32.mrb[58].mxu0  ;;  %v6587_v42 = vpop.f32.mrb[58].mxu1  ;;  %1935 = vmatprep.mubr.f32.mxu0 %v6586_v38 }
 0x1d8   :  { %v6532_v43 = vpop.f32.mrb[59].mxu0  ;;  %v6588_v44 = vpop.f32.mrb[59].mxu1  ;;  %1936 = vmatmul.mubr.f32.gmra.mrb[104].mxu0 %v6530_v37 }
 0x1d9   :  { %v6533_v47 = vadd.f32 %v6532_v43, %v6531_v34  ;;  %v6589_v48 = vadd.f32 %v6588_v44, %v6587_v42  ;;  %v6090_v43 = vld [vmem:[#allocation11] ss:$0 sm:$0xff] }
 0x1db   :  { %v6534_v39 = vpop.f32.mrb[60].mxu0  ;;  %v6590_v50 = vpop.f32.mrb[60].mxu1  ;;  %1940 = vmatprep.mubr.f32.mxu0 %v6589_v48 }
 0x1dc   :  { %v6535_v51 = vpop.f32.mrb[61].mxu0  ;;  %v6591_v40 = vpop.f32.mrb[61].mxu1  ;;  %1941 = vmatmul.mubr.f32.gmra.mrb[106].mxu0 %v6533_v47 }
 0x1dd   :  { %v6536_v52 = vadd.f32 %v6535_v51, %v6534_v39  ;;  %v6592_v53 = vadd.f32 %v6591_v40, %v6590_v50 }
 0x1df   :  { %v6537_v54 = vpop.f32.mrb[62].mxu0  ;;  %v6593_v55 = vpop.f32.mrb[62].mxu1  ;;  %1945 = vmatprep.mubr.f32.mxu0 %v6592_v53 }
 0x1e0   :  { %v6538_v56 = vpop.f32.mrb[63].mxu0  ;;  %v6594_v57 = vpop.f32.mrb[63].mxu1  ;;  %1946 = vmatmul.mubr.f32.gmra.mrb[108].mxu0 %v6536_v52 }
 0x1e1   :  { %v6539_v58 = vadd.f32 %v6538_v56, %v6537_v54  ;;  %v6595_v59 = vadd.f32 %v6594_v57, %v6593_v55  ;;  %v2093_v54 = vld [vmem:[#allocation5] sm:$0xff]  ;;  %v2352_v55 = vld [vmem:[#allocation5 + $0x30] sm:$0xff] }
 0x1e3   :  { %v6628_v45 = vpop.f32.mrb[64].mxu0  ;;  %1950 = vmatprep.mubr.f32.mxu0 %v6595_v59 }
 0x1e4   :  { %v6629_v60 = vpop.f32.mrb[65].mxu0  ;;  %1951 = vmatmul.mubr.f32.gmra.mrb[110].mxu0 %v6539_v58 }
 0x1e5   :  { %v6630_v61 = vadd.f32 %v6629_v60, %v6628_v45  ;;  %7689 = vmatprep.mubr.msk.f32.mxu0 %vm2095_vm0, %v2352_v55 }
 0x1e7   :  { %v6631_v62 = vpop.f32.mrb[66].mxu0  ;;  %7604 = vmatprep.mubr.f32.mxu1 %v6630_v61 }
 0x1e8   :  { %v6632_v46 = vpop.f32.mrb[67].mxu0 }
 0x1e9   :  { %v6633_v63 = vadd.f32 %v6632_v46, %v6631_v62 }
 0x1eb   :  { %v6634_v0 = vpop.f32.mrb[68].mxu0  ;;  %7605 = vmatmul.mubr.f32.vlgmr.msra.gmra.mrb[96].mxu1 %v6633_v63 }
 0x1ec   :  { %v6635_v1 = vpop.f32.mrb[69].mxu0 }
 0x1ed   :  { %v6636_v2 = vadd.f32 %v6635_v1, %v6634_v0 }
 0x1ef   :  { %v6637_v3 = vpop.f32.mrb[70].mxu0  ;;  %7607 = vmatprep.mubr.f32.mxu1 %v6636_v2 }
 0x1f0   :  { %v6638_v4 = vpop.f32.mrb[71].mxu0 }
 0x1f1   :  { %v6639_v5 = vadd.f32 %v6638_v4, %v6637_v3 }
 0x1f3   :  { %v6640_v6 = vpop.f32.mrb[72].mxu0  ;;  %7608 = vmatmul.mubr.f32.gmra.mrb[98].mxu1 %v6639_v5 }
 0x1f4   :  { %v6641_v7 = vpop.f32.mrb[73].mxu0 }
 0x1f5   :  { %v6642_v9 = vadd.f32 %v6641_v7, %v6640_v6 }
 0x1f7   :  { %v6643_v49 = vpop.f32.mrb[74].mxu0  ;;  %7610 = vmatprep.mubr.f32.mxu1 %v6642_v9 }
 0x1f8   :  { %v6644_v8 = vpop.f32.mrb[75].mxu0 }
 0x1f9   :  { %v6645_v10 = vadd.f32 %v6644_v8, %v6643_v49 }
 0x1fb   :  { %v6646_v11 = vpop.f32.mrb[76].mxu0  ;;  %7611 = vmatmul.mubr.f32.gmra.mrb[100].mxu1 %v6645_v10 }
 0x1fc   :  { %v6647_v12 = vpop.f32.mrb[77].mxu0 }
 0x1fd   :  { %v6648_v15 = vadd.f32 %v6647_v12, %v6646_v11 }
 0x1ff   :  { %v6649_v13 = vpop.f32.mrb[78].mxu0  ;;  %7613 = vmatprep.mubr.f32.mxu1 %v6648_v15 }
 0x200   :  { %v6650_v16 = vpop.f32.mrb[79].mxu0 }
 0x201   :  { %v6651_v14 = vadd.f32 %v6650_v16, %v6649_v13 }
 0x203   :  { %7614 = vmatmul.mubr.f32.gmra.mrb[102].mxu1 %v6651_v14 }
 0x204   :  { %7632 = vmatprep.mubr.msk.f32.mxu1 %vm2095_vm0, %v2093_v54 }
 0x23b   :  { %v6684_v17 = vpop.f32.mrb[64].mxu1 }
 0x23c   :  { %v6685_v18 = vpop.f32.mrb[65].mxu1 }
 0x23d   :  { %v6686_v21 = vadd.f32 %v6685_v18, %v6684_v17 }
 0x23f   :  { %v6687_v22 = vpop.f32.mrb[66].mxu1  ;;  %v1603_v48 = vadd.f32 %v6686_v21, %v6090_v43 }
 0x240   :  { %v6688_v19 = vpop.f32.mrb[67].mxu1 }
 0x241   :  { %v6689_v23 = vadd.f32 %v6688_v19, %v6687_v22 }
 0x243   :  { %v6690_v20 = vpop.f32.mrb[68].mxu1  ;;  %v1608_v52 = vadd.f32 %v6689_v23, %v6090_v43 }
 0x244   :  { %v6691_v24 = vpop.f32.mrb[69].mxu1 }
 0x245   :  { %v6692_v25 = vadd.f32 %v6691_v24, %v6690_v20 }
 0x247   :  { %v6693_v26 = vpop.f32.mrb[70].mxu1  ;;  %v1613_v59 = vadd.f32 %v6692_v25, %v6090_v43 }
 0x248   :  { %v6694_v29 = vpop.f32.mrb[71].mxu1 }
 0x249   :  { %v6695_v27 = vadd.f32 %v6694_v29, %v6693_v26 }
 0x24b   :  { %v6696_v30 = vpop.f32.mrb[72].mxu1  ;;  %v1618_v46 = vadd.f32 %v6695_v27, %v6090_v43 }
 0x24c   :  { %v6697_v28 = vpop.f32.mrb[73].mxu1 }
 0x24d   :  { %v6698_v31 = vadd.f32 %v6697_v28, %v6696_v30 }
 0x24f   :  { %v6699_v32 = vpop.f32.mrb[74].mxu1  ;;  %v1623_v3 = vadd.f32 %v6698_v31, %v6090_v43 }
 0x250   :  { %v6700_v35 = vpop.f32.mrb[75].mxu1 }
 0x251   :  { %v6701_v41 = vadd.f32 %v6700_v35, %v6699_v32 }
 0x253   :  { %v6702_v36 = vpop.f32.mrb[76].mxu1  ;;  %v1628_v9 = vadd.f32 %v6701_v41, %v6090_v43 }
 0x254   :  { %v6703_v33 = vpop.f32.mrb[77].mxu1 }
 0x255   :  { %v6704_v37 = vadd.f32 %v6703_v33, %v6702_v36 }
 0x257   :  { %v6705_v38 = vpop.f32.mrb[78].mxu1  ;;  %v1633_v12 = vadd.f32 %v6704_v37, %v6090_v43 }
 0x258   :  { %v6706_v34 = vpop.f32.mrb[79].mxu1 }
 0x259   :  { %v6707_v42 = vadd.f32 %v6706_v34, %v6705_v38 }
 0x25b   :  { %v6740_v44 = vpop.f32.mrb[80].mxu0  ;;  %v1638_v17 = vadd.f32 %v6707_v42, %v6090_v43 }
 0x25c   :  { %v6741_v47 = vpop.f32.mrb[81].mxu0 }
 0x25d   :  { %v6742_v39 = vadd.f32 %v6741_v47, %v6740_v44 }
 0x25f   :  { %v1708_v50 = vadd.f32 %v6742_v39, %v1603_v48  ;;  %v6743_v51 = vpop.f32.mrb[82].mxu0 }
 0x260   :  { %v6744_v40 = vpop.f32.mrb[83].mxu0 }
 0x261   :  { %v6745_v53 = vadd.f32 %v6744_v40, %v6743_v51 }
 0x263   :  { %v1713_v56 = vadd.f32 %v6745_v53, %v1608_v52  ;;  %v6746_v57 = vpop.f32.mrb[84].mxu0 }
 0x264   :  { %v6747_v58 = vpop.f32.mrb[85].mxu0 }
 0x265   :  { %v6748_v45 = vadd.f32 %v6747_v58, %v6746_v57 }
 0x267   :  { %v1718_v60 = vadd.f32 %v6748_v45, %v1613_v59  ;;  %v6749_v61 = vpop.f32.mrb[86].mxu0 }
 0x268   :  { %v6750_v62 = vpop.f32.mrb[87].mxu0 }
 0x269   :  { %v6751_v63 = vadd.f32 %v6750_v62, %v6749_v61 }
 0x26b   :  { %v1723_v0 = vadd.f32 %v6751_v63, %v1618_v46  ;;  %v6752_v1 = vpop.f32.mrb[88].mxu0 }
 0x26c   :  { %v6753_v2 = vpop.f32.mrb[89].mxu0 }
 0x26d   :  { %v6754_v4 = vadd.f32 %v6753_v2, %v6752_v1 }
 0x26f   :  { %v1728_v5 = vadd.f32 %v6754_v4, %v1623_v3  ;;  %v6755_v6 = vpop.f32.mrb[90].mxu0 }
 0x270   :  { %v6756_v7 = vpop.f32.mrb[91].mxu0 }
 0x271   :  { %v6757_v49 = vadd.f32 %v6756_v7, %v6755_v6 }
 0x273   :  { %v1733_v8 = vadd.f32 %v6757_v49, %v1628_v9  ;;  %v6758_v10 = vpop.f32.mrb[92].mxu0 }
 0x274   :  { %v6759_v11 = vpop.f32.mrb[93].mxu0 }
 0x275   :  { %v6760_v15 = vadd.f32 %v6759_v11, %v6758_v10 }
 0x277   :  { %v1738_v13 = vadd.f32 %v6760_v15, %v1633_v12  ;;  %v6761_v16 = vpop.f32.mrb[94].mxu0 }
 0x278   :  { %v6762_v14 = vpop.f32.mrb[95].mxu0 }
 0x279   :  { %v6763_v18 = vadd.f32 %v6762_v14, %v6761_v16 }
 0x27b   :  { %v1743_v21 = vadd.f32 %v6763_v18, %v1638_v17  ;;  %v6796_v22 = vpop.f32.mrb[80].mxu1 }
 0x27c   :  { %v6797_v19 = vpop.f32.mrb[81].mxu1 }
 0x27d   :  { %v6798_v23 = vadd.f32 %v6797_v19, %v6796_v22 }
 0x27f   :  { %v1813_v20 = vadd.f32 %v6798_v23, %v1708_v50  ;;  %v6799_v24 = vpop.f32.mrb[82].mxu1 }
 0x280   :  { %v6800_v25 = vpop.f32.mrb[83].mxu1 }
 0x281   :  { %v6801_v26 = vadd.f32 %v6800_v25, %v6799_v24 }
 0x283   :  { %v1818_v29 = vadd.f32 %v6801_v26, %v1713_v56  ;;  %v6802_v27 = vpop.f32.mrb[84].mxu1 }
 0x284   :  { %v6803_v30 = vpop.f32.mrb[85].mxu1 }
 0x285   :  { %v6804_v28 = vadd.f32 %v6803_v30, %v6802_v27 }
 0x287   :  { %v1823_v31 = vadd.f32 %v6804_v28, %v1718_v60  ;;  %v6805_v32 = vpop.f32.mrb[86].mxu1 }
 0x288   :  { %v6806_v35 = vpop.f32.mrb[87].mxu1 }
 0x289   :  { %v6807_v41 = vadd.f32 %v6806_v35, %v6805_v32 }
 0x28b   :  { %v1828_v36 = vadd.f32 %v6807_v41, %v1723_v0  ;;  %v6808_v33 = vpop.f32.mrb[88].mxu1 }
 0x28c   :  { %v6809_v37 = vpop.f32.mrb[89].mxu1 }
 0x28d   :  { %v6810_v38 = vadd.f32 %v6809_v37, %v6808_v33 }
 0x28f   :  { %v1833_v34 = vadd.f32 %v6810_v38, %v1728_v5  ;;  %v6811_v42 = vpop.f32.mrb[90].mxu1 }
 0x290   :  { %v6812_v43 = vpop.f32.mrb[91].mxu1 }
 0x291   :  { %v6813_v44 = vadd.f32 %v6812_v43, %v6811_v42 }
 0x293   :  { %v1838_v47 = vadd.f32 %v6813_v44, %v1733_v8  ;;  %v6814_v48 = vpop.f32.mrb[92].mxu1 }
 0x294   :  { %v6815_v39 = vpop.f32.mrb[93].mxu1 }
 0x295   :  { %v6816_v50 = vadd.f32 %v6815_v39, %v6814_v48 }
 0x297   :  { %v1843_v51 = vadd.f32 %v6816_v50, %v1738_v13  ;;  %v6817_v40 = vpop.f32.mrb[94].mxu1 }
 0x298   :  { %v6818_v52 = vpop.f32.mrb[95].mxu1 }
 0x299   :  { %v6819_v53 = vadd.f32 %v6818_v52, %v6817_v40 }
 0x29b   :  { %v1848_v54 = vadd.f32 %v6819_v53, %v1743_v21  ;;  %v6852_v55 = vpop.f32.mrb[96].mxu0 }
 0x29c   :  { %v6853_v56 = vpop.f32.mrb[97].mxu0 }
 0x29d   :  { %v6854_v57 = vadd.f32 %v6853_v56, %v6852_v55 }
 0x29f   :  { %v6855_v58 = vpop.f32.mrb[98].mxu0  ;;  %v1918_v59 = vadd.f32 %v6854_v57, %v1813_v20 }
 0x2a0   :  { %v6856_v45 = vpop.f32.mrb[99].mxu0 }
 0x2a1   :  { %v6857_v60 = vadd.f32 %v6856_v45, %v6855_v58  ;;  %v2353_v45 = vld [vmem:[#allocation5 + $0x38] sm:$0xff] }
 0x2a3   :  { %v6858_v61 = vpop.f32.mrb[100].mxu0  ;;  %v1923_v62 = vadd.f32 %v6857_v60, %v1818_v29  ;;  %v2180_v60 = vld [vmem:[#allocation5 + $0x10] sm:$0xff] }
 0x2a4   :  { %v6859_v46 = vpop.f32.mrb[101].mxu0 }
 0x2a5   :  { %v6860_v63 = vadd.f32 %v6859_v46, %v6858_v61  ;;  %v2524_v61 = vld [vmem:[#allocation5 + $0x50] sm:$0xff]  ;;  %v2525_v46 = vld [vmem:[#allocation5 + $0x58] sm:$0xff] }
 0x2a7   :  { %v6861_v0 = vpop.f32.mrb[102].mxu0  ;;  %v1928_v1 = vadd.f32 %v6860_v63, %v1823_v31  ;;  %v2266_v63 = vld [vmem:[#allocation5 + $0x20] sm:$0xff] }
 0x2a8   :  { %v6862_v2 = vpop.f32.mrb[103].mxu0 }
 0x2a9   :  { %v6863_v3 = vadd.f32 %v6862_v2, %v6861_v0  ;;  %v2696_v0 = vld [vmem:[#allocation5 + $0x70] sm:$0xff]  ;;  %v2903_v2 = vld [vmem:[#allocation10 + $0x508] sm:$0xff] }
 0x2ab   :  { %v6864_v4 = vpop.f32.mrb[104].mxu0  ;;  %v1933_v5 = vadd.f32 %v6863_v3, %v1828_v36 }
 0x2ac   :  { %v6865_v6 = vpop.f32.mrb[105].mxu0 }
 0x2ad   :  { %v6866_v7 = vadd.f32 %v6865_v6, %v6864_v4  ;;  %v2886_v4 = vld [vmem:[#allocation10 + $0x480] sm:$0xff]  ;;  %v2904_v6 = vld [vmem:[#allocation10 + $0x510] sm:$0xff] }
 0x2af   :  { %v6867_v9 = vpop.f32.mrb[106].mxu0  ;;  %v1938_v49 = vadd.f32 %v6866_v7, %v1833_v34  ;;  %v2905_v7 = vld [vmem:[#allocation10 + $0x518] sm:$0xff] }
 0x2b0   :  { %v6868_v8 = vpop.f32.mrb[107].mxu0 }
 0x2b1   :  { %v6869_v10 = vadd.f32 %v6868_v8, %v6867_v9  ;;  %v2267_v9 = vld [vmem:[#allocation5 + $0x28] sm:$0xff]  ;;  %v2438_v8 = vld [vmem:[#allocation5 + $0x40] sm:$0xff] }
 0x2b3   :  { %v6870_v11 = vpop.f32.mrb[108].mxu0  ;;  %v1943_v12 = vadd.f32 %v6869_v10, %v1838_v47 }
 0x2b4   :  { %v6871_v15 = vpop.f32.mrb[109].mxu0 }
 0x2b5   :  { %v6872_v13 = vadd.f32 %v6871_v15, %v6870_v11  ;;  %v8614_v11 = vpack.c.bf16 %v2905_v7, %v2904_v6  ;;  %v2889_v15 = vld [vmem:[#allocation10 + $0x498] sm:$0xff]  ;;  %v2940_v6 = vld [vmem:[#allocation10 + $0x630] sm:$0xff] }
 0x2b7   :  { %v6873_v16 = vpop.f32.mrb[110].mxu0  ;;  %v1948_v14 = vadd.f32 %v6872_v13, %v1843_v51  ;;  %v2906_v13 = vld [vmem:[#allocation10 + $0x520] sm:$0xff] }
 0x2b8   :  { %v6874_v17 = vpop.f32.mrb[111].mxu0 }
 0x2b9   :  { %v6875_v18 = vadd.f32 %v6874_v17, %v6873_v16  ;;  %v2907_v16 = vld [vmem:[#allocation10 + $0x528] sm:$0xff] }
 0x2ba   :  { %v8618_v17 = vpack.c.bf16 %v2907_v16, %v2906_v13 }
 0x2bb   :  { %v1953_v21 = vadd.f32 %v6875_v18, %v1848_v54  ;;  %v2890_v18 = vld [vmem:[#allocation10 + $0x4a0] sm:$0xff] }
 0x2be   :  { %v7606_v22 = vpop.f32.mrb[96].mxu1 }
 0x2bf   :  { %v2028_v19 = vadd.f32 %v7606_v22, %v1923_v62  ;;  %v2022_v23 = vpop.f32.mrb[97].mxu1  ;;  %v2181_v62 = vld [vmem:[#allocation5 + $0x18] sm:$0xff]  ;;  %v2908_v22 = vld [vmem:[#allocation10 + $0x530] sm:$0xff] }
 0x2c0   :  { %v2023_v20 = vadd.f32 %v2022_v23, %v1918_v59  ;;  %v2094_v59 = vld [vmem:[#allocation5 + $0x8] sm:$0xff] }
 0x2c1   :  { %vm2062_vm1 = vcmp.ge.f32.partialorder %v2028_v19, 0.0  ;;  %v2070_v24 = vmul.f32 0.2, %v2028_v19 }
 0x2c2   :  { %vm2061_vm2 = vcmp.ge.f32.partialorder %v2023_v20, 0.0  ;;  %v2069_v25 = vmul.f32 0.2, %v2023_v20 }
 0x2c3   :  { %v2078_v26 = vsel %vm2062_vm1, %v2028_v19, %v2070_v24  ;;  %v2909_v19 = vld [vmem:[#allocation10 + $0x538] sm:$0xff]  ;;  %v2892_v24 = vld [vmem:[#allocation10 + $0x4b0] sm:$0xff] }
 0x2c4   :  { %2086 = vst [vmem:[%s10022_s7 + $0x8] sm:$0xff] %v2078_v26  ;;  %v2077_v29 = vsel %vm2061_vm2, %v2023_v20, %v2069_v25  ;;  %v8622_v20 = vpack.c.bf16 %v2909_v19, %v2908_v22  ;;  %v2893_v25 = vld [vmem:[#allocation10 + $0x4b8] sm:$0xff]  ;;  %v2967_v22 = vld [vmem:[#allocation10 + $0x708] sm:$0xff]  ;;  %v2926_v19 = vld [vmem:[#allocation10 + $0x5c0] sm:$0xff] }
 0x2c5   :  { %2085 = vst [vmem:[%s10022_s7] sm:$0xff] %v2077_v29  ;;  %v9750_v27 = vpack.c.bf16 %v2078_v26, %v2077_v29  ;;  %v8624_v26 = vpack.c.bf16 %v2893_v25, %v2892_v24  ;;  %v2439_v29 = vld [vmem:[#allocation5 + $0x48] sm:$0xff]  ;;  %v2944_v25 = vld [vmem:[#allocation10 + $0x650] sm:$0xff] }
 0x2c6   :  { %v7609_v30 = vpop.f32.mrb[98].mxu1 }
 0x2c7   :  { %v2038_v28 = vadd.f32 %v7609_v30, %v1933_v5  ;;  %v2032_v31 = vpop.f32.mrb[99].mxu1  ;;  %8467 = vmatprep.subr.bf16.mxu1 %v9750_v27  ;;  %8515 = vmatprep.subr.bf16.mxu0 %v9750_v27  ;;  %v2887_v5 = vld [vmem:[#allocation10 + $0x488] sm:$0xff]  ;;  %v2610_v30 = vld [vmem:[#allocation5 + $0x60] sm:$0xff] }
 0x2c8   :  { %v2033_v32 = vadd.f32 %v2032_v31, %v1928_v1  ;;  %8469 = vmatpush3.bf16.msra.mxu1 %v9750_v27  ;;  %8517 = vmatpush3.bf16.msra.mxu0 %v9750_v27  ;;  %v2902_v1 = vld [vmem:[#allocation10 + $0x500] sm:$0xff]  ;;  %v8612_v10 = vpack.c.bf16 %v2887_v5, %v2886_v4  ;;  %v2782_v31 = vld [vmem:[#allocation5 + $0x80] sm:$0xff]  ;;  %v2917_v5 = vld [vmem:[#allocation10 + $0x578] sm:$0xff] }
 0x2c9   :  { %vm2064_vm3 = vcmp.ge.f32.partialorder %v2038_v28, 0.0  ;;  %v2072_v35 = vmul.f32 0.2, %v2038_v28  ;;  %v8610_v3 = vpack.c.bf16 %v2903_v2, %v2902_v1  ;;  %v2922_v1 = vld [vmem:[#allocation10 + $0x5a0] sm:$0xff]  ;;  %v2923_v2 = vld [vmem:[#allocation10 + $0x5a8] sm:$0xff]  ;;  %v2916_v4 = vld [vmem:[#allocation10 + $0x570] sm:$0xff] }
 0x2ca   :  { %vm2063_vm4 = vcmp.ge.f32.partialorder %v2033_v32, 0.0  ;;  %v2071_v41 = vmul.f32 0.2, %v2033_v32  ;;  %v8652_v7 = vpack.c.bf16 %v2923_v2, %v2922_v1 }
 0x2cb   :  { %v2080_v36 = vsel %vm2064_vm3, %v2038_v28, %v2072_v35  ;;  %v2611_v28 = vld [vmem:[#allocation5 + $0x68] sm:$0xff]  ;;  %v2910_v35 = vld [vmem:[#allocation10 + $0x540] sm:$0xff] }
 0x2cc   :  { %2088 = vst [vmem:[%s10022_s7 + $0x18] sm:$0xff] %v2080_v36  ;;  %v2079_v33 = vsel %vm2063_vm4, %v2033_v32, %v2071_v41  ;;  %v2783_v32 = vld [vmem:[#allocation5 + $0x88] sm:$0xff]  ;;  %v2911_v41 = vld [vmem:[#allocation10 + $0x548] sm:$0xff] }
 0x2cd   :  { %2087 = vst [vmem:[%s10022_s7 + $0x10] sm:$0xff] %v2079_v33  ;;  %v9762_v37 = vpack.c.bf16 %v2080_v36, %v2079_v33  ;;  %v8626_v36 = vpack.c.bf16 %v2911_v41, %v2910_v35  ;;  %v2935_v33 = vld [vmem:[#allocation10 + $0x608] sm:$0xff] }
 0x2ce   :  { %v7612_v38 = vpop.f32.mrb[100].mxu1  ;;  %v2947_v35 = vld [vmem:[#allocation10 + $0x668] sm:$0xff] }
 0x2cf   :  { %v2048_v34 = vadd.f32 %v7612_v38, %v1943_v12  ;;  %v2042_v42 = vpop.f32.mrb[101].mxu1  ;;  %8471 = vmatprep.subr.bf16.mxu1 %v9762_v37  ;;  %8519 = vmatprep.subr.bf16.mxu0 %v9762_v37  ;;  %v2888_v12 = vld [vmem:[#allocation10 + $0x490] sm:$0xff]  ;;  %v2894_v38 = vld [vmem:[#allocation10 + $0x4c0] sm:$0xff] }
 0x2d0   :  { %v2043_v43 = vadd.f32 %v2042_v42, %v1938_v49  ;;  %8473 = vmatpush3.bf16.msra.mxu1 %v9762_v37  ;;  %8521 = vmatpush3.bf16.msra.mxu0 %v9762_v37  ;;  %v2697_v49 = vld [vmem:[#allocation5 + $0x78] sm:$0xff] }
 0x2d1   :  { %vm2066_vm5 = vcmp.ge.f32.partialorder %v2048_v34, 0.0  ;;  %v2074_v44 = vmul.f32 0.2, %v2048_v34 }
 0x2d2   :  { %vm2065_vm6 = vcmp.ge.f32.partialorder %v2043_v43, 0.0  ;;  %v2073_v47 = vmul.f32 0.2, %v2043_v43 }
 0x2d3   :  { %v2082_v48 = vsel %vm2066_vm5, %v2048_v34, %v2074_v44  ;;  %v2895_v34 = vld [vmem:[#allocation10 + $0x4c8] sm:$0xff] }
 0x2d4   :  { %2090 = vst [vmem:[%s10022_s7 + $0x28] sm:$0xff] %v2082_v48  ;;  %v2081_v39 = vsel %vm2065_vm6, %v2043_v43, %v2073_v47  ;;  %v2918_v43 = vld [vmem:[#allocation10 + $0x580] sm:$0xff]  ;;  %v2919_v44 = vld [vmem:[#allocation10 + $0x588] sm:$0xff]  ;;  %v2912_v47 = vld [vmem:[#allocation10 + $0x550] sm:$0xff] }
 0x2d5   :  { %2089 = vst [vmem:[%s10022_s7 + $0x20] sm:$0xff] %v2081_v39  ;;  %v9774_v50 = vpack.c.bf16 %v2082_v48, %v2081_v39  ;;  %v8644_v48 = vpack.c.bf16 %v2919_v44, %v2918_v43  ;;  %v2913_v39 = vld [vmem:[#allocation10 + $0x558] sm:$0xff] }
 0x2d6   :  { %v7615_v51 = vpop.f32.mrb[102].mxu1  ;;  %v2933_v43 = vld [vmem:[#allocation10 + $0x5f8] sm:$0xff] }
 0x2d7   :  { %v2058_v40 = vadd.f32 %v7615_v51, %v1953_v21  ;;  %v2052_v52 = vpop.f32.mrb[103].mxu1  ;;  %8475 = vmatprep.subr.bf16.mxu1 %v9774_v50  ;;  %8523 = vmatprep.subr.bf16.mxu0 %v9774_v50  ;;  %v2891_v21 = vld [vmem:[#allocation10 + $0x4a8] sm:$0xff]  ;;  %v2937_v51 = vld [vmem:[#allocation10 + $0x618] sm:$0xff] }
 0x2d8   :  { %v2053_v53 = vadd.f32 %v2052_v52, %v1948_v14  ;;  %8477 = vmatpush3.bf16.msra.mxu1 %v9774_v50  ;;  %8525 = vmatpush3.bf16.msra.mxu0 %v9774_v50  ;;  %v8616_v14 = vpack.c.bf16 %v2889_v15, %v2888_v12  ;;  %v8620_v23 = vpack.c.bf16 %v2891_v21, %v2890_v18  ;;  %v2924_v12 = vld [vmem:[#allocation10 + $0x5b0] sm:$0xff]  ;;  %v2925_v15 = vld [vmem:[#allocation10 + $0x5b8] sm:$0xff]  ;;  %v2966_v18 = vld [vmem:[#allocation10 + $0x700] sm:$0xff] }
 0x2d9   :  { %vm2068_vm7 = vcmp.ge.f32.partialorder %v2058_v40, 0.0  ;;  %v2076_v54 = vmul.f32 0.2, %v2058_v40  ;;  %v8656_v16 = vpack.c.bf16 %v2925_v15, %v2924_v12  ;;  %v2958_v15 = vld [vmem:[#allocation10 + $0x6c0] sm:$0xff] }
 0x2da   :  { %vm2067_vm8 = vcmp.ge.f32.partialorder %v2053_v53, 0.0  ;;  %v2075_v55 = vmul.f32 0.2, %v2053_v53 }
 0x2db   :  { %v2084_v56 = vsel %vm2068_vm7, %v2058_v40, %v2076_v54  ;;  %v8630_v40 = vpack.c.bf16 %v2913_v39, %v2912_v47  ;;  %v2897_v54 = vld [vmem:[#allocation10 + $0x4d8] sm:$0xff]  ;;  %v2998_v47 = vld [vmem:[#allocation10 + $0x800] sm:$0xff] }
 0x2dc   :  { %2092 = vst [vmem:[%s10022_s7 + $0x38] sm:$0xff] %v2084_v56  ;;  %v2083_v57 = vsel %vm2067_vm8, %v2053_v53, %v2075_v55  ;;  %v2896_v53 = vld [vmem:[#allocation10 + $0x4d0] sm:$0xff] }
 0x2dd   :  { %2091 = vst [vmem:[%s10022_s7 + $0x30] sm:$0xff] %v2083_v57  ;;  %v9786_v58 = vpack.c.bf16 %v2084_v56, %v2083_v57  ;;  %v2920_v55 = vld [vmem:[#allocation10 + $0x590] sm:$0xff]  ;;  %v8632_v56 = vpack.c.bf16 %v2897_v54, %v2896_v53  ;;  %v2921_v57 = vld [vmem:[#allocation10 + $0x598] sm:$0xff]  ;;  %v2950_v53 = vld [vmem:[#allocation10 + $0x680] sm:$0xff] }
 0x2de   :  { %v2951_v54 = vld [vmem:[#allocation10 + $0x688] sm:$0xff] }
 0x2df   :  { %8479 = vmatprep.subr.bf16.mxu1 %v9786_v58  ;;  %8527 = vmatprep.subr.bf16.mxu0 %v9786_v58 }
 0x2e0   :  { %8481 = vmatpush3.bf16.msra.mxu1 %v9786_v58  ;;  %8529 = vmatpush3.bf16.msra.mxu0 %v9786_v58 }
 0x2e1   :  { %8483 = vmatprep.subr.bf16.mxu1 %v9750_v27  ;;  %8547 = vmatprep.subr.bf16.mxu0 %v9750_v27 }
 0x2e3   :  { %7633 = vmatmul.mubr.msk.f32.vlgmr.msra.gmra.mrb[104].mxu1 %vm2095_vm0, %v2094_v59  ;;  %7690 = vmatmul.mubr.msk.f32.vlgmr.msra.gmra.mrb[112].mxu0 %vm2095_vm0, %v2353_v45  ;;  %v2915_v59 = vld [vmem:[#allocation10 + $0x568] sm:$0xff]  ;;  %v8648_v45 = vpack.c.bf16 %v2921_v57, %v2920_v55  ;;  %v2968_v55 = vld [vmem:[#allocation10 + $0x710] sm:$0xff] }
 0x2e4   :  { %8485 = vmatpush3.bf16.msra.mxu1 %v9750_v27  ;;  %8549 = vmatpush3.bf16.msra.mxu0 %v9750_v27 }
 0x2e5   :  { %8487 = vmatprep.subr.bf16.mxu1 %v9762_v37  ;;  %8551 = vmatprep.subr.bf16.mxu0 %v9762_v37 }
 0x2e6   :  { %7651 = vmatprep.mubr.msk.f32.mxu1 %vm2095_vm0, %v2180_v60  ;;  %7727 = vmatprep.mubr.msk.f32.mxu0 %vm2095_vm0, %v2524_v61  ;;  %v2938_v61 = vld [vmem:[#allocation10 + $0x620] sm:$0xff] }
 0x2e8   :  { %8489 = vmatpush3.bf16.msra.mxu1 %v9762_v37  ;;  %8553 = vmatpush3.bf16.msra.mxu0 %v9762_v37 }
 0x2e9   :  { %8491 = vmatprep.subr.bf16.mxu1 %v9774_v50  ;;  %8555 = vmatprep.subr.bf16.mxu0 %v9774_v50 }
 0x2ec   :  { %8493 = vmatpush3.bf16.msra.mxu1 %v9774_v50  ;;  %8557 = vmatpush3.bf16.msra.mxu0 %v9774_v50 }
 0x2ed   :  { %8495 = vmatprep.subr.bf16.mxu1 %v9786_v58  ;;  %8559 = vmatprep.subr.bf16.mxu0 %v9786_v58 }
 0x2f0   :  { %8497 = vmatpush3.bf16.msra.mxu1 %v9786_v58  ;;  %8561 = vmatpush3.bf16.msra.mxu0 %v9786_v58 }
 0x2f1   :  { %8499 = vmatprep.subr.bf16.mxu1 %v9750_v27  ;;  %8579 = vmatprep.subr.bf16.mxu0 %v9750_v27 }
 0x2f3   :  { %7652 = vmatmul.mubr.msk.f32.vlgmr.msra.gmra.mrb[106].mxu1 %vm2095_vm0, %v2181_v62  ;;  %7728 = vmatmul.mubr.msk.f32.vlgmr.msra.gmra.mrb[114].mxu0 %vm2095_vm0, %v2525_v46  ;;  %v2939_v62 = vld [vmem:[#allocation10 + $0x628] sm:$0xff]  ;;  %v2898_v46 = vld [vmem:[#allocation10 + $0x4e0] sm:$0xff] }
 0x2f4   :  { %8501 = vmatpush3.bf16.msra.mxu1 %v9750_v27  ;;  %8581 = vmatpush3.bf16.msra.mxu0 %v9750_v27 }
 0x2f5   :  { %8503 = vmatprep.subr.bf16.mxu1 %v9762_v37  ;;  %8583 = vmatprep.subr.bf16.mxu0 %v9762_v37 }
 0x2f6   :  { %7670 = vmatprep.mubr.msk.f32.mxu1 %vm2095_vm0, %v2266_v63  ;;  %7765 = vmatprep.mubr.msk.f32.mxu0 %vm2095_vm0, %v2696_v0  ;;  %v8650_v63 = vpack.c.bf16 %v2939_v62, %v2938_v61  ;;  %v2899_v0 = vld [vmem:[#allocation10 + $0x4e8] sm:$0xff]  ;;  %v2952_v61 = vld [vmem:[#allocation10 + $0x690] sm:$0xff]  ;;  %v2953_v62 = vld [vmem:[#allocation10 + $0x698] sm:$0xff] }
 0x2f7   :  { %v8680_v1 = vpack.c.bf16 %v2953_v62, %v2952_v61  ;;  %v3006_v61 = vld [vmem:[#allocation10 + $0x840] sm:$0xff]  ;;  %v3007_v62 = vld [vmem:[#allocation10 + $0x848] sm:$0xff] }
 0x2f8   :  { %8505 = vmatpush3.bf16.msra.mxu1 %v9762_v37  ;;  %8585 = vmatpush3.bf16.msra.mxu0 %v9762_v37 }
 0x2f9   :  { %8507 = vmatprep.subr.bf16.mxu1 %v9774_v50  ;;  %8587 = vmatprep.subr.bf16.mxu0 %v9774_v50 }
 0x2fc   :  { %8509 = vmatpush3.bf16.msra.mxu1 %v9774_v50  ;;  %8589 = vmatpush3.bf16.msra.mxu0 %v9774_v50 }
 0x2fd   :  { %8511 = vmatprep.subr.bf16.mxu1 %v9786_v58  ;;  %8591 = vmatprep.subr.bf16.mxu0 %v9786_v58 }
 0x300   :  { %8513 = vmatpush3.bf16.msra.mxu1 %v9786_v58  ;;  %8593 = vmatpush3.bf16.msra.mxu0 %v9786_v58 }
 0x301   :  { %8531 = vmatprep.subr.bf16.mxu1 %v9750_v27  ;;  %8611 = vmatprep.subr.bf16.mxu0 %v8610_v3  ;;  %v8636_v3 = vpack.c.bf16 %v2899_v0, %v2898_v46  ;;  %v2971_v0 = vld [vmem:[#allocation10 + $0x728] sm:$0xff] }
 0x303   :  { %7671 = vmatmul.mubr.msk.f32.vlgmr.msra.gmra.mrb[108].mxu1 %vm2095_vm0, %v2267_v9  ;;  %7766 = vmatmul.mubr.msk.f32.vlgmr.msra.gmra.mrb[116].mxu0 %vm2095_vm0, %v2697_v49  ;;  %v8638_v9 = vpack.c.bf16 %v2917_v5, %v2916_v4  ;;  %v2941_v49 = vld [vmem:[#allocation10 + $0x638] sm:$0xff]  ;;  %v2955_v4 = vld [vmem:[#allocation10 + $0x6a8] sm:$0xff]  ;;  %v2972_v5 = vld [vmem:[#allocation10 + $0x730] sm:$0xff] }
 0x304   :  { %8533 = vmatpush3.bf16.msra.mxu1 %v9750_v27  ;;  %7708 = vmatprep.mubr.msk.f32.mxu1 %vm2095_vm0, %v2438_v8  ;;  %v2900_v8 = vld [vmem:[#allocation10 + $0x4f0] sm:$0xff] }
 0x305   :  { %8535 = vmatprep.subr.bf16.mxu1 %v9762_v37  ;;  %8613 = vmatpush3.bf16.msra.mxu0 %v8612_v10  ;;  %v2901_v10 = vld [vmem:[#allocation10 + $0x4f8] sm:$0xff] }
 0x306   :  { %8615 = vmatprep.subr.bf16.mxu0 %v8614_v11  ;;  %v8654_v11 = vpack.c.bf16 %v2941_v49, %v2940_v6  ;;  %v8640_v13 = vpack.c.bf16 %v2901_v10, %v2900_v8  ;;  %v2973_v6 = vld [vmem:[#allocation10 + $0x738] sm:$0xff]  ;;  %v2956_v49 = vld [vmem:[#allocation10 + $0x6b0] sm:$0xff]  ;;  %v2974_v10 = vld [vmem:[#allocation10 + $0x740] sm:$0xff] }
 0x307   :  { %v2957_v8 = vld [vmem:[#allocation10 + $0x6b8] sm:$0xff] }
 0x308   :  { %8537 = vmatpush3.bf16.msra.mxu1 %v9762_v37  ;;  %v8688_v12 = vpack.c.bf16 %v2957_v8, %v2956_v49  ;;  %v3017_v49 = vld [vmem:[#allocation10 + $0x898] sm:$0xff] }
 0x309   :  { %8539 = vmatprep.subr.bf16.mxu1 %v9774_v50  ;;  %8617 = vmatpush3.bf16.msra.mxu0 %v8616_v14  ;;  %v2942_v14 = vld [vmem:[#allocation10 + $0x640] sm:$0xff] }
 0x30a   :  { %8619 = vmatprep.subr.bf16.mxu0 %v8618_v17  ;;  %v2943_v17 = vld [vmem:[#allocation10 + $0x648] sm:$0xff] }
 0x30b   :  { %v8658_v21 = vpack.c.bf16 %v2943_v17, %v2942_v14  ;;  %v2959_v17 = vld [vmem:[#allocation10 + $0x6c8] sm:$0xff] }
 0x30c   :  { %8541 = vmatpush3.bf16.msra.mxu1 %v9774_v50 }
 0x30d   :  { %8543 = vmatprep.subr.bf16.mxu1 %v9786_v58  ;;  %8621 = vmatpush3.bf16.msra.mxu0 %v8620_v23  ;;  %v2927_v23 = vld [vmem:[#allocation10 + $0x5c8] sm:$0xff] }
 0x30e   :  { %8623 = vmatprep.subr.bf16.mxu0 %v8622_v20  ;;  %v8674_v20 = vpack.c.bf16 %v2967_v22, %v2966_v18  ;;  %v8660_v24 = vpack.c.bf16 %v2927_v23, %v2926_v19  ;;  %v3000_v18 = vld [vmem:[#allocation10 + $0x810] sm:$0xff]  ;;  %v2977_v19 = vld [vmem:[#allocation10 + $0x758] sm:$0xff] }
 0x30f   :  { %v2976_v22 = vld [vmem:[#allocation10 + $0x750] sm:$0xff] }
 0x310   :  { %8545 = vmatpush3.bf16.msra.mxu1 %v9786_v58 }
 0x311   :  { %8563 = vmatprep.subr.bf16.mxu1 %v9750_v27  ;;  %8625 = vmatpush3.bf16.msra.mxu0 %v8624_v26  ;;  %v2945_v26 = vld [vmem:[#allocation10 + $0x658] sm:$0xff] }
 0x312   :  { %8627 = vmatprep.subr.bf16.mxu0 %v8626_v36  ;;  %v2931_v36 = vld [vmem:[#allocation10 + $0x5e8] sm:$0xff] }
 0x313   :  { %7709 = vmatmul.mubr.msk.f32.vlgmr.msra.gmra.mrb[110].mxu1 %vm2095_vm0, %v2439_v29  ;;  %v8662_v29 = vpack.c.bf16 %v2945_v26, %v2944_v25  ;;  %v2960_v26 = vld [vmem:[#allocation10 + $0x6d0] sm:$0xff] }
 0x314   :  { %8565 = vmatpush3.bf16.msra.mxu1 %v9750_v27  ;;  %7746 = vmatprep.mubr.msk.f32.mxu1 %vm2095_vm0, %v2610_v30  ;;  %v2928_v30 = vld [vmem:[#allocation10 + $0x5d0] sm:$0xff] }
 0x315   :  { %8567 = vmatprep.subr.bf16.mxu1 %v9762_v37 }
 0x318   :  { %8569 = vmatpush3.bf16.msra.mxu1 %v9762_v37 }
 0x319   :  { %8571 = vmatprep.subr.bf16.mxu1 %v9774_v50 }
 0x31c   :  { %8573 = vmatpush3.bf16.msra.mxu1 %v9774_v50 }
 0x31d   :  { %8575 = vmatprep.subr.bf16.mxu1 %v9786_v58 }
 0x320   :  { %8577 = vmatpush3.bf16.msra.mxu1 %v9786_v58 }
 0x321   :  { %8595 = vmatprep.subr.bf16.mxu1 %v9750_v27 }
 0x323   :  { %7747 = vmatmul.mubr.msk.f32.vlgmr.msra.gmra.mrb[112].mxu1 %vm2095_vm0, %v2611_v28  ;;  %v2929_v28 = vld [vmem:[#allocation10 + $0x5d8] sm:$0xff] }
 0x324   :  { %8597 = vmatpush3.bf16.msra.mxu1 %v9750_v27  ;;  %7784 = vmatprep.mubr.msk.f32.mxu1 %vm2095_vm0, %v2782_v31  ;;  %v2934_v27 = vld [vmem:[#allocation10 + $0x600] sm:$0xff]  ;;  %v8664_v31 = vpack.c.bf16 %v2929_v28, %v2928_v30  ;;  %v2985_v30 = vld [vmem:[#allocation10 + $0x798] sm:$0xff] }
 0x325   :  { %8599 = vmatprep.subr.bf16.mxu1 %v9762_v37  ;;  %v8642_v42 = vpack.c.bf16 %v2935_v33, %v2934_v27  ;;  %v2930_v27 = vld [vmem:[#allocation10 + $0x5e0] sm:$0xff] }
 0x326   :  { %v8668_v33 = vpack.c.bf16 %v2931_v36, %v2930_v27  ;;  %v3003_v27 = vld [vmem:[#allocation10 + $0x828] sm:$0xff] }
 0x328   :  { %8601 = vmatpush3.bf16.msra.mxu1 %v9762_v37  ;;  %v8628_v37 = vpack.c.bf16 %v2895_v34, %v2894_v38  ;;  %v2948_v38 = vld [vmem:[#allocation10 + $0x670] sm:$0xff]  ;;  %v2949_v34 = vld [vmem:[#allocation10 + $0x678] sm:$0xff] }
 0x329   :  { %8603 = vmatprep.subr.bf16.mxu1 %v9774_v50 }
 0x32a   :  { %8629 = vmatpush3.bf16.msra.mxu0 %v8628_v37  ;;  %v2932_v37 = vld [vmem:[#allocation10 + $0x5f0] sm:$0xff] }
 0x32b   :  { %8631 = vmatprep.subr.bf16.mxu0 %v8630_v40  ;;  %v8672_v44 = vpack.c.bf16 %v2933_v43, %v2932_v37  ;;  %v2962_v43 = vld [vmem:[#allocation10 + $0x6e0] sm:$0xff] }
 0x32c   :  { %8605 = vmatpush3.bf16.msra.mxu1 %v9774_v50  ;;  %v2936_v50 = vld [vmem:[#allocation10 + $0x610] sm:$0xff] }
 0x32d   :  { %8607 = vmatprep.subr.bf16.mxu1 %v9786_v58  ;;  %v8646_v52 = vpack.c.bf16 %v2937_v51, %v2936_v50 }
 0x32e   :  { %8633 = vmatpush3.bf16.msra.mxu0 %v8632_v56  ;;  %v2969_v56 = vld [vmem:[#allocation10 + $0x718] sm:$0xff] }
 0x330   :  { %8609 = vmatpush3.bf16.msra.mxu1 %v9786_v58  ;;  %v2914_v58 = vld [vmem:[#allocation10 + $0x560] sm:$0xff] }
 0x331   :  { %8643 = vmatprep.subr.bf16.mxu1 %v8642_v42  ;;  %v8634_v60 = vpack.c.bf16 %v2915_v59, %v2914_v58  ;;  %v8670_v42 = vpack.c.bf16 %v2949_v34, %v2948_v38  ;;  %v8676_v58 = vpack.c.bf16 %v2951_v54, %v2950_v53  ;;  %v2979_v38 = vld [vmem:[#allocation10 + $0x768] sm:$0xff]  ;;  %v2981_v53 = vld [vmem:[#allocation10 + $0x778] sm:$0xff] }
 0x333   :  { %7785 = vmatmul.mubr.msk.f32.vlgmr.msra.gmra.mrb[114].mxu1 %vm2095_vm0, %v2783_v32  ;;  %8635 = vmatprep.subr.bf16.mxu0 %v8634_v60  ;;  %v2946_v32 = vld [vmem:[#allocation10 + $0x660] sm:$0xff]  ;;  %v8678_v60 = vpack.c.bf16 %v2969_v56, %v2968_v55  ;;  %v2964_v56 = vld [vmem:[#allocation10 + $0x6f0] sm:$0xff] }
 0x334   :  { %8645 = vmatpush3.bf16.msra.mxu1 %v8644_v48  ;;  %8637 = vmatpush3.bf16.msra.mxu0 %v8636_v3  ;;  %v8666_v41 = vpack.c.bf16 %v2947_v35, %v2946_v32  ;;  %v2999_v48 = vld [vmem:[#allocation10 + $0x808] sm:$0xff]  ;;  %v2954_v3 = vld [vmem:[#allocation10 + $0x6a0] sm:$0xff]  ;;  %v8694_v32 = vpack.c.bf16 %v2977_v19, %v2976_v22  ;;  %v2961_v35 = vld [vmem:[#allocation10 + $0x6d8] sm:$0xff] }
 0x335   :  { %8647 = vmatprep.subr.bf16.mxu1 %v8646_v52  ;;  %8639 = vmatprep.subr.bf16.mxu0 %v8638_v9  ;;  %v8706_v39 = vpack.c.bf16 %v2999_v48, %v2998_v47  ;;  %v8686_v9 = vpack.c.bf16 %v2973_v6, %v2972_v5  ;;  %v2987_v47 = vld [vmem:[#allocation10 + $0x7a8] sm:$0xff]  ;;  %v3008_v6 = vld [vmem:[#allocation10 + $0x850] sm:$0xff] }
 0x338   :  { %8649 = vmatpush3.bf16.msra.mxu1 %v8648_v45  ;;  %8641 = vmatpush3.bf16.msra.mxu0 %v8640_v13  ;;  %v2982_v13 = vld [vmem:[#allocation10 + $0x780] sm:$0xff] }
 0x339   :  { %8651 = vmatprep.subr.bf16.mxu1 %v8650_v63  ;;  %8675 = vmatprep.subr.bf16.mxu0 %v8674_v20  ;;  %v2970_v63 = vld [vmem:[#allocation10 + $0x720] sm:$0xff] }
 0x33a   :  { %v8682_v2 = vpack.c.bf16 %v2971_v0, %v2970_v63  ;;  %v3015_v63 = vld [vmem:[#allocation10 + $0x888] sm:$0xff] }
 0x33c   :  { %8653 = vmatpush3.bf16.msra.mxu1 %v8652_v7  ;;  %v8684_v7 = vpack.c.bf16 %v2955_v4, %v2954_v3  ;;  %v2990_v3 = vld [vmem:[#allocation10 + $0x7c0] sm:$0xff]  ;;  %v2991_v4 = vld [vmem:[#allocation10 + $0x7c8] sm:$0xff] }
 0x33d   :  { %8655 = vmatprep.subr.bf16.mxu1 %v8654_v11  ;;  %v2975_v11 = vld [vmem:[#allocation10 + $0x748] sm:$0xff]  ;;  %v8724_v8 = vpack.c.bf16 %v2991_v4, %v2990_v3 }
 0x33e   :  { %v8690_v14 = vpack.c.bf16 %v2975_v11, %v2974_v10  ;;  %v2992_v11 = vld [vmem:[#allocation10 + $0x7d0] sm:$0xff] }
 0x340   :  { %8657 = vmatpush3.bf16.msra.mxu1 %v8656_v16  ;;  %v2983_v16 = vld [vmem:[#allocation10 + $0x788] sm:$0xff] }
 0x341   :  { %8659 = vmatprep.subr.bf16.mxu1 %v8658_v21  ;;  %v3001_v21 = vld [vmem:[#allocation10 + $0x818] sm:$0xff]  ;;  %v8708_v23 = vpack.c.bf16 %v2983_v16, %v2982_v13 }
 0x342   :  { %v8710_v25 = vpack.c.bf16 %v3001_v21, %v3000_v18  ;;  %v3018_v18 = vld [vmem:[#allocation10 + $0x8a0] sm:$0xff]  ;;  %v3019_v21 = vld [vmem:[#allocation10 + $0x8a8] sm:$0xff] }
 0x344   :  { %8661 = vmatpush3.bf16.msra.mxu1 %v8660_v24  ;;  %v8692_v24 = vpack.c.bf16 %v2959_v17, %v2958_v15  ;;  %v3011_v17 = vld [vmem:[#allocation10 + $0x868] sm:$0xff] }
 0x345   :  { %8663 = vmatprep.subr.bf16.mxu1 %v8662_v29  ;;  %v2984_v29 = vld [vmem:[#allocation10 + $0x790] sm:$0xff] }
 0x346   :  { %v8712_v34 = vpack.c.bf16 %v2985_v30, %v2984_v29  ;;  %v3020_v29 = vld [vmem:[#allocation10 + $0x8b0] sm:$0xff]  ;;  %v3021_v30 = vld [vmem:[#allocation10 + $0x8b8] sm:$0xff] }
 0x348   :  { %8665 = vmatpush3.bf16.msra.mxu1 %v8664_v31 }
 0x349   :  { %8667 = vmatprep.subr.bf16.mxu1 %v8666_v41  ;;  %v3002_v41 = vld [vmem:[#allocation10 + $0x820] sm:$0xff] }
 0x34a   :  { %v8714_v37 = vpack.c.bf16 %v3003_v27, %v3002_v41  ;;  %v2997_v41 = vld [vmem:[#allocation10 + $0x7f8] sm:$0xff]  ;;  %v3022_v27 = vld [vmem:[#allocation10 + $0x8c0] sm:$0xff] }
 0x34c   :  { %8669 = vmatpush3.bf16.msra.mxu1 %v8668_v33  ;;  %v2978_v33 = vld [vmem:[#allocation10 + $0x760] sm:$0xff] }
 0x34d   :  { %8671 = vmatprep.subr.bf16.mxu1 %v8670_v42  ;;  %v8696_v42 = vpack.c.bf16 %v2961_v35, %v2960_v26  ;;  %v8698_v48 = vpack.c.bf16 %v2979_v38, %v2978_v33  ;;  %v3013_v26 = vld [vmem:[#allocation10 + $0x878] sm:$0xff]  ;;  %v2996_v35 = vld [vmem:[#allocation10 + $0x7f0] sm:$0xff] }
 0x34e   :  { %v8736_v33 = vpack.c.bf16 %v2997_v41, %v2996_v35 }
 0x350   :  { %8673 = vmatpush3.bf16.msra.mxu1 %v8672_v44  ;;  %v2986_v44 = vld [vmem:[#allocation10 + $0x7a0] sm:$0xff] }
 0x351   :  { %8707 = vmatprep.subr.bf16.mxu1 %v8706_v39  ;;  %v2963_v39 = vld [vmem:[#allocation10 + $0x6e8] sm:$0xff]  ;;  %v8716_v54 = vpack.c.bf16 %v2987_v47, %v2986_v44  ;;  %v3026_v47 = vld [vmem:[#allocation10 + $0x8e0] sm:$0xff] }
 0x3b6   :  { %v7634_v50 = vpop.f32.mrb[104].mxu1  ;;  %v9864_v51 = vpop.f32.mrb[112].mxu0 }
 0x3b7   :  { %v2168_v40 = vpop.f32.mrb[105].mxu1  ;;  %v2426_v52 = vpop.f32.mrb[113].mxu0 }
 0x3b8   :  { %3177 = vmatprep.mubr.f32.mxu1 %v2426_v52  ;;  %v2980_v52 = vld [vmem:[#allocation10 + $0x770] sm:$0xff] }
 0x3c6   :  { %v7653_v57 = vpop.f32.mrb[106].mxu1  ;;  %v9866_v59 = vpop.f32.mrb[114].mxu0 }
 0x3c7   :  { %v2254_v45 = vpop.f32.mrb[107].mxu1  ;;  %v2598_v46 = vpop.f32.mrb[115].mxu0 }
 0x3c8   :  { %3102 = vmatprep.mubr.f32.mxu0 %v2254_v45  ;;  %v8702_v45 = vpack.c.bf16 %v2981_v53, %v2980_v52 }
 0x3c9   :  { %3103 = vmatmul.mubr.f32.vlgmr.msra.gmra.mrb[118].mxu0 %v2168_v40  ;;  %v3005_v40 = vld [vmem:[#allocation10 + $0x838] sm:$0xff] }
 0x3ca   :  { %8677 = vmatpush3.bf16.msra.mxu0 %v8676_v58  ;;  %3107 = vmatprep.mubr.f32.mxu0 %v7653_v57  ;;  %v2988_v57 = vld [vmem:[#allocation10 + $0x7b0] sm:$0xff]  ;;  %v2989_v58 = vld [vmem:[#allocation10 + $0x7b8] sm:$0xff] }
 0x3cb   :  { %8679 = vmatprep.subr.bf16.mxu0 %v8678_v60  ;;  %v2965_v60 = vld [vmem:[#allocation10 + $0x6f8] sm:$0xff]  ;;  %v8720_v0 = vpack.c.bf16 %v2989_v58, %v2988_v57 }
 0x3cd   :  { %3108 = vmatmul.mubr.f32.gmra.mrb[120].mxu0 %v7634_v50  ;;  %v3004_v50 = vld [vmem:[#allocation10 + $0x830] sm:$0xff] }
 0x3ce   :  { %8681 = vmatpush3.bf16.msra.mxu0 %v8680_v1  ;;  %3252 = vmatprep.mubr.f32.mxu0 %v2598_v46  ;;  %v8718_v55 = vpack.c.bf16 %v3005_v40, %v3004_v50  ;;  %v3014_v46 = vld [vmem:[#allocation10 + $0x880] sm:$0xff]  ;;  %v8704_v1 = vpack.c.bf16 %v2965_v60, %v2964_v56  ;;  %v3028_v50 = vld [vmem:[#allocation10 + $0x8f0] sm:$0xff]  ;;  %v3029_v40 = vld [vmem:[#allocation10 + $0x8f8] sm:$0xff] }
 0x3cf   :  { %8683 = vmatprep.subr.bf16.mxu0 %v8682_v2  ;;  %v8722_v2 = vpack.c.bf16 %v3007_v62, %v3006_v61  ;;  %v8738_v5 = vpack.c.bf16 %v3015_v63, %v3014_v46  ;;  %v8766_v52 = vpack.c.bf16 %v3029_v40, %v3028_v50  ;;  %v6109_v61 = vld [vmem:[#allocation11 + $0x1] ss:$0 sm:$0xff]  ;;  %v4235_v50 = vld [vmem:[#allocation10 + $0x9a8] sm:$0xff]  ;;  %v3509_v40 = vld [vmem:[#allocation7 + $0x18] sm:$0xff] }
 0x3d2   :  { %8685 = vmatpush3.bf16.msra.mxu0 %v8684_v7  ;;  %v3009_v7 = vld [vmem:[#allocation10 + $0x858] sm:$0xff] }
 0x3d3   :  { %8687 = vmatprep.subr.bf16.mxu0 %v8686_v9  ;;  %v3016_v9 = vld [vmem:[#allocation10 + $0x890] sm:$0xff]  ;;  %v8726_v13 = vpack.c.bf16 %v3009_v7, %v3008_v6 }
 0x3d4   :  { %v8742_v16 = vpack.c.bf16 %v3017_v49, %v3016_v9 }
 0x3d6   :  { %8689 = vmatpush3.bf16.msra.mxu0 %v8688_v12  ;;  %v7672_v20 = vpop.f32.mrb[108].mxu1  ;;  %v9868_v28 = vpop.f32.mrb[116].mxu0  ;;  %v2993_v12 = vld [vmem:[#allocation10 + $0x7d8] sm:$0xff] }
 0x3d7   :  { %v2340_v31 = vpop.f32.mrb[109].mxu1  ;;  %8691 = vmatprep.subr.bf16.mxu0 %v8690_v14  ;;  %v2770_v36 = vpop.f32.mrb[117].mxu0  ;;  %v3010_v14 = vld [vmem:[#allocation10 + $0x860] sm:$0xff]  ;;  %v8728_v22 = vpack.c.bf16 %v2993_v12, %v2992_v11 }
 0x3d8   :  { %3178 = vmatmul.mubr.f32.vlgmr.msra.gmra.mrb[116].mxu1 %v2340_v31  ;;  %v8730_v19 = vpack.c.bf16 %v3011_v17, %v3010_v14 }
 0x3d9   :  { %3182 = vmatprep.mubr.f32.mxu1 %v9864_v51  ;;  %8709 = vmatpush3.bf16.msra.mxu1 %v8708_v23  ;;  %v8700_v51 = vpack.c.bf16 %v2963_v39, %v2962_v43  ;;  %v2994_v23 = vld [vmem:[#allocation10 + $0x7e0] sm:$0xff] }
 0x3da   :  { %8693 = vmatpush3.bf16.msra.mxu0 %v8692_v24  ;;  %8711 = vmatprep.subr.bf16.mxu1 %v8710_v25  ;;  %v8746_v24 = vpack.c.bf16 %v3019_v21, %v3018_v18  ;;  %v3012_v25 = vld [vmem:[#allocation10 + $0x870] sm:$0xff] }
 0x3db   :  { %8695 = vmatprep.subr.bf16.mxu0 %v8694_v32  ;;  %v8734_v32 = vpack.c.bf16 %v3013_v26, %v3012_v25 }
 0x3dc   :  { %3183 = vmatmul.mubr.f32.gmra.mrb[118].mxu1 %v7672_v20  ;;  %v2995_v20 = vld [vmem:[#allocation10 + $0x7e8] sm:$0xff] }
 0x3dd   :  { %8713 = vmatpush3.bf16.msra.mxu1 %v8712_v34  ;;  %3327 = vmatprep.mubr.f32.mxu1 %v2770_v36  ;;  %v8732_v31 = vpack.c.bf16 %v2995_v20, %v2994_v23  ;;  %v3023_v36 = vld [vmem:[#allocation10 + $0x8c8] sm:$0xff]  ;;  %v3024_v34 = vld [vmem:[#allocation10 + $0x8d0] sm:$0xff] }
 0x3de   :  { %8697 = vmatpush3.bf16.msra.mxu0 %v8696_v42  ;;  %8715 = vmatprep.subr.bf16.mxu1 %v8714_v37  ;;  %v8754_v38 = vpack.c.bf16 %v3023_v36, %v3022_v27  ;;  %v3025_v42 = vld [vmem:[#allocation10 + $0x8d8] sm:$0xff]  ;;  %v4214_v27 = vld [vmem:[#allocation10 + $0x900] sm:$0xff]  ;;  %v4215_v36 = vld [vmem:[#allocation10 + $0x908] sm:$0xff] }
 0x3df   :  { %8699 = vmatprep.subr.bf16.mxu0 %v8698_v48  ;;  %v8758_v44 = vpack.c.bf16 %v3025_v42, %v3024_v34  ;;  %v3027_v48 = vld [vmem:[#allocation10 + $0x8e8] sm:$0xff]  ;;  %v4025_v42 = vld [vmem:[#allocation7 + $0x78] sm:$0xff] }
 0x3e0   :  { %v8762_v39 = vpack.c.bf16 %v3027_v48, %v3026_v47  ;;  %v3422_v34 = vld [vmem:[#allocation7 + $0x8] sm:$0xff]  ;;  %v4216_v47 = vld [vmem:[#allocation10 + $0x910] sm:$0xff]  ;;  %v4217_v48 = vld [vmem:[#allocation10 + $0x918] sm:$0xff] }
 0x3e1   :  { %8717 = vmatpush3.bf16.msra.mxu1 %v8716_v54 }
 0x3e2   :  { %8701 = vmatpush3.bf16.msra.mxu0 %v8700_v51  ;;  %8719 = vmatprep.subr.bf16.mxu1 %v8718_v55  ;;  %v3421_v51 = vld [vmem:[#allocation7] sm:$0xff] }
 0x3e3   :  { %8703 = vmatprep.subr.bf16.mxu0 %v8702_v45 }
 0x3e5   :  { %8721 = vmatpush3.bf16.msra.mxu1 %v8720_v0 }
 0x3e6   :  { %8705 = vmatpush3.bf16.msra.mxu0 %v8704_v1  ;;  %v7710_v10 = vpop.f32.mrb[110].mxu1  ;;  %8723 = vmatprep.subr.bf16.mxu1 %v8722_v2 }
 0x3e7   :  { %v2512_v15 = vpop.f32.mrb[111].mxu1  ;;  %8739 = vmatprep.subr.bf16.mxu0 %v8738_v5 }
 0x3e9   :  { %3253 = vmatmul.mubr.f32.vlgmr.msra.gmra.mrb[122].mxu0 %v2512_v15  ;;  %8725 = vmatpush3.bf16.msra.mxu1 %v8724_v8 }
 0x3ea   :  { %3257 = vmatprep.mubr.f32.mxu0 %v9866_v59  ;;  %8741 = vmatpush3.bf16.msra.mxu0 %v8738_v5  ;;  %v8750_v59 = vpack.c.bf16 %v3021_v30, %v3020_v29  ;;  %v4230_v30 = vld [vmem:[#allocation10 + $0x980] sm:$0xff] }
 0x3eb   :  { %8727 = vmatprep.subr.bf16.mxu1 %v8726_v13  ;;  %8743 = vmatprep.subr.bf16.mxu0 %v8742_v16 }
 0x3ed   :  { %3258 = vmatmul.mubr.f32.gmra.mrb[124].mxu0 %v7710_v10  ;;  %8729 = vmatpush3.bf16.msra.mxu1 %v8728_v22 }
 0x3ee   :  { %8745 = vmatpush3.bf16.msra.mxu0 %v8742_v16  ;;  %8731 = vmatprep.subr.bf16.mxu1 %v8730_v19 }
 0x3ef   :  { %8747 = vmatprep.subr.bf16.mxu0 %v8746_v24 }
 0x3f1   :  { %8733 = vmatpush3.bf16.msra.mxu1 %v8732_v31  ;;  %v4231_v31 = vld [vmem:[#allocation10 + $0x988] sm:$0xff] }
 0x3f2   :  { %8749 = vmatpush3.bf16.msra.mxu0 %v8746_v24  ;;  %8735 = vmatprep.subr.bf16.mxu1 %v8734_v32 }
 0x3f3   :  { %8751 = vmatprep.subr.bf16.mxu0 %v8750_v59 }
 0x3f5   :  { %8737 = vmatpush3.bf16.msra.mxu1 %v8736_v33  ;;  %v4232_v33 = vld [vmem:[#allocation10 + $0x990] sm:$0xff] }
 0x3f6   :  { %v7748_v37 = vpop.f32.mrb[112].mxu1  ;;  %8753 = vmatpush3.bf16.msra.mxu0 %v8750_v59  ;;  %v8806_v59 = vpack.c.bf16 %v4231_v31, %v4230_v30  ;;  %v4264_v31 = vld [vmem:[#allocation10 + $0xa90] sm:$0xff] }
 0x3f7   :  { %v2684_v43 = vpop.f32.mrb[113].mxu1  ;;  %8755 = vmatprep.subr.bf16.mxu0 %v8754_v38 }
 0x3f8   :  { %3328 = vmatmul.mubr.f32.vlgmr.msra.gmra.mrb[120].mxu1 %v2684_v43  ;;  %v8808_v43 = vpack.c.bf16 %v4215_v36, %v4214_v27  ;;  %v4248_v36 = vld [vmem:[#allocation10 + $0xa10] sm:$0xff] }
 0x3f9   :  { %3332 = vmatprep.mubr.f32.mxu1 %v9868_v28  ;;  %v4024_v28 = vld [vmem:[#allocation7 + $0x70] sm:$0xff] }
 0x3fa   :  { %8757 = vmatpush3.bf16.msra.mxu0 %v8754_v38  ;;  %v4233_v38 = vld [vmem:[#allocation10 + $0x998] sm:$0xff] }
 0x3fb   :  { %8759 = vmatprep.subr.bf16.mxu0 %v8758_v44 }
 0x3fc   :  { %3333 = vmatmul.mubr.f32.gmra.mrb[122].mxu1 %v7748_v37  ;;  %v3508_v37 = vld [vmem:[#allocation7 + $0x10] sm:$0xff] }
 0x3fd   :  { %7826 = vmatprep.mubr.msk.f32.mxu1 %vm3423_vm9, %v3421_v51  ;;  %v4218_v51 = vld [vmem:[#allocation10 + $0x920] sm:$0xff] }
 0x3fe   :  { %8761 = vmatpush3.bf16.msra.mxu0 %v8758_v44  ;;  %v8810_v44 = vpack.c.bf16 %v4233_v38, %v4232_v33  ;;  %v4249_v33 = vld [vmem:[#allocation10 + $0xa18] sm:$0xff]  ;;  %v4266_v38 = vld [vmem:[#allocation10 + $0xaa0] sm:$0xff] }
 0x3ff   :  { %8763 = vmatprep.subr.bf16.mxu0 %v8762_v39 }
 0x402   :  { %8765 = vmatpush3.bf16.msra.mxu0 %v8762_v39  ;;  %v4234_v39 = vld [vmem:[#allocation10 + $0x9a0] sm:$0xff] }
 0x403   :  { %8767 = vmatprep.subr.bf16.mxu0 %v8766_v52 }
 0x406   :  { %v7786_v53 = vpop.f32.mrb[114].mxu1  ;;  %8769 = vmatpush3.bf16.msra.mxu0 %v8766_v52  ;;  %v3594_v52 = vld [vmem:[#allocation7 + $0x20] sm:$0xff] }
 0x407   :  { %v2856_v54 = vpop.f32.mrb[115].mxu1 }
 0x408   :  { %7819 = vmatprep.mubr.f32.mxu0 %v2856_v54  ;;  %v8814_v54 = vpack.c.bf16 %v4235_v50, %v4234_v39  ;;  %v4252_v50 = vld [vmem:[#allocation10 + $0xa30] sm:$0xff] }
 0x409   :  { %7820 = vmatmul.mubr.f32.vlgmr.msra.gmra.mrb[126].mxu0 %v7786_v53  ;;  %v8812_v53 = vpack.c.bf16 %v4217_v48, %v4216_v47  ;;  %v4269_v47 = vld [vmem:[#allocation10 + $0xab8] sm:$0xff] }
 0x40a   :  { %7875 = vmatprep.mubr.msk.f32.mxu0 %vm3423_vm9, %v4024_v28  ;;  %v4219_v28 = vld [vmem:[#allocation10 + $0x928] sm:$0xff] }
 0x49c   :  { %v7022_v55 = vpop.f32.mrb[118].mxu0 }
 0x49d   :  { %v7023_v56 = vpop.f32.mrb[119].mxu0 }
 0x49e   :  { %v7024_v57 = vadd.f32 %v7023_v56, %v7022_v55  ;;  %v4236_v55 = vld [vmem:[#allocation10 + $0x9b0] sm:$0xff]  ;;  %v4237_v56 = vld [vmem:[#allocation10 + $0x9b8] sm:$0xff] }
 0x4a0   :  { %v7025_v58 = vpop.f32.mrb[120].mxu0  ;;  %v3105_v63 = vadd.f32 %v7024_v57, %v6109_v61  ;;  %v3595_v57 = vld [vmem:[#allocation7 + $0x28] sm:$0xff] }
 0x4a1   :  { %v7026_v45 = vpop.f32.mrb[121].mxu0 }
 0x4a2   :  { %v7027_v60 = vadd.f32 %v7026_v45, %v7025_v58  ;;  %v3680_v58 = vld [vmem:[#allocation7 + $0x30] sm:$0xff]  ;;  %v8816_v45 = vpack.c.bf16 %v4219_v28, %v4218_v51  ;;  %v4254_v28 = vld [vmem:[#allocation10 + $0xa40] sm:$0xff] }
 0x4a4   :  { %v3110_v4 = vadd.f32 %v7027_v60, %v6109_v61  ;;  %v8818_v60 = vpack.c.bf16 %v4237_v56, %v4236_v55  ;;  %v4220_v61 = vld [vmem:[#allocation10 + $0x930] sm:$0xff]  ;;  %v4255_v55 = vld [vmem:[#allocation10 + $0xa48] sm:$0xff] }
 0x4a5   :  { %v8856_v56 = vpack.c.bf16 %v4255_v55, %v4254_v28  ;;  %v4284_v28 = vld [vmem:[#allocation10 + $0xb30] sm:$0xff]  ;;  %v4285_v55 = vld [vmem:[#allocation10 + $0xb38] sm:$0xff] }
 0x4ab   :  { %v7060_v62 = vpop.f32.mrb[116].mxu1 }
 0x4ac   :  { %v7061_v46 = vpop.f32.mrb[117].mxu1 }
 0x4ad   :  { %v7062_v0 = vadd.f32 %v7061_v46, %v7060_v62  ;;  %v4221_v62 = vld [vmem:[#allocation10 + $0x938] sm:$0xff]  ;;  %v4238_v46 = vld [vmem:[#allocation10 + $0x9c0] sm:$0xff] }
 0x4af   :  { %v3180_v1 = vadd.f32 %v7062_v0, %v3105_v63  ;;  %v7063_v2 = vpop.f32.mrb[118].mxu1  ;;  %v4239_v63 = vld [vmem:[#allocation10 + $0x9c8] sm:$0xff]  ;;  %v3681_v0 = vld [vmem:[#allocation7 + $0x38] sm:$0xff] }
 0x4b0   :  { %v7064_v3 = vpop.f32.mrb[119].mxu1 }
 0x4b1   :  { %v7065_v5 = vadd.f32 %v7064_v3, %v7063_v2  ;;  %v8820_v2 = vpack.c.bf16 %v4221_v62, %v4220_v61  ;;  %v8822_v3 = vpack.c.bf16 %v4239_v63, %v4238_v46  ;;  %v4273_v61 = vld [vmem:[#allocation10 + $0xad8] sm:$0xff]  ;;  %v4228_v62 = vld [vmem:[#allocation10 + $0x970] sm:$0xff] }
 0x4b2   :  { %v4229_v46 = vld [vmem:[#allocation10 + $0x978] sm:$0xff] }
 0x4b3   :  { %v3185_v6 = vadd.f32 %v7065_v5, %v3110_v4  ;;  %v4222_v4 = vld [vmem:[#allocation10 + $0x940] sm:$0xff]  ;;  %v4223_v5 = vld [vmem:[#allocation10 + $0x948] sm:$0xff] }
 0x4bc   :  { %v7098_v7 = vpop.f32.mrb[122].mxu0 }
 0x4bd   :  { %v7099_v9 = vpop.f32.mrb[123].mxu0 }
 0x4be   :  { %v7100_v49 = vadd.f32 %v7099_v9, %v7098_v7  ;;  %v4241_v7 = vld [vmem:[#allocation10 + $0x9d8] sm:$0xff]  ;;  %v3767_v9 = vld [vmem:[#allocation7 + $0x48] sm:$0xff] }
 0x4c0   :  { %v3255_v8 = vadd.f32 %v7100_v49, %v3180_v1  ;;  %v7101_v10 = vpop.f32.mrb[124].mxu0  ;;  %v3766_v1 = vld [vmem:[#allocation7 + $0x40] sm:$0xff]  ;;  %v3852_v49 = vld [vmem:[#allocation7 + $0x50] sm:$0xff] }
 0x4c1   :  { %v7102_v11 = vpop.f32.mrb[125].mxu0 }
 0x4c2   :  { %v7103_v12 = vadd.f32 %v7102_v11, %v7101_v10  ;;  %v4224_v11 = vld [vmem:[#allocation10 + $0x950] sm:$0xff] }
 0x4c4   :  { %v3260_v15 = vadd.f32 %v7103_v12, %v3185_v6  ;;  %v4240_v6 = vld [vmem:[#allocation10 + $0x9d0] sm:$0xff]  ;;  %v4225_v12 = vld [vmem:[#allocation10 + $0x958] sm:$0xff] }
 0x4c5   :  { %v8826_v10 = vpack.c.bf16 %v4241_v7, %v4240_v6  ;;  %v4294_v6 = vld [vmem:[#allocation10 + $0xb80] sm:$0xff] }
 0x4cb   :  { %v7136_v13 = vpop.f32.mrb[120].mxu1 }
 0x4cc   :  { %v7137_v16 = vpop.f32.mrb[121].mxu1 }
 0x4cd   :  { %v7138_v14 = vadd.f32 %v7137_v16, %v7136_v13  ;;  %v4243_v13 = vld [vmem:[#allocation10 + $0x9e8] sm:$0xff]  ;;  %v3853_v16 = vld [vmem:[#allocation7 + $0x58] sm:$0xff] }
 0x4cf   :  { %v7139_v17 = vpop.f32.mrb[122].mxu1  ;;  %v3330_v18 = vadd.f32 %v7138_v14, %v3255_v8  ;;  %v8824_v8 = vpack.c.bf16 %v4223_v5, %v4222_v4  ;;  %v3938_v14 = vld [vmem:[#allocation7 + $0x60] sm:$0xff]  ;;  %v4275_v5 = vld [vmem:[#allocation10 + $0xae8] sm:$0xff] }
 0x4d0   :  { %v7140_v21 = vpop.f32.mrb[123].mxu1  ;;  %v4274_v4 = vld [vmem:[#allocation10 + $0xae0] sm:$0xff] }
 0x4d1   :  { %v7141_v22 = vadd.f32 %v7140_v21, %v7139_v17  ;;  %v4262_v17 = vld [vmem:[#allocation10 + $0xa80] sm:$0xff]  ;;  %v4263_v21 = vld [vmem:[#allocation10 + $0xa88] sm:$0xff]  ;;  %v8862_v7 = vpack.c.bf16 %v4275_v5, %v4274_v4 }
 0x4d3   :  { %v3335_v19 = vadd.f32 %v7141_v22, %v3260_v15  ;;  %v4242_v15 = vld [vmem:[#allocation10 + $0x9e0] sm:$0xff] }
 0x4d4   :  { %v8830_v22 = vpack.c.bf16 %v4243_v13, %v4242_v15  ;;  %v4277_v15 = vld [vmem:[#allocation10 + $0xaf8] sm:$0xff] }
 0x4dc   :  { %v7821_v23 = vpop.f32.mrb[126].mxu0 }
 0x4dd   :  { %v3410_v20 = vadd.f32 %v7821_v23, %v3335_v19  ;;  %v3404_v24 = vpop.f32.mrb[127].mxu0  ;;  %v4226_v19 = vld [vmem:[#allocation10 + $0x960] sm:$0xff]  ;;  %v4227_v23 = vld [vmem:[#allocation10 + $0x968] sm:$0xff] }
 0x4de   :  { %v3405_v25 = vadd.f32 %v3404_v24, %v3330_v18  ;;  %v8828_v18 = vpack.c.bf16 %v4225_v12, %v4224_v11  ;;  %v4110_v24 = vld [vmem:[#allocation7 + $0x80] sm:$0xff]  ;;  %v8832_v30 = vpack.c.bf16 %v4227_v23, %v4226_v19  ;;  %v4276_v12 = vld [vmem:[#allocation10 + $0xaf0] sm:$0xff] }
 0x4df   :  { %vm3414_vm10 = vcmp.ge.f32.partialorder %v3410_v20, 0.0  ;;  %v3416_v26 = vmul.f32 0.2, %v3410_v20  ;;  %v8866_v13 = vpack.c.bf16 %v4277_v15, %v4276_v12  ;;  %v4333_v12 = vld [vmem:[#allocation10 + $0xcb8] sm:$0xff] }
 0x4e0   :  { %vm3413_vm11 = vcmp.ge.f32.partialorder %v3405_v25, 0.0  ;;  %v3415_v29 = vmul.f32 0.2, %v3405_v25 }
 0x4e1   :  { %v3418_v32 = vsel %vm3414_vm10, %v3410_v20, %v3416_v26  ;;  %v3939_v20 = vld [vmem:[#allocation7 + $0x68] sm:$0xff]  ;;  %v4246_v26 = vld [vmem:[#allocation10 + $0xa00] sm:$0xff] }
 0x4e2   :  { %3420 = vst [vmem:[%s10023_s8 + $0x8] sm:$0xff] %v3418_v32  ;;  %v3417_v35 = vsel %vm3413_vm11, %v3405_v25, %v3415_v29  ;;  %v8838_v25 = vpack.c.bf16 %v4263_v21, %v4262_v17  ;;  %v4247_v29 = vld [vmem:[#allocation10 + $0xa08] sm:$0xff] }
 0x4e3   :  { %3419 = vst [vmem:[%s10023_s8] sm:$0xff] %v3417_v35  ;;  %v9881_v41 = vpack.c.bf16 %v3418_v32, %v3417_v35  ;;  %v4265_v32 = vld [vmem:[#allocation10 + $0xa98] sm:$0xff]  ;;  %v4111_v35 = vld [vmem:[#allocation7 + $0x88] sm:$0xff] }
 0x4e4   :  { %v8842_v27 = vpack.c.bf16 %v4265_v32, %v4264_v31  ;;  %v4327_v21 = vld [vmem:[#allocation10 + $0xc88] sm:$0xff] }
 0x4e5   :  { %8771 = vmatprep.subr.bf16.mxu1 %v9881_v41  ;;  %8799 = vmatprep.subr.bf16.mxu0 %v9881_v41 }
 0x4e6   :  { %8773 = vmatpush3.bf16.msra.mxu1 %v9881_v41  ;;  %8801 = vmatpush3.bf16.msra.mxu0 %v9881_v41 }
 0x4e7   :  { %8775 = vmatprep.subr.bf16.mxu1 %v9881_v41  ;;  %8807 = vmatprep.subr.bf16.mxu0 %v8806_v59  ;;  %v8840_v59 = vpack.c.bf16 %v4247_v29, %v4246_v26  ;;  %v4296_v29 = vld [vmem:[#allocation10 + $0xb90] sm:$0xff] }
 0x4e9   :  { %7827 = vmatmul.mubr.msk.f32.vlgmr.msra.gmra.mrb[124].mxu1 %vm3423_vm9, %v3422_v34  ;;  %7876 = vmatmul.mubr.msk.f32.vlgmr.msra.gmra.mrb[128].mxu0 %vm3423_vm9, %v4025_v42  ;;  %v4267_v34 = vld [vmem:[#allocation10 + $0xaa8] sm:$0xff]  ;;  %v8844_v42 = vpack.c.bf16 %v4249_v33, %v4248_v36  ;;  %v4281_v36 = vld [vmem:[#allocation10 + $0xb18] sm:$0xff]  ;;  %v4298_v33 = vld [vmem:[#allocation10 + $0xba0] sm:$0xff] }
 0x4ea   :  { %8777 = vmatpush3.bf16.msra.mxu1 %v9881_v41  ;;  %7833 = vmatprep.mubr.msk.f32.mxu1 %vm3423_vm9, %v3508_v37  ;;  %v8846_v37 = vpack.c.bf16 %v4267_v34, %v4266_v38  ;;  %v4299_v38 = vld [vmem:[#allocation10 + $0xba8] sm:$0xff] }
 0x4eb   :  { %8779 = vmatprep.subr.bf16.mxu1 %v9881_v41  ;;  %8809 = vmatpush3.bf16.msra.mxu0 %v8808_v43  ;;  %v4250_v43 = vld [vmem:[#allocation10 + $0xa20] sm:$0xff] }
 0x4ec   :  { %8811 = vmatprep.subr.bf16.mxu0 %v8810_v44  ;;  %v4251_v44 = vld [vmem:[#allocation10 + $0xa28] sm:$0xff] }
 0x4ed   :  { %7834 = vmatmul.mubr.msk.f32.vlgmr.msra.gmra.mrb[126].mxu1 %vm3423_vm9, %v3509_v40  ;;  %v8848_v48 = vpack.c.bf16 %v4251_v44, %v4250_v43  ;;  %v4253_v40 = vld [vmem:[#allocation10 + $0xa38] sm:$0xff]  ;;  %v8878_v44 = vpack.c.bf16 %v4299_v38, %v4298_v33  ;;  %v4318_v38 = vld [vmem:[#allocation10 + $0xc40] sm:$0xff] }
 0x4ee   :  { %8781 = vmatpush3.bf16.msra.mxu1 %v9881_v41  ;;  %7840 = vmatprep.mubr.msk.f32.mxu1 %vm3423_vm9, %v3594_v52  ;;  %v4270_v52 = vld [vmem:[#allocation10 + $0xac0] sm:$0xff] }
 0x4ef   :  { %8783 = vmatprep.subr.bf16.mxu1 %v9881_v41  ;;  %8813 = vmatpush3.bf16.msra.mxu0 %v8812_v53  ;;  %v4271_v53 = vld [vmem:[#allocation10 + $0xac8] sm:$0xff] }
 0x4f0   :  { %8815 = vmatprep.subr.bf16.mxu0 %v8814_v54  ;;  %v8852_v54 = vpack.c.bf16 %v4253_v40, %v4252_v50  ;;  %v8854_v51 = vpack.c.bf16 %v4271_v53, %v4270_v52  ;;  %v4301_v50 = vld [vmem:[#allocation10 + $0xbb8] sm:$0xff]  ;;  %v4328_v40 = vld [vmem:[#allocation10 + $0xc90] sm:$0xff] }
 0x4f1   :  { %7841 = vmatmul.mubr.msk.f32.vlgmr.msra.gmra.mrb[128].mxu1 %vm3423_vm9, %v3595_v57  ;;  %v4244_v57 = vld [vmem:[#allocation10 + $0x9f0] sm:$0xff]  ;;  %v4329_v52 = vld [vmem:[#allocation10 + $0xc98] sm:$0xff] }
 0x4f2   :  { %8785 = vmatpush3.bf16.msra.mxu1 %v9881_v41  ;;  %7847 = vmatprep.mubr.msk.f32.mxu1 %vm3423_vm9, %v3680_v58  ;;  %v4245_v58 = vld [vmem:[#allocation10 + $0x9f8] sm:$0xff] }
 0x4f3   :  { %8787 = vmatprep.subr.bf16.mxu1 %v9881_v41  ;;  %8817 = vmatpush3.bf16.msra.mxu0 %v8816_v45  ;;  %v4272_v45 = vld [vmem:[#allocation10 + $0xad0] sm:$0xff] }
 0x4f4   :  { %8819 = vmatprep.subr.bf16.mxu0 %v8818_v60  ;;  %v8834_v60 = vpack.c.bf16 %v4245_v58, %v4244_v57  ;;  %v8858_v63 = vpack.c.bf16 %v4273_v61, %v4272_v45  ;;  %v4312_v58 = vld [vmem:[#allocation10 + $0xc10] sm:$0xff]  ;;  %v4313_v45 = vld [vmem:[#allocation10 + $0xc18] sm:$0xff]  ;;  %v8906_v61 = vpack.c.bf16 %v4329_v52, %v4328_v40 }
 0x4f5   :  { %7848 = vmatmul.mubr.msk.f32.vlgmr.msra.gmra.mrb[130].mxu1 %vm3423_vm9, %v3681_v0  ;;  %v8836_v0 = vpack.c.bf16 %v4229_v46, %v4228_v62  ;;  %v4303_v62 = vld [vmem:[#allocation10 + $0xbc8] sm:$0xff]  ;;  %v4330_v46 = vld [vmem:[#allocation10 + $0xca0] sm:$0xff] }
 0x4f6   :  { %8789 = vmatpush3.bf16.msra.mxu1 %v9881_v41  ;;  %7854 = vmatprep.mubr.msk.f32.mxu1 %vm3423_vm9, %v3766_v1  ;;  %v4256_v1 = vld [vmem:[#allocation10 + $0xa50] sm:$0xff] }
 0x4f7   :  { %8791 = vmatprep.subr.bf16.mxu1 %v9881_v41  ;;  %8821 = vmatpush3.bf16.msra.mxu0 %v8820_v2  ;;  %v4257_v2 = vld [vmem:[#allocation10 + $0xa58] sm:$0xff] }
 0x4f8   :  { %8823 = vmatprep.subr.bf16.mxu0 %v8822_v3  ;;  %v8860_v3 = vpack.c.bf16 %v4257_v2, %v4256_v1  ;;  %v8908_v1 = vpack.c.bf16 %v4313_v45, %v4312_v58  ;;  %v4286_v2 = vld [vmem:[#allocation10 + $0xb40] sm:$0xff] }
 0x4f9   :  { %7855 = vmatmul.mubr.msk.f32.vlgmr.msra.gmra.mrb[132].mxu1 %vm3423_vm9, %v3767_v9  ;;  %v4295_v9 = vld [vmem:[#allocation10 + $0xb88] sm:$0xff] }
 0x4fa   :  { %8793 = vmatpush3.bf16.msra.mxu1 %v9881_v41  ;;  %7861 = vmatprep.mubr.msk.f32.mxu1 %vm3423_vm9, %v3852_v49  ;;  %v4258_v49 = vld [vmem:[#allocation10 + $0xa60] sm:$0xff] }
 0x4fb   :  { %8795 = vmatprep.subr.bf16.mxu1 %v9881_v41  ;;  %8825 = vmatpush3.bf16.msra.mxu0 %v8824_v8  ;;  %v4259_v8 = vld [vmem:[#allocation10 + $0xa68] sm:$0xff] }
 0x4fc   :  { %8827 = vmatprep.subr.bf16.mxu0 %v8826_v10  ;;  %v8870_v10 = vpack.c.bf16 %v4295_v9, %v4294_v6  ;;  %v8864_v11 = vpack.c.bf16 %v4259_v8, %v4258_v49  ;;  %v4315_v9 = vld [vmem:[#allocation10 + $0xc28] sm:$0xff]  ;;  %v4304_v49 = vld [vmem:[#allocation10 + $0xbd0] sm:$0xff] }
 0x4fd   :  { %7862 = vmatmul.mubr.msk.f32.vlgmr.msra.gmra.mrb[134].mxu1 %vm3423_vm9, %v3853_v16  ;;  %v4260_v16 = vld [vmem:[#allocation10 + $0xa70] sm:$0xff] }
 0x4fe   :  { %8797 = vmatpush3.bf16.msra.mxu1 %v9881_v41  ;;  %7868 = vmatprep.mubr.msk.f32.mxu1 %vm3423_vm9, %v3938_v14  ;;  %v4261_v14 = vld [vmem:[#allocation10 + $0xa78] sm:$0xff] }
 0x4ff   :  { %8803 = vmatprep.subr.bf16.mxu1 %v9881_v41  ;;  %8829 = vmatpush3.bf16.msra.mxu0 %v8828_v18  ;;  %v8868_v17 = vpack.c.bf16 %v4261_v14, %v4260_v16  ;;  %v4326_v18 = vld [vmem:[#allocation10 + $0xc80] sm:$0xff]  ;;  %v4288_v16 = vld [vmem:[#allocation10 + $0xb50] sm:$0xff]  ;;  %v4289_v14 = vld [vmem:[#allocation10 + $0xb58] sm:$0xff] }
 0x500   :  { %8831 = vmatprep.subr.bf16.mxu0 %v8830_v22  ;;  %v8902_v22 = vpack.c.bf16 %v4327_v21, %v4326_v18 }
 0x501   :  { %7869 = vmatmul.mubr.msk.f32.vlgmr.msra.gmra.mrb[136].mxu1 %vm3423_vm9, %v3939_v20 }
 0x502   :  { %8805 = vmatpush3.bf16.msra.mxu1 %v9881_v41  ;;  %7882 = vmatprep.mubr.msk.f32.mxu1 %vm3423_vm9, %v4110_v24  ;;  %v4268_v41 = vld [vmem:[#allocation10 + $0xab0] sm:$0xff]  ;;  %v4278_v24 = vld [vmem:[#allocation10 + $0xb00] sm:$0xff] }
 0x503   :  { %8839 = vmatprep.subr.bf16.mxu1 %v8838_v25  ;;  %8833 = vmatpush3.bf16.msra.mxu0 %v8832_v30  ;;  %v8850_v39 = vpack.c.bf16 %v4269_v47, %v4268_v41  ;;  %v4279_v25 = vld [vmem:[#allocation10 + $0xb08] sm:$0xff]  ;;  %v4297_v30 = vld [vmem:[#allocation10 + $0xb98] sm:$0xff]  ;;  %v4310_v47 = vld [vmem:[#allocation10 + $0xc00] sm:$0xff] }
 0x504   :  { %8835 = vmatprep.subr.bf16.mxu0 %v8834_v60  ;;  %v8872_v32 = vpack.c.bf16 %v4279_v25, %v4278_v24  ;;  %v4283_v41 = vld [vmem:[#allocation10 + $0xb28] sm:$0xff]  ;;  %v4302_v60 = vld [vmem:[#allocation10 + $0xbc0] sm:$0xff] }
 0x505   :  { %7883 = vmatmul.mubr.msk.f32.vlgmr.msra.gmra.mrb[138].mxu1 %vm3423_vm9, %v4111_v35  ;;  %v8886_v5 = vpack.c.bf16 %v4303_v62, %v4302_v60  ;;  %v4307_v25 = vld [vmem:[#allocation10 + $0xbe8] sm:$0xff]  ;;  %v4322_v62 = vld [vmem:[#allocation10 + $0xc60] sm:$0xff] }
 0x506   :  { %8841 = vmatpush3.bf16.msra.mxu1 %v8840_v59  ;;  %v8874_v59 = vpack.c.bf16 %v4297_v30, %v4296_v29  ;;  %v4334_v29 = vld [vmem:[#allocation10 + $0xcc0] sm:$0xff]  ;;  %v4335_v30 = vld [vmem:[#allocation10 + $0xcc8] sm:$0xff] }
 0x507   :  { %8843 = vmatprep.subr.bf16.mxu1 %v8842_v27  ;;  %8837 = vmatpush3.bf16.msra.mxu0 %v8836_v0  ;;  %v4280_v27 = vld [vmem:[#allocation10 + $0xb10] sm:$0xff]  ;;  %v8884_v0 = vpack.c.bf16 %v4285_v55, %v4284_v28  ;;  %v8918_v33 = vpack.c.bf16 %v4335_v30, %v4334_v29  ;;  %v4339_v55 = vld [vmem:[#allocation10 + $0xce8] sm:$0xff]  ;;  %v5351_v30 = vld [vmem:[#allocation8 + $0x70] sm:$0xff] }
 0x508   :  { %8871 = vmatprep.subr.bf16.mxu0 %v8870_v10  ;;  %v4305_v10 = vld [vmem:[#allocation10 + $0xbd8] sm:$0xff]  ;;  %v4749_v29 = vld [vmem:[#allocation8] sm:$0xff] }
 0x509   :  { %v8890_v18 = vpack.c.bf16 %v4305_v10, %v4304_v49  ;;  %v4346_v49 = vld [vmem:[#allocation10 + $0xd20] sm:$0xff]  ;;  %v4347_v10 = vld [vmem:[#allocation10 + $0xd28] sm:$0xff] }
 0x50a   :  { %8845 = vmatpush3.bf16.msra.mxu1 %v8844_v42  ;;  %v8876_v42 = vpack.c.bf16 %v4281_v36, %v4280_v27 }
 0x50b   :  { %8847 = vmatprep.subr.bf16.mxu1 %v8846_v37  ;;  %v4282_v37 = vld [vmem:[#allocation10 + $0xb20] sm:$0xff] }
 0x50e   :  { %8849 = vmatpush3.bf16.msra.mxu1 %v8848_v48  ;;  %v4311_v48 = vld [vmem:[#allocation10 + $0xc08] sm:$0xff] }
 0x50f   :  { %8851 = vmatprep.subr.bf16.mxu1 %v8850_v39  ;;  %v4300_v39 = vld [vmem:[#allocation10 + $0xbb0] sm:$0xff] }
 0x510   :  { %v8882_v57 = vpack.c.bf16 %v4301_v50, %v4300_v39  ;;  %v4293_v39 = vld [vmem:[#allocation10 + $0xb78] sm:$0xff] }
 0x512   :  { %8853 = vmatpush3.bf16.msra.mxu1 %v8852_v54  ;;  %v8880_v54 = vpack.c.bf16 %v4283_v41, %v4282_v37 }
 0x513   :  { %8855 = vmatprep.subr.bf16.mxu1 %v8854_v51  ;;  %v8904_v51 = vpack.c.bf16 %v4311_v48, %v4310_v47  ;;  %v4292_v48 = vld [vmem:[#allocation10 + $0xb70] sm:$0xff] }
 0x514   :  { %v8900_v58 = vpack.c.bf16 %v4293_v39, %v4292_v48 }
 0x516   :  { %8857 = vmatpush3.bf16.msra.mxu1 %v8856_v56 }
 0x517   :  { %8859 = vmatprep.subr.bf16.mxu1 %v8858_v63  ;;  %v4331_v63 = vld [vmem:[#allocation10 + $0xca8] sm:$0xff] }
 0x518   :  { %v8910_v6 = vpack.c.bf16 %v4331_v63, %v4330_v46  ;;  %v4323_v46 = vld [vmem:[#allocation10 + $0xc68] sm:$0xff]  ;;  %v4340_v63 = vld [vmem:[#allocation10 + $0xcf0] sm:$0xff] }
 0x51a   :  { %8861 = vmatpush3.bf16.msra.mxu1 %v8860_v3  ;;  %v4287_v3 = vld [vmem:[#allocation10 + $0xb48] sm:$0xff] }
 0x51b   :  { %8863 = vmatprep.subr.bf16.mxu1 %v8862_v7  ;;  %v4314_v7 = vld [vmem:[#allocation10 + $0xc20] sm:$0xff]  ;;  %v8888_v15 = vpack.c.bf16 %v4287_v3, %v4286_v2  ;;  %v4345_v2 = vld [vmem:[#allocation10 + $0xd18] sm:$0xff]  ;;  %v8928_v3 = vpack.c.bf16 %v4323_v46, %v4322_v62 }
 0x51e   :  { %8865 = vmatpush3.bf16.msra.mxu1 %v8864_v11  ;;  %v4332_v11 = vld [vmem:[#allocation10 + $0xcb0] sm:$0xff] }
 0x51f   :  { %8867 = vmatprep.subr.bf16.mxu1 %v8866_v13  ;;  %v8912_v13 = vpack.c.bf16 %v4315_v9, %v4314_v7  ;;  %v8914_v21 = vpack.c.bf16 %v4333_v12, %v4332_v11  ;;  %v4325_v7 = vld [vmem:[#allocation10 + $0xc78] sm:$0xff]  ;;  %v8942_v12 = vpack.c.bf16 %v4347_v10, %v4346_v49 }
 0x522   :  { %8869 = vmatpush3.bf16.msra.mxu1 %v8868_v17 }
 0x523   :  { %8903 = vmatprep.subr.bf16.mxu1 %v8902_v22  ;;  %v4316_v22 = vld [vmem:[#allocation10 + $0xc30] sm:$0xff] }
 0x5bc   :  { %v7828_v19 = vpop.f32.mrb[124].mxu1  ;;  %v9917_v23 = vpop.f32.mrb[128].mxu0 }
 0x5bd   :  { %v3496_v20 = vpop.f32.mrb[125].mxu1  ;;  %v9919_v26 = vpop.f32.mrb[129].mxu0 }
 0x5c0   :  { %v7835_v31 = vpop.f32.mrb[126].mxu1 }
 0x5c1   :  { %v3582_v35 = vpop.f32.mrb[127].mxu1 }
 0x5c2   :  { %4430 = vmatprep.mubr.f32.mxu0 %v3582_v35  ;;  %v4290_v35 = vld [vmem:[#allocation10 + $0xb60] sm:$0xff] }
 0x5c3   :  { %4431 = vmatmul.mubr.f32.vlgmr.msra.gmra.mrb[130].mxu0 %v3496_v20  ;;  %v4306_v20 = vld [vmem:[#allocation10 + $0xbe0] sm:$0xff] }
 0x5c4   :  { %8873 = vmatpush3.bf16.msra.mxu0 %v8872_v32  ;;  %4435 = vmatprep.mubr.f32.mxu0 %v7835_v31  ;;  %v7842_v34 = vpop.f32.mrb[128].mxu1  ;;  %v8892_v31 = vpack.c.bf16 %v4289_v14, %v4288_v16  ;;  %v8894_v36 = vpack.c.bf16 %v4307_v25, %v4306_v20  ;;  %v4351_v14 = vld [vmem:[#allocation10 + $0xd48] sm:$0xff]  ;;  %v4357_v25 = vld [vmem:[#allocation10 + $0xd78] sm:$0xff] }
 0x5c5   :  { %8875 = vmatprep.subr.bf16.mxu0 %v8874_v59  ;;  %v3668_v43 = vpop.f32.mrb[129].mxu1  ;;  %v4291_v59 = vld [vmem:[#allocation10 + $0xb68] sm:$0xff] }
 0x5c6   :  { %v8896_v41 = vpack.c.bf16 %v4291_v59, %v4290_v35 }
 0x5c7   :  { %4436 = vmatmul.mubr.f32.gmra.mrb[132].mxu0 %v7828_v19  ;;  %v4317_v19 = vld [vmem:[#allocation10 + $0xc38] sm:$0xff] }
 0x5c8   :  { %8877 = vmatpush3.bf16.msra.mxu0 %v8876_v42  ;;  %v7849_v53 = vpop.f32.mrb[130].mxu1  ;;  %v8916_v32 = vpack.c.bf16 %v4317_v19, %v4316_v22  ;;  %v4308_v42 = vld [vmem:[#allocation10 + $0xbf0] sm:$0xff]  ;;  %v4354_v22 = vld [vmem:[#allocation10 + $0xd60] sm:$0xff]  ;;  %v4355_v19 = vld [vmem:[#allocation10 + $0xd68] sm:$0xff] }
 0x5c9   :  { %v3754_v56 = vpop.f32.mrb[131].mxu1  ;;  %8879 = vmatprep.subr.bf16.mxu0 %v8878_v44  ;;  %v4336_v44 = vld [vmem:[#allocation10 + $0xcd0] sm:$0xff]  ;;  %v8958_v20 = vpack.c.bf16 %v4355_v19, %v4354_v22  ;;  %v5561_v22 = vld [vmem:[#allocation10 + $0xe20] sm:$0xff]  ;;  %v5562_v19 = vld [vmem:[#allocation10 + $0xe28] sm:$0xff] }
 0x5ca   :  { %4505 = vmatprep.mubr.f32.mxu1 %v3754_v56  ;;  %v4342_v56 = vld [vmem:[#allocation10 + $0xd00] sm:$0xff] }
 0x5cb   :  { %4506 = vmatmul.mubr.f32.vlgmr.msra.gmra.mrb[140].mxu1 %v3668_v43  ;;  %v4309_v43 = vld [vmem:[#allocation10 + $0xbf8] sm:$0xff] }
 0x5cc   :  { %8881 = vmatpush3.bf16.msra.mxu0 %v8880_v54  ;;  %8905 = vmatpush3.bf16.msra.mxu1 %v8904_v51  ;;  %v9921_v4 = vpop.f32.mrb[132].mxu1  ;;  %v8898_v40 = vpack.c.bf16 %v4309_v43, %v4308_v42  ;;  %v4321_v54 = vld [vmem:[#allocation10 + $0xc58] sm:$0xff]  ;;  %v4338_v51 = vld [vmem:[#allocation10 + $0xce0] sm:$0xff] }
 0x5cd   :  { %4510 = vmatprep.mubr.f32.mxu1 %v7849_v53  ;;  %8883 = vmatprep.subr.bf16.mxu0 %v8882_v57  ;;  %v9923_v8 = vpop.f32.mrb[133].mxu1  ;;  %v4320_v53 = vld [vmem:[#allocation10 + $0xc50] sm:$0xff]  ;;  %v4343_v57 = vld [vmem:[#allocation10 + $0xd08] sm:$0xff]  ;;  %v8926_v60 = vpack.c.bf16 %v4339_v55, %v4338_v51 }
 0x5ce   :  { %8907 = vmatprep.subr.bf16.mxu1 %v8906_v61  ;;  %v8924_v45 = vpack.c.bf16 %v4321_v54, %v4320_v53  ;;  %v8934_v61 = vpack.c.bf16 %v4343_v57, %v4342_v56 }
 0x5cf   :  { %4511 = vmatmul.mubr.f32.gmra.mrb[142].mxu1 %v7842_v34  ;;  %v4319_v34 = vld [vmem:[#allocation10 + $0xc48] sm:$0xff] }
 0x5d0   :  { %8885 = vmatpush3.bf16.msra.mxu0 %v8884_v0  ;;  %8909 = vmatpush3.bf16.msra.mxu1 %v8908_v1  ;;  %v9925_v17 = vpop.f32.mrb[134].mxu1  ;;  %v8920_v47 = vpack.c.bf16 %v4319_v34, %v4318_v38  ;;  %v4341_v0 = vld [vmem:[#allocation10 + $0xcf8] sm:$0xff]  ;;  %v4344_v1 = vld [vmem:[#allocation10 + $0xd10] sm:$0xff] }
 0x5d1   :  { %8887 = vmatprep.subr.bf16.mxu0 %v8886_v5  ;;  %8911 = vmatprep.subr.bf16.mxu1 %v8910_v6  ;;  %v3926_v24 = vpop.f32.mrb[135].mxu1  ;;  %v8930_v5 = vpack.c.bf16 %v4341_v0, %v4340_v63  ;;  %v4324_v6 = vld [vmem:[#allocation10 + $0xc70] sm:$0xff]  ;;  %v8938_v9 = vpack.c.bf16 %v4345_v2, %v4344_v1 }
 0x5d2   :  { %4580 = vmatprep.mubr.f32.mxu0 %v3926_v24  ;;  %4655 = vmatprep.mubr.f32.mxu1 %v9919_v26  ;;  %v4337_v26 = vld [vmem:[#allocation10 + $0xcd8] sm:$0xff]  ;;  %v8932_v11 = vpack.c.bf16 %v4325_v7, %v4324_v6  ;;  %v4356_v24 = vld [vmem:[#allocation10 + $0xd70] sm:$0xff]  ;;  %v5558_v6 = vld [vmem:[#allocation10 + $0xe08] sm:$0xff] }
 0x5d3   :  { %v8922_v52 = vpack.c.bf16 %v4337_v26, %v4336_v44 }
 0x5d4   :  { %8889 = vmatpush3.bf16.msra.mxu0 %v8888_v15  ;;  %8913 = vmatpush3.bf16.msra.mxu1 %v8912_v13  ;;  %v9928_v27 = vpop.f32.mrb[136].mxu1  ;;  %v4348_v15 = vld [vmem:[#allocation10 + $0xd30] sm:$0xff]  ;;  %v4349_v13 = vld [vmem:[#allocation10 + $0xd38] sm:$0xff] }
 0x5d5   :  { %8891 = vmatprep.subr.bf16.mxu0 %v8890_v18  ;;  %8915 = vmatprep.subr.bf16.mxu1 %v8914_v21  ;;  %v9930_v37 = vpop.f32.mrb[137].mxu1  ;;  %v8946_v16 = vpack.c.bf16 %v4349_v13, %v4348_v15  ;;  %v4352_v18 = vld [vmem:[#allocation10 + $0xd50] sm:$0xff]  ;;  %v5560_v13 = vld [vmem:[#allocation10 + $0xe18] sm:$0xff] }
 0x5d6   :  { %v5559_v15 = vld [vmem:[#allocation10 + $0xe10] sm:$0xff] }
 0x5d8   :  { %8893 = vmatpush3.bf16.msra.mxu0 %v8892_v31  ;;  %8917 = vmatpush3.bf16.msra.mxu1 %v8916_v32  ;;  %v9932_v50 = vpop.f32.mrb[138].mxu1 }
 0x5d9   :  { %8895 = vmatprep.subr.bf16.mxu0 %v8894_v36  ;;  %8919 = vmatprep.subr.bf16.mxu1 %v8918_v33  ;;  %v4184_v28 = vpop.f32.mrb[139].mxu1  ;;  %v6128_v33 = vld [vmem:[#allocation11 + $0x2] ss:$0 sm:$0xff] }
 0x5dc   :  { %8897 = vmatpush3.bf16.msra.mxu0 %v8896_v41  ;;  %8921 = vmatpush3.bf16.msra.mxu1 %v8920_v47 }
 0x5dd   :  { %8899 = vmatprep.subr.bf16.mxu0 %v8898_v40  ;;  %8923 = vmatprep.subr.bf16.mxu1 %v8922_v52 }
 0x5e0   :  { %8901 = vmatpush3.bf16.msra.mxu0 %v8900_v58  ;;  %8925 = vmatpush3.bf16.msra.mxu1 %v8924_v45 }
 0x5e1   :  { %8927 = vmatprep.subr.bf16.mxu1 %v8926_v60  ;;  %8935 = vmatprep.subr.bf16.mxu0 %v8934_v61 }
 0x5e3   :  { %4581 = vmatmul.mubr.f32.vlgmr.msra.gmra.mrb[134].mxu0 %v9923_v8  ;;  %v4350_v8 = vld [vmem:[#allocation10 + $0xd40] sm:$0xff] }
 0x5e4   :  { %4585 = vmatprep.mubr.f32.mxu0 %v9925_v17  ;;  %8929 = vmatpush3.bf16.msra.mxu1 %v8928_v3  ;;  %v8950_v17 = vpack.c.bf16 %v4351_v14, %v4350_v8  ;;  %v5352_v8 = vld [vmem:[#allocation8 + $0x78] sm:$0xff]  ;;  %v4835_v14 = vld [vmem:[#allocation8 + $0x10] sm:$0xff] }
 0x5e5   :  { %8937 = vmatpush3.bf16.msra.mxu0 %v8934_v61  ;;  %8931 = vmatprep.subr.bf16.mxu1 %v8930_v5  ;;  %v5557_v5 = vld [vmem:[#allocation10 + $0xe00] sm:$0xff] }
 0x5e6   :  { %8939 = vmatprep.subr.bf16.mxu0 %v8938_v9  ;;  %v9002_v10 = vpack.c.bf16 %v5558_v6, %v5557_v5  ;;  %v5591_v6 = vld [vmem:[#allocation10 + $0xf10] sm:$0xff] }
 0x5e7   :  { %4586 = vmatmul.mubr.f32.gmra.mrb[136].mxu0 %v9921_v4  ;;  %v4353_v4 = vld [vmem:[#allocation10 + $0xd58] sm:$0xff] }
 0x5e8   :  { %8933 = vmatpush3.bf16.msra.mxu1 %v8932_v11  ;;  %7917 = vmatprep.mubr.f32.mxu0 %v4184_v28  ;;  %v8954_v21 = vpack.c.bf16 %v4353_v4, %v4352_v18  ;;  %v5541_v11 = vld [vmem:[#allocation10 + $0xd80] sm:$0xff]  ;;  %v9006_v18 = vpack.c.bf16 %v5560_v13, %v5559_v15  ;;  %v5543_v4 = vld [vmem:[#allocation10 + $0xd90] sm:$0xff]  ;;  %v5576_v15 = vld [vmem:[#allocation10 + $0xe98] sm:$0xff] }
 0x5e9   :  { %8941 = vmatpush3.bf16.msra.mxu0 %v8938_v9  ;;  %v5593_v13 = vld [vmem:[#allocation10 + $0xf20] sm:$0xff] }
 0x5ea   :  { %8943 = vmatprep.subr.bf16.mxu0 %v8942_v12 }
 0x5eb   :  { %4656 = vmatmul.mubr.f32.vlgmr.msra.gmra.mrb[144].mxu1 %v9930_v37 }
 0x5ec   :  { %4660 = vmatprep.mubr.f32.mxu1 %v9917_v23  ;;  %v8962_v23 = vpack.c.bf16 %v4357_v25, %v4356_v24  ;;  %v4921_v24 = vld [vmem:[#allocation8 + $0x20] sm:$0xff] }
 0x5ed   :  { %8945 = vmatpush3.bf16.msra.mxu0 %v8942_v12  ;;  %v5542_v12 = vld [vmem:[#allocation10 + $0xd88] sm:$0xff] }
 0x5ee   :  { %8947 = vmatprep.subr.bf16.mxu0 %v8946_v16 }
 0x5ef   :  { %4661 = vmatmul.mubr.f32.gmra.mrb[146].mxu1 %v9928_v27 }
 0x5f0   :  { %7924 = vmatprep.mubr.msk.f32.mxu1 %vm3423_vm9, %v4749_v29  ;;  %v5545_v29 = vld [vmem:[#allocation10 + $0xda0] sm:$0xff] }
 0x5f1   :  { %8949 = vmatpush3.bf16.msra.mxu0 %v8946_v16  ;;  %v4750_v16 = vld [vmem:[#allocation8 + $0x8] sm:$0xff] }
 0x5f2   :  { %8951 = vmatprep.subr.bf16.mxu0 %v8950_v17 }
 0x5f5   :  { %8953 = vmatpush3.bf16.msra.mxu0 %v8950_v17  ;;  %v9004_v17 = vpack.c.bf16 %v5542_v12, %v5541_v11  ;;  %v5575_v12 = vld [vmem:[#allocation10 + $0xe90] sm:$0xff] }
 0x5f6   :  { %8955 = vmatprep.subr.bf16.mxu0 %v8954_v21 }
 0x5f9   :  { %8957 = vmatpush3.bf16.msra.mxu0 %v8954_v21  ;;  %v5544_v21 = vld [vmem:[#allocation10 + $0xd98] sm:$0xff] }
 0x5fa   :  { %8959 = vmatprep.subr.bf16.mxu0 %v8958_v20  ;;  %v9008_v25 = vpack.c.bf16 %v5544_v21, %v5543_v4  ;;  %v5596_v4 = vld [vmem:[#allocation10 + $0xf38] sm:$0xff] }
 0x5fd   :  { %8961 = vmatpush3.bf16.msra.mxu0 %v8958_v20  ;;  %v4836_v20 = vld [vmem:[#allocation8 + $0x18] sm:$0xff] }
 0x5fe   :  { %8963 = vmatprep.subr.bf16.mxu0 %v8962_v23 }
 0x601   :  { %8965 = vmatpush3.bf16.msra.mxu0 %v8962_v23  ;;  %v9010_v23 = vpack.c.bf16 %v5562_v19, %v5561_v22  ;;  %v5579_v19 = vld [vmem:[#allocation10 + $0xeb0] sm:$0xff] }
 0x604   :  { %7918 = vmatmul.mubr.f32.vlgmr.msra.gmra.mrb[138].mxu0 %v9932_v50 }
 0x605   :  { %7973 = vmatprep.mubr.msk.f32.mxu0 %vm3423_vm9, %v5351_v30  ;;  %v5546_v30 = vld [vmem:[#allocation10 + $0xda8] sm:$0xff] }
 0x696   :  { %v7228_v31 = vpop.f32.mrb[130].mxu0 }
 0x697   :  { %v7229_v32 = vpop.f32.mrb[131].mxu0 }
 0x698   :  { %v7230_v35 = vadd.f32 %v7229_v32, %v7228_v31  ;;  %v5563_v31 = vld [vmem:[#allocation10 + $0xe30] sm:$0xff]  ;;  %v5564_v32 = vld [vmem:[#allocation10 + $0xe38] sm:$0xff] }
 0x69a   :  { %v7231_v59 = vpop.f32.mrb[132].mxu0  ;;  %v4433_v42 = vadd.f32 %v7230_v35, %v6128_v33  ;;  %v4922_v35 = vld [vmem:[#allocation8 + $0x28] sm:$0xff] }
 0x69b   :  { %v7232_v27 = vpop.f32.mrb[133].mxu0 }
 0x69c   :  { %v7233_v36 = vadd.f32 %v7232_v27, %v7231_v59  ;;  %v5007_v59 = vld [vmem:[#allocation8 + $0x30] sm:$0xff]  ;;  %v9012_v27 = vpack.c.bf16 %v5546_v30, %v5545_v29 }
 0x69d   :  { %v5581_v30 = vld [vmem:[#allocation10 + $0xec0] sm:$0xff] }
 0x69e   :  { %v7266_v38 = vpop.f32.mrb[140].mxu1  ;;  %v4438_v41 = vadd.f32 %v7233_v36, %v6128_v33  ;;  %v9014_v36 = vpack.c.bf16 %v5564_v32, %v5563_v31  ;;  %v5547_v33 = vld [vmem:[#allocation10 + $0xdb0] sm:$0xff]  ;;  %v5582_v31 = vld [vmem:[#allocation10 + $0xec8] sm:$0xff] }
 0x69f   :  { %v7267_v34 = vpop.f32.mrb[141].mxu1  ;;  %v9052_v32 = vpack.c.bf16 %v5582_v31, %v5581_v30  ;;  %v5611_v30 = vld [vmem:[#allocation10 + $0xfb0] sm:$0xff]  ;;  %v5612_v31 = vld [vmem:[#allocation10 + $0xfb8] sm:$0xff] }
 0x6a0   :  { %v7268_v37 = vadd.f32 %v7267_v34, %v7266_v38  ;;  %v5548_v38 = vld [vmem:[#allocation10 + $0xdb8] sm:$0xff]  ;;  %v5565_v34 = vld [vmem:[#allocation10 + $0xe40] sm:$0xff] }
 0x6a2   :  { %v4508_v43 = vadd.f32 %v7268_v37, %v4433_v42  ;;  %v7269_v44 = vpop.f32.mrb[142].mxu1  ;;  %v5566_v42 = vld [vmem:[#allocation10 + $0xe48] sm:$0xff] }
 0x6a3   :  { %v7270_v26 = vpop.f32.mrb[143].mxu1  ;;  %v5008_v37 = vld [vmem:[#allocation8 + $0x38] sm:$0xff] }
 0x6a4   :  { %v7271_v47 = vadd.f32 %v7270_v26, %v7269_v44  ;;  %v9016_v44 = vpack.c.bf16 %v5548_v38, %v5547_v33  ;;  %v9018_v26 = vpack.c.bf16 %v5566_v42, %v5565_v34  ;;  %v5600_v33 = vld [vmem:[#allocation10 + $0xf58] sm:$0xff]  ;;  %v5555_v38 = vld [vmem:[#allocation10 + $0xdf0] sm:$0xff] }
 0x6a5   :  { %v5556_v34 = vld [vmem:[#allocation10 + $0xdf8] sm:$0xff] }
 0x6a6   :  { %v4513_v48 = vadd.f32 %v7271_v47, %v4438_v41  ;;  %v5549_v41 = vld [vmem:[#allocation10 + $0xdc0] sm:$0xff]  ;;  %v5550_v47 = vld [vmem:[#allocation10 + $0xdc8] sm:$0xff] }
 0x6b6   :  { %v7304_v39 = vpop.f32.mrb[134].mxu0 }
 0x6b7   :  { %v7305_v50 = vpop.f32.mrb[135].mxu0 }
 0x6b8   :  { %v7306_v40 = vadd.f32 %v7305_v50, %v7304_v39  ;;  %v5568_v39 = vld [vmem:[#allocation10 + $0xe58] sm:$0xff] }
 0x6b9   :  { %v5094_v50 = vld [vmem:[#allocation8 + $0x48] sm:$0xff] }
 0x6ba   :  { %v4583_v52 = vadd.f32 %v7306_v40, %v4508_v43  ;;  %v7307_v53 = vpop.f32.mrb[136].mxu0  ;;  %v5093_v43 = vld [vmem:[#allocation8 + $0x40] sm:$0xff]  ;;  %v5179_v40 = vld [vmem:[#allocation8 + $0x50] sm:$0xff] }
 0x6bb   :  { %v7308_v54 = vpop.f32.mrb[137].mxu0 }
 0x6bc   :  { %v7309_v51 = vadd.f32 %v7308_v54, %v7307_v53  ;;  %v5551_v54 = vld [vmem:[#allocation10 + $0xdd0] sm:$0xff] }
 0x6be   :  { %v4588_v28 = vadd.f32 %v7309_v51, %v4513_v48  ;;  %v7342_v55 = vpop.f32.mrb[144].mxu1  ;;  %v5567_v48 = vld [vmem:[#allocation10 + $0xe50] sm:$0xff]  ;;  %v5552_v51 = vld [vmem:[#allocation10 + $0xdd8] sm:$0xff] }
 0x6bf   :  { %v7343_v56 = vpop.f32.mrb[145].mxu1  ;;  %v9022_v53 = vpack.c.bf16 %v5568_v39, %v5567_v48  ;;  %v5621_v48 = vld [vmem:[#allocation10 + $0x1000] sm:$0xff] }
 0x6c0   :  { %v7344_v57 = vadd.f32 %v7343_v56, %v7342_v55  ;;  %v5570_v55 = vld [vmem:[#allocation10 + $0xe68] sm:$0xff] }
 0x6c1   :  { %v5180_v56 = vld [vmem:[#allocation8 + $0x58] sm:$0xff] }
 0x6c2   :  { %v7345_v58 = vpop.f32.mrb[146].mxu1  ;;  %v4658_v45 = vadd.f32 %v7344_v57, %v4583_v52  ;;  %v9020_v52 = vpack.c.bf16 %v5550_v47, %v5549_v41  ;;  %v5265_v57 = vld [vmem:[#allocation8 + $0x60] sm:$0xff]  ;;  %v5601_v41 = vld [vmem:[#allocation10 + $0xf60] sm:$0xff]  ;;  %v5602_v47 = vld [vmem:[#allocation10 + $0xf68] sm:$0xff] }
 0x6c3   :  { %v7346_v60 = vpop.f32.mrb[147].mxu1  ;;  %v9058_v39 = vpack.c.bf16 %v5602_v47, %v5601_v41 }
 0x6c4   :  { %v7347_v61 = vadd.f32 %v7346_v60, %v7345_v58  ;;  %v5589_v58 = vld [vmem:[#allocation10 + $0xf00] sm:$0xff]  ;;  %v5590_v60 = vld [vmem:[#allocation10 + $0xf08] sm:$0xff] }
 0x6c6   :  { %v4663_v62 = vadd.f32 %v7347_v61, %v4588_v28  ;;  %v5569_v28 = vld [vmem:[#allocation10 + $0xe60] sm:$0xff] }
 0x6c7   :  { %v9026_v61 = vpack.c.bf16 %v5570_v55, %v5569_v28  ;;  %v5604_v28 = vld [vmem:[#allocation10 + $0xf78] sm:$0xff] }
 0x6d7   :  { %v7919_v46 = vpop.f32.mrb[138].mxu0 }
 0x6d8   :  { %v4738_v63 = vadd.f32 %v7919_v46, %v4663_v62  ;;  %v4732_v0 = vpop.f32.mrb[139].mxu0  ;;  %v5553_v62 = vld [vmem:[#allocation10 + $0xde0] sm:$0xff]  ;;  %v5554_v46 = vld [vmem:[#allocation10 + $0xde8] sm:$0xff] }
 0x6d9   :  { %v4733_v1 = vadd.f32 %v4732_v0, %v4658_v45  ;;  %v9024_v45 = vpack.c.bf16 %v5552_v51, %v5551_v54  ;;  %v5437_v0 = vld [vmem:[#allocation8 + $0x80] sm:$0xff]  ;;  %v9028_v5 = vpack.c.bf16 %v5554_v46, %v5553_v62 }
 0x6da   :  { %vm4742_vm12 = vcmp.ge.f32.partialorder %v4738_v63, 0.0  ;;  %v4744_v2 = vmul.f32 0.2, %v4738_v63  ;;  %v5603_v51 = vld [vmem:[#allocation10 + $0xf70] sm:$0xff] }
 0x6db   :  { %vm4741_vm13 = vcmp.ge.f32.partialorder %v4733_v1, 0.0  ;;  %v4743_v3 = vmul.f32 0.2, %v4733_v1  ;;  %v9062_v55 = vpack.c.bf16 %v5604_v28, %v5603_v51  ;;  %v5660_v51 = vld [vmem:[#allocation10 + $0x1138] sm:$0xff] }
 0x6dc   :  { %v4746_v7 = vsel %vm4742_vm12, %v4738_v63, %v4744_v2  ;;  %v5266_v63 = vld [vmem:[#allocation8 + $0x68] sm:$0xff]  ;;  %v5573_v2 = vld [vmem:[#allocation10 + $0xe80] sm:$0xff] }
 0x6dd   :  { %4748 = vst [vmem:[%s10024_s9 + $0x8] sm:$0xff] %v4746_v7  ;;  %v4745_v9 = vsel %vm4741_vm13, %v4733_v1, %v4743_v3  ;;  %v9034_v1 = vpack.c.bf16 %v5590_v60, %v5589_v58  ;;  %v5574_v3 = vld [vmem:[#allocation10 + $0xe88] sm:$0xff] }
 0x6de   :  { %4747 = vst [vmem:[%s10024_s9] sm:$0xff] %v4745_v9  ;;  %v9949_v49 = vpack.c.bf16 %v4746_v7, %v4745_v9  ;;  %v5592_v7 = vld [vmem:[#allocation10 + $0xf18] sm:$0xff]  ;;  %v5654_v60 = vld [vmem:[#allocation10 + $0x1108] sm:$0xff] }
 0x6df   :  { %v5438_v9 = vld [vmem:[#allocation8 + $0x88] sm:$0xff]  ;;  %v9038_v11 = vpack.c.bf16 %v5592_v7, %v5591_v6 }
 0x6e0   :  { %8967 = vmatprep.subr.bf16.mxu1 %v9949_v49  ;;  %8995 = vmatprep.subr.bf16.mxu0 %v9949_v49 }
 0x6e1   :  { %8969 = vmatpush3.bf16.msra.mxu1 %v9949_v49  ;;  %8997 = vmatpush3.bf16.msra.mxu0 %v9949_v49 }
 0x6e2   :  { %8971 = vmatprep.subr.bf16.mxu1 %v9949_v49  ;;  %9003 = vmatprep.subr.bf16.mxu0 %v9002_v10  ;;  %v9036_v10 = vpack.c.bf16 %v5574_v3, %v5573_v2  ;;  %v5623_v3 = vld [vmem:[#allocation10 + $0x1010] sm:$0xff] }
 0x6e4   :  { %7925 = vmatmul.mubr.msk.f32.vlgmr.msra.gmra.mrb[148].mxu1 %vm3423_vm9, %v4750_v16  ;;  %7974 = vmatmul.mubr.msk.f32.vlgmr.msra.gmra.mrb[140].mxu0 %vm3423_vm9, %v5352_v8  ;;  %v5594_v16 = vld [vmem:[#allocation10 + $0xf28] sm:$0xff]  ;;  %v9040_v8 = vpack.c.bf16 %v5576_v15, %v5575_v12  ;;  %v5608_v12 = vld [vmem:[#allocation10 + $0xf98] sm:$0xff]  ;;  %v5625_v15 = vld [vmem:[#allocation10 + $0x1020] sm:$0xff] }
 0x6e5   :  { %8973 = vmatpush3.bf16.msra.mxu1 %v9949_v49  ;;  %7931 = vmatprep.mubr.msk.f32.mxu1 %vm3423_vm9, %v4835_v14  ;;  %v9042_v14 = vpack.c.bf16 %v5594_v16, %v5593_v13  ;;  %v5626_v13 = vld [vmem:[#allocation10 + $0x1028] sm:$0xff] }
 0x6e6   :  { %8975 = vmatprep.subr.bf16.mxu1 %v9949_v49  ;;  %9005 = vmatpush3.bf16.msra.mxu0 %v9004_v17  ;;  %v5577_v17 = vld [vmem:[#allocation10 + $0xea0] sm:$0xff] }
 0x6e7   :  { %9007 = vmatprep.subr.bf16.mxu0 %v9006_v18  ;;  %v5578_v18 = vld [vmem:[#allocation10 + $0xea8] sm:$0xff] }
 0x6e8   :  { %7932 = vmatmul.mubr.msk.f32.vlgmr.msra.gmra.mrb[150].mxu1 %vm3423_vm9, %v4836_v20  ;;  %v9044_v21 = vpack.c.bf16 %v5578_v18, %v5577_v17  ;;  %v5580_v20 = vld [vmem:[#allocation10 + $0xeb8] sm:$0xff]  ;;  %v9074_v18 = vpack.c.bf16 %v5626_v13, %v5625_v15  ;;  %v5645_v13 = vld [vmem:[#allocation10 + $0x10c0] sm:$0xff] }
 0x6e9   :  { %8977 = vmatpush3.bf16.msra.mxu1 %v9949_v49  ;;  %7938 = vmatprep.mubr.msk.f32.mxu1 %vm3423_vm9, %v4921_v24  ;;  %v5597_v24 = vld [vmem:[#allocation10 + $0xf40] sm:$0xff] }
 0x6ea   :  { %8979 = vmatprep.subr.bf16.mxu1 %v9949_v49  ;;  %9009 = vmatpush3.bf16.msra.mxu0 %v9008_v25  ;;  %v5598_v25 = vld [vmem:[#allocation10 + $0xf48] sm:$0xff] }
 0x6eb   :  { %9011 = vmatprep.subr.bf16.mxu0 %v9010_v23  ;;  %v9048_v23 = vpack.c.bf16 %v5580_v20, %v5579_v19  ;;  %v9050_v29 = vpack.c.bf16 %v5598_v25, %v5597_v24  ;;  %v5628_v19 = vld [vmem:[#allocation10 + $0x1038] sm:$0xff]  ;;  %v5655_v20 = vld [vmem:[#allocation10 + $0x1110] sm:$0xff] }
 0x6ec   :  { %7939 = vmatmul.mubr.msk.f32.vlgmr.msra.gmra.mrb[152].mxu1 %vm3423_vm9, %v4922_v35  ;;  %v5571_v35 = vld [vmem:[#allocation10 + $0xe70] sm:$0xff]  ;;  %v5656_v24 = vld [vmem:[#allocation10 + $0x1118] sm:$0xff] }
 0x6ed   :  { %8981 = vmatpush3.bf16.msra.mxu1 %v9949_v49  ;;  %7945 = vmatprep.mubr.msk.f32.mxu1 %vm3423_vm9, %v5007_v59  ;;  %v5572_v59 = vld [vmem:[#allocation10 + $0xe78] sm:$0xff] }
 0x6ee   :  { %8983 = vmatprep.subr.bf16.mxu1 %v9949_v49  ;;  %9013 = vmatpush3.bf16.msra.mxu0 %v9012_v27  ;;  %v5599_v27 = vld [vmem:[#allocation10 + $0xf50] sm:$0xff] }
 0x6ef   :  { %9015 = vmatprep.subr.bf16.mxu0 %v9014_v36  ;;  %v9030_v36 = vpack.c.bf16 %v5572_v59, %v5571_v35  ;;  %v9054_v42 = vpack.c.bf16 %v5600_v33, %v5599_v27  ;;  %v5639_v59 = vld [vmem:[#allocation10 + $0x1090] sm:$0xff]  ;;  %v5640_v27 = vld [vmem:[#allocation10 + $0x1098] sm:$0xff]  ;;  %v9102_v33 = vpack.c.bf16 %v5656_v24, %v5655_v20 }
 0x6f0   :  { %7946 = vmatmul.mubr.msk.f32.vlgmr.msra.gmra.mrb[154].mxu1 %vm3423_vm9, %v5008_v37  ;;  %v9032_v37 = vpack.c.bf16 %v5556_v34, %v5555_v38  ;;  %v5630_v38 = vld [vmem:[#allocation10 + $0x1048] sm:$0xff]  ;;  %v5657_v34 = vld [vmem:[#allocation10 + $0x1120] sm:$0xff] }
 0x6f1   :  { %8985 = vmatpush3.bf16.msra.mxu1 %v9949_v49  ;;  %7952 = vmatprep.mubr.msk.f32.mxu1 %vm3423_vm9, %v5093_v43  ;;  %v5583_v43 = vld [vmem:[#allocation10 + $0xed0] sm:$0xff] }
 0x6f2   :  { %8987 = vmatprep.subr.bf16.mxu1 %v9949_v49  ;;  %9017 = vmatpush3.bf16.msra.mxu0 %v9016_v44  ;;  %v5584_v44 = vld [vmem:[#allocation10 + $0xed8] sm:$0xff] }
 0x6f3   :  { %9019 = vmatprep.subr.bf16.mxu0 %v9018_v26  ;;  %v9056_v26 = vpack.c.bf16 %v5584_v44, %v5583_v43  ;;  %v9104_v43 = vpack.c.bf16 %v5640_v27, %v5639_v59  ;;  %v5613_v44 = vld [vmem:[#allocation10 + $0xfc0] sm:$0xff] }
 0x6f4   :  { %7953 = vmatmul.mubr.msk.f32.vlgmr.msra.gmra.mrb[156].mxu1 %vm3423_vm9, %v5094_v50  ;;  %v5622_v50 = vld [vmem:[#allocation10 + $0x1008] sm:$0xff] }
 0x6f5   :  { %8989 = vmatpush3.bf16.msra.mxu1 %v9949_v49  ;;  %7959 = vmatprep.mubr.msk.f32.mxu1 %vm3423_vm9, %v5179_v40  ;;  %v5585_v40 = vld [vmem:[#allocation10 + $0xee0] sm:$0xff] }
 0x6f6   :  { %8991 = vmatprep.subr.bf16.mxu1 %v9949_v49  ;;  %9021 = vmatpush3.bf16.msra.mxu0 %v9020_v52  ;;  %v5586_v52 = vld [vmem:[#allocation10 + $0xee8] sm:$0xff] }
 0x6f7   :  { %9023 = vmatprep.subr.bf16.mxu0 %v9022_v53  ;;  %v9066_v53 = vpack.c.bf16 %v5622_v50, %v5621_v48  ;;  %v9060_v54 = vpack.c.bf16 %v5586_v52, %v5585_v40  ;;  %v5642_v50 = vld [vmem:[#allocation10 + $0x10a8] sm:$0xff]  ;;  %v5631_v40 = vld [vmem:[#allocation10 + $0x1050] sm:$0xff] }
 0x6f8   :  { %7960 = vmatmul.mubr.msk.f32.vlgmr.msra.gmra.mrb[158].mxu1 %vm3423_vm9, %v5180_v56  ;;  %v5587_v56 = vld [vmem:[#allocation10 + $0xef0] sm:$0xff] }
 0x6f9   :  { %8993 = vmatpush3.bf16.msra.mxu1 %v9949_v49  ;;  %7966 = vmatprep.mubr.msk.f32.mxu1 %vm3423_vm9, %v5265_v57  ;;  %v5588_v57 = vld [vmem:[#allocation10 + $0xef8] sm:$0xff] }
 0x6fa   :  { %8999 = vmatprep.subr.bf16.mxu1 %v9949_v49  ;;  %9025 = vmatpush3.bf16.msra.mxu0 %v9024_v45  ;;  %v9064_v58 = vpack.c.bf16 %v5588_v57, %v5587_v56  ;;  %v5653_v45 = vld [vmem:[#allocation10 + $0x1100] sm:$0xff]  ;;  %v5615_v56 = vld [vmem:[#allocation10 + $0xfd0] sm:$0xff]  ;;  %v5616_v57 = vld [vmem:[#allocation10 + $0xfd8] sm:$0xff] }
 0x6fb   :  { %9027 = vmatprep.subr.bf16.mxu0 %v9026_v61  ;;  %v9098_v61 = vpack.c.bf16 %v5654_v60, %v5653_v45 }
 0x6fc   :  { %7967 = vmatmul.mubr.msk.f32.vlgmr.msra.gmra.mrb[160].mxu1 %vm3423_vm9, %v5266_v63 }
 0x6fd   :  { %9001 = vmatpush3.bf16.msra.mxu1 %v9949_v49  ;;  %7980 = vmatprep.mubr.msk.f32.mxu1 %vm3423_vm9, %v5437_v0  ;;  %v5595_v49 = vld [vmem:[#allocation10 + $0xf30] sm:$0xff]  ;;  %v5605_v0 = vld [vmem:[#allocation10 + $0xf80] sm:$0xff] }
 0x6fe   :  { %9035 = vmatprep.subr.bf16.mxu1 %v9034_v1  ;;  %9029 = vmatpush3.bf16.msra.mxu0 %v9028_v5  ;;  %v9046_v22 = vpack.c.bf16 %v5596_v4, %v5595_v49  ;;  %v5606_v1 = vld [vmem:[#allocation10 + $0xf88] sm:$0xff]  ;;  %v5624_v5 = vld [vmem:[#allocation10 + $0x1018] sm:$0xff]  ;;  %v5637_v4 = vld [vmem:[#allocation10 + $0x1080] sm:$0xff] }
 0x6ff   :  { %9031 = vmatprep.subr.bf16.mxu0 %v9030_v36  ;;  %v9068_v7 = vpack.c.bf16 %v5606_v1, %v5605_v0  ;;  %v5610_v49 = vld [vmem:[#allocation10 + $0xfa8] sm:$0xff]  ;;  %v5629_v36 = vld [vmem:[#allocation10 + $0x1040] sm:$0xff] }
 0x700   :  { %7981 = vmatmul.mubr.msk.f32.vlgmr.msra.gmra.mrb[162].mxu1 %vm3423_vm9, %v5438_v9  ;;  %v9082_v47 = vpack.c.bf16 %v5630_v38, %v5629_v36  ;;  %v5634_v1 = vld [vmem:[#allocation10 + $0x1068] sm:$0xff]  ;;  %v5649_v38 = vld [vmem:[#allocation10 + $0x10e0] sm:$0xff] }
 0x701   :  { %9037 = vmatpush3.bf16.msra.mxu1 %v9036_v10  ;;  %v9070_v10 = vpack.c.bf16 %v5624_v5, %v5623_v3  ;;  %v5661_v3 = vld [vmem:[#allocation10 + $0x1140] sm:$0xff]  ;;  %v5662_v5 = vld [vmem:[#allocation10 + $0x1148] sm:$0xff] }
 0x702   :  { %9039 = vmatprep.subr.bf16.mxu1 %v9038_v11  ;;  %9033 = vmatpush3.bf16.msra.mxu0 %v9032_v37  ;;  %v5607_v11 = vld [vmem:[#allocation10 + $0xf90] sm:$0xff]  ;;  %v9080_v37 = vpack.c.bf16 %v5612_v31, %v5611_v30  ;;  %v9114_v15 = vpack.c.bf16 %v5662_v5, %v5661_v3  ;;  %v5666_v31 = vld [vmem:[#allocation10 + $0x1168] sm:$0xff] }
 0x703   :  { %9067 = vmatprep.subr.bf16.mxu0 %v9066_v53  ;;  %v5632_v53 = vld [vmem:[#allocation10 + $0x1058] sm:$0xff] }
 0x704   :  { %v9086_v45 = vpack.c.bf16 %v5632_v53, %v5631_v40  ;;  %v5673_v40 = vld [vmem:[#allocation10 + $0x11a0] sm:$0xff]  ;;  %v5674_v53 = vld [vmem:[#allocation10 + $0x11a8] sm:$0xff] }
 0x705   :  { %9041 = vmatpush3.bf16.msra.mxu1 %v9040_v8  ;;  %v9072_v8 = vpack.c.bf16 %v5608_v12, %v5607_v11 }
 0x706   :  { %9043 = vmatprep.subr.bf16.mxu1 %v9042_v14  ;;  %v5609_v14 = vld [vmem:[#allocation10 + $0xfa0] sm:$0xff] }
 0x709   :  { %9045 = vmatpush3.bf16.msra.mxu1 %v9044_v21  ;;  %v5638_v21 = vld [vmem:[#allocation10 + $0x1088] sm:$0xff] }
 0x70a   :  { %9047 = vmatprep.subr.bf16.mxu1 %v9046_v22  ;;  %v5627_v22 = vld [vmem:[#allocation10 + $0x1030] sm:$0xff] }
 0x70b   :  { %v9078_v35 = vpack.c.bf16 %v5628_v19, %v5627_v22  ;;  %v5620_v22 = vld [vmem:[#allocation10 + $0xff8] sm:$0xff] }
 0x70d   :  { %9049 = vmatpush3.bf16.msra.mxu1 %v9048_v23  ;;  %v9076_v23 = vpack.c.bf16 %v5610_v49, %v5609_v14 }
 0x70e   :  { %9051 = vmatprep.subr.bf16.mxu1 %v9050_v29  ;;  %v9100_v29 = vpack.c.bf16 %v5638_v21, %v5637_v4  ;;  %v5619_v21 = vld [vmem:[#allocation10 + $0xff0] sm:$0xff] }
 0x70f   :  { %v9096_v59 = vpack.c.bf16 %v5620_v22, %v5619_v21 }
 0x711   :  { %9053 = vmatpush3.bf16.msra.mxu1 %v9052_v32 }
 0x712   :  { %9055 = vmatprep.subr.bf16.mxu1 %v9054_v42  ;;  %v5658_v42 = vld [vmem:[#allocation10 + $0x1128] sm:$0xff] }
 0x713   :  { %v9106_v48 = vpack.c.bf16 %v5658_v42, %v5657_v34  ;;  %v5650_v34 = vld [vmem:[#allocation10 + $0x10e8] sm:$0xff]  ;;  %v5667_v42 = vld [vmem:[#allocation10 + $0x1170] sm:$0xff] }
 0x715   :  { %9057 = vmatpush3.bf16.msra.mxu1 %v9056_v26  ;;  %v5614_v26 = vld [vmem:[#allocation10 + $0xfc8] sm:$0xff] }
 0x716   :  { %9059 = vmatprep.subr.bf16.mxu1 %v9058_v39  ;;  %v5641_v39 = vld [vmem:[#allocation10 + $0x10a0] sm:$0xff]  ;;  %v9084_v28 = vpack.c.bf16 %v5614_v26, %v5613_v44  ;;  %v5672_v44 = vld [vmem:[#allocation10 + $0x1198] sm:$0xff]  ;;  %v9124_v26 = vpack.c.bf16 %v5650_v34, %v5649_v38 }
 0x719   :  { %9061 = vmatpush3.bf16.msra.mxu1 %v9060_v54  ;;  %v5659_v54 = vld [vmem:[#allocation10 + $0x1130] sm:$0xff] }
 0x71a   :  { %9063 = vmatprep.subr.bf16.mxu1 %v9062_v55  ;;  %v9108_v55 = vpack.c.bf16 %v5642_v50, %v5641_v39  ;;  %v9110_v60 = vpack.c.bf16 %v5660_v51, %v5659_v54  ;;  %v5652_v39 = vld [vmem:[#allocation10 + $0x10f8] sm:$0xff]  ;;  %v9138_v51 = vpack.c.bf16 %v5674_v53, %v5673_v40 }
 0x71d   :  { %9065 = vmatpush3.bf16.msra.mxu1 %v9064_v58 }
 0x71e   :  { %9099 = vmatprep.subr.bf16.mxu1 %v9098_v61  ;;  %v5643_v61 = vld [vmem:[#allocation10 + $0x10b0] sm:$0xff] }
 0x7b7   :  { %v7926_v62 = vpop.f32.mrb[148].mxu1  ;;  %v9985_v46 = vpop.f32.mrb[140].mxu0 }
 0x7b8   :  { %v4823_v63 = vpop.f32.mrb[149].mxu1  ;;  %v9987_v2 = vpop.f32.mrb[141].mxu0 }
 0x7bb   :  { %v7933_v6 = vpop.f32.mrb[150].mxu1 }
 0x7bc   :  { %v4909_v9 = vpop.f32.mrb[151].mxu1 }
 0x7bd   :  { %5757 = vmatprep.mubr.f32.mxu0 %v4909_v9  ;;  %v5617_v9 = vld [vmem:[#allocation10 + $0xfe0] sm:$0xff] }
 0x7be   :  { %5758 = vmatmul.mubr.f32.vlgmr.msra.gmra.mrb[142].mxu0 %v4823_v63  ;;  %v5633_v63 = vld [vmem:[#allocation10 + $0x1060] sm:$0xff] }
 0x7bf   :  { %9069 = vmatpush3.bf16.msra.mxu0 %v9068_v7  ;;  %v7940_v16 = vpop.f32.mrb[152].mxu1  ;;  %5762 = vmatprep.mubr.f32.mxu0 %v7933_v6  ;;  %v9088_v6 = vpack.c.bf16 %v5616_v57, %v5615_v56  ;;  %v9090_v12 = vpack.c.bf16 %v5634_v1, %v5633_v63  ;;  %v5677_v57 = vld [vmem:[#allocation10 + $0x11c0] sm:$0xff]  ;;  %v5684_v1 = vld [vmem:[#allocation10 + $0x11f8] sm:$0xff] }
 0x7c0   :  { %9071 = vmatprep.subr.bf16.mxu0 %v9070_v10  ;;  %v4995_v17 = vpop.f32.mrb[153].mxu1  ;;  %v5618_v10 = vld [vmem:[#allocation10 + $0xfe8] sm:$0xff] }
 0x7c1   :  { %v9092_v49 = vpack.c.bf16 %v5618_v10, %v5617_v9 }
 0x7c2   :  { %5763 = vmatmul.mubr.f32.gmra.mrb[144].mxu0 %v7926_v62  ;;  %v5644_v62 = vld [vmem:[#allocation10 + $0x10b8] sm:$0xff] }
 0x7c3   :  { %9073 = vmatpush3.bf16.msra.mxu0 %v9072_v8  ;;  %v7947_v25 = vpop.f32.mrb[154].mxu1  ;;  %v9112_v7 = vpack.c.bf16 %v5644_v62, %v5643_v61  ;;  %v5635_v8 = vld [vmem:[#allocation10 + $0x1070] sm:$0xff]  ;;  %v5681_v61 = vld [vmem:[#allocation10 + $0x11e0] sm:$0xff]  ;;  %v5682_v62 = vld [vmem:[#allocation10 + $0x11e8] sm:$0xff] }
 0x7c4   :  { %v5081_v32 = vpop.f32.mrb[155].mxu1  ;;  %9075 = vmatprep.subr.bf16.mxu0 %v9074_v18  ;;  %v5663_v18 = vld [vmem:[#allocation10 + $0x1150] sm:$0xff]  ;;  %v9154_v63 = vpack.c.bf16 %v5682_v62, %v5681_v61 }
 0x7c5   :  { %5832 = vmatprep.mubr.f32.mxu1 %v5081_v32  ;;  %v5669_v32 = vld [vmem:[#allocation10 + $0x1180] sm:$0xff] }
 0x7c6   :  { %5833 = vmatmul.mubr.f32.vlgmr.msra.gmra.mrb[164].mxu1 %v4995_v17  ;;  %v5636_v17 = vld [vmem:[#allocation10 + $0x1078] sm:$0xff] }
 0x7c7   :  { %9077 = vmatpush3.bf16.msra.mxu0 %v9076_v23  ;;  %9101 = vmatpush3.bf16.msra.mxu1 %v9100_v29  ;;  %v9989_v41 = vpop.f32.mrb[156].mxu1  ;;  %v9094_v20 = vpack.c.bf16 %v5636_v17, %v5635_v8  ;;  %v5648_v23 = vld [vmem:[#allocation10 + $0x10d8] sm:$0xff]  ;;  %v5665_v29 = vld [vmem:[#allocation10 + $0x1160] sm:$0xff] }
 0x7c8   :  { %5837 = vmatprep.mubr.f32.mxu1 %v7947_v25  ;;  %9079 = vmatprep.subr.bf16.mxu0 %v9078_v35  ;;  %v9991_v52 = vpop.f32.mrb[157].mxu1  ;;  %v5647_v25 = vld [vmem:[#allocation10 + $0x10d0] sm:$0xff]  ;;  %v5670_v35 = vld [vmem:[#allocation10 + $0x1188] sm:$0xff]  ;;  %v9122_v36 = vpack.c.bf16 %v5666_v31, %v5665_v29 }
 0x7c9   :  { %9103 = vmatprep.subr.bf16.mxu1 %v9102_v33  ;;  %v9120_v27 = vpack.c.bf16 %v5648_v23, %v5647_v25  ;;  %v9130_v33 = vpack.c.bf16 %v5670_v35, %v5669_v32 }
 0x7ca   :  { %5838 = vmatmul.mubr.f32.gmra.mrb[166].mxu1 %v7940_v16  ;;  %v5646_v16 = vld [vmem:[#allocation10 + $0x10c8] sm:$0xff] }
 0x7cb   :  { %9081 = vmatpush3.bf16.msra.mxu0 %v9080_v37  ;;  %9105 = vmatpush3.bf16.msra.mxu1 %v9104_v43  ;;  %v9993_v58 = vpop.f32.mrb[158].mxu1  ;;  %v9116_v4 = vpack.c.bf16 %v5646_v16, %v5645_v13  ;;  %v5668_v37 = vld [vmem:[#allocation10 + $0x1178] sm:$0xff]  ;;  %v5671_v43 = vld [vmem:[#allocation10 + $0x1190] sm:$0xff] }
 0x7cc   :  { %9083 = vmatprep.subr.bf16.mxu0 %v9082_v47  ;;  %9107 = vmatprep.subr.bf16.mxu1 %v9106_v48  ;;  %v5253_v0 = vpop.f32.mrb[159].mxu1  ;;  %v9126_v47 = vpack.c.bf16 %v5668_v37, %v5667_v42  ;;  %v5651_v48 = vld [vmem:[#allocation10 + $0x10f0] sm:$0xff]  ;;  %v9134_v50 = vpack.c.bf16 %v5672_v44, %v5671_v43 }
 0x7cd   :  { %5907 = vmatprep.mubr.f32.mxu0 %v5253_v0  ;;  %5982 = vmatprep.mubr.f32.mxu1 %v9987_v2  ;;  %v5664_v2 = vld [vmem:[#allocation10 + $0x1158] sm:$0xff]  ;;  %v9128_v54 = vpack.c.bf16 %v5652_v39, %v5651_v48  ;;  %v5683_v0 = vld [vmem:[#allocation10 + $0x11f0] sm:$0xff] }
 0x7ce   :  { %v9118_v24 = vpack.c.bf16 %v5664_v2, %v5663_v18  ;;  %v9158_v3 = vpack.c.bf16 %v5684_v1, %v5683_v0 }
 0x7cf   :  { %9085 = vmatpush3.bf16.msra.mxu0 %v9084_v28  ;;  %9109 = vmatpush3.bf16.msra.mxu1 %v9108_v55  ;;  %v9996_v11 = vpop.f32.mrb[160].mxu1  ;;  %v5675_v28 = vld [vmem:[#allocation10 + $0x11b0] sm:$0xff]  ;;  %v5676_v55 = vld [vmem:[#allocation10 + $0x11b8] sm:$0xff] }
 0x7d0   :  { %9087 = vmatprep.subr.bf16.mxu0 %v9086_v45  ;;  %9111 = vmatprep.subr.bf16.mxu1 %v9110_v60  ;;  %v9998_v14 = vpop.f32.mrb[161].mxu1  ;;  %v9142_v56 = vpack.c.bf16 %v5676_v55, %v5675_v28  ;;  %v5678_v45 = vld [vmem:[#allocation10 + $0x11c8] sm:$0xff]  ;;  %v5680_v60 = vld [vmem:[#allocation10 + $0x11d8] sm:$0xff] }
 0x7d3   :  { %9089 = vmatpush3.bf16.msra.mxu0 %v9088_v6  ;;  %9113 = vmatpush3.bf16.msra.mxu1 %v9112_v7  ;;  %v10000_v19 = vpop.f32.mrb[162].mxu1 }
 0x7d4   :  { %9091 = vmatprep.subr.bf16.mxu0 %v9090_v12  ;;  %9115 = vmatprep.subr.bf16.mxu1 %v9114_v15  ;;  %v5511_v30 = vpop.f32.mrb[163].mxu1 }
 0x7d7   :  { %9093 = vmatpush3.bf16.msra.mxu0 %v9092_v49  ;;  %9117 = vmatpush3.bf16.msra.mxu1 %v9116_v4 }
 0x7d8   :  { %9095 = vmatprep.subr.bf16.mxu0 %v9094_v20  ;;  %9119 = vmatprep.subr.bf16.mxu1 %v9118_v24 }
 0x7db   :  { %9097 = vmatpush3.bf16.msra.mxu0 %v9096_v59  ;;  %9121 = vmatpush3.bf16.msra.mxu1 %v9120_v27 }
 0x7dc   :  { %9123 = vmatprep.subr.bf16.mxu1 %v9122_v36  ;;  %9131 = vmatprep.subr.bf16.mxu0 %v9130_v33 }
 0x7de   :  { %5908 = vmatmul.mubr.f32.vlgmr.msra.gmra.mrb[146].mxu0 %v9991_v52  ;;  %v9146_v52 = vpack.c.bf16 %v5678_v45, %v5677_v57 }
 0x7df   :  { %9125 = vmatpush3.bf16.msra.mxu1 %v9124_v26  ;;  %9133 = vmatpush3.bf16.msra.mxu0 %v9130_v33 }
 0x7e0   :  { %5912 = vmatprep.mubr.f32.mxu0 %v9993_v58  ;;  %9127 = vmatprep.subr.bf16.mxu1 %v9126_v47  ;;  %v5679_v58 = vld [vmem:[#allocation10 + $0x11d0] sm:$0xff] }
 0x7e1   :  { %9135 = vmatprep.subr.bf16.mxu0 %v9134_v50 }
 0x7e2   :  { %5913 = vmatmul.mubr.f32.gmra.mrb[148].mxu0 %v9989_v41  ;;  %v9150_v41 = vpack.c.bf16 %v5680_v60, %v5679_v58 }
 0x7e3   :  { %9129 = vmatpush3.bf16.msra.mxu1 %v9128_v54  ;;  %9137 = vmatpush3.bf16.msra.mxu0 %v9134_v50 }
 0x7e4   :  { %9139 = vmatprep.subr.bf16.mxu0 %v9138_v51  ;;  %8015 = vmatprep.mubr.f32.mxu0 %v5511_v30 }
 0x7e6   :  { %5983 = vmatmul.mubr.f32.vlgmr.msra.gmra.mrb[168].mxu1 %v9998_v14 }
 0x7e7   :  { %9141 = vmatpush3.bf16.msra.mxu0 %v9138_v51  ;;  %5987 = vmatprep.mubr.f32.mxu1 %v9985_v46 }
 0x7e8   :  { %9143 = vmatprep.subr.bf16.mxu0 %v9142_v56 }
 0x7ea   :  { %5988 = vmatmul.mubr.f32.gmra.mrb[170].mxu1 %v9996_v11  ;;  %v6147_v11 = vld [vmem:[#allocation11 + $0x3] ss:$0 sm:$0xff] }
 0x7eb   :  { %9145 = vmatpush3.bf16.msra.mxu0 %v9142_v56 }
 0x7ec   :  { %9147 = vmatprep.subr.bf16.mxu0 %v9146_v52 }
 0x7ef   :  { %9149 = vmatpush3.bf16.msra.mxu0 %v9146_v52 }
 0x7f0   :  { %9151 = vmatprep.subr.bf16.mxu0 %v9150_v41 }
 0x7f3   :  { %9153 = vmatpush3.bf16.msra.mxu0 %v9150_v41 }
 0x7f4   :  { %9155 = vmatprep.subr.bf16.mxu0 %v9154_v63 }
 0x7f7   :  { %9157 = vmatpush3.bf16.msra.mxu0 %v9154_v63 }
 0x7f8   :  { %9159 = vmatprep.subr.bf16.mxu0 %v9158_v3 }
 0x7fb   :  { %9161 = vmatpush3.bf16.msra.mxu0 %v9158_v3 }
 0x7fe   :  { %8016 = vmatmul.mubr.f32.vlgmr.msra.gmra.mrb[150].mxu0 %v10000_v19 }
 0x891   :  { %v7434_v46 = vpop.f32.mrb[142].mxu0 }
 0x892   :  { %v7435_v5 = vpop.f32.mrb[143].mxu0 }
 0x893   :  { %v7436_v6 = vadd.f32 %v7435_v5, %v7434_v46 }
 0x895   :  { %v7437_v7 = vpop.f32.mrb[144].mxu0  ;;  %v5760_v13 = vadd.f32 %v7436_v6, %v6147_v11 }
 0x896   :  { %v7438_v9 = vpop.f32.mrb[145].mxu0 }
 0x897   :  { %v7439_v10 = vadd.f32 %v7438_v9, %v7437_v7 }
 0x899   :  { %v7472_v12 = vpop.f32.mrb[164].mxu1  ;;  %v5765_v18 = vadd.f32 %v7439_v10, %v6147_v11 }
 0x89a   :  { %v7473_v15 = vpop.f32.mrb[165].mxu1 }
 0x89b   :  { %v7474_v16 = vadd.f32 %v7473_v15, %v7472_v12 }
 0x89d   :  { %v5835_v8 = vadd.f32 %v7474_v16, %v5760_v13  ;;  %v7475_v14 = vpop.f32.mrb[166].mxu1 }
 0x89e   :  { %v7476_v17 = vpop.f32.mrb[167].mxu1 }
 0x89f   :  { %v7477_v2 = vadd.f32 %v7476_v17, %v7475_v14 }
 0x8a1   :  { %v5840_v49 = vadd.f32 %v7477_v2, %v5765_v18 }
 0x8b1   :  { %v7510_v4 = vpop.f32.mrb[146].mxu0 }
 0x8b2   :  { %v7511_v21 = vpop.f32.mrb[147].mxu0 }
 0x8b3   :  { %v7512_v22 = vadd.f32 %v7511_v21, %v7510_v4 }
 0x8b5   :  { %v5910_v19 = vadd.f32 %v7512_v22, %v5835_v8  ;;  %v7513_v20 = vpop.f32.mrb[148].mxu0 }
 0x8b6   :  { %v7514_v24 = vpop.f32.mrb[149].mxu0 }
 0x8b7   :  { %v7515_v25 = vadd.f32 %v7514_v24, %v7513_v20 }
 0x8b9   :  { %v5915_v23 = vadd.f32 %v7515_v25, %v5840_v49  ;;  %v7548_v29 = vpop.f32.mrb[168].mxu1 }
 0x8ba   :  { %v7549_v30 = vpop.f32.mrb[169].mxu1 }
 0x8bb   :  { %v7550_v31 = vadd.f32 %v7549_v30, %v7548_v29 }
 0x8bd   :  { %v7551_v32 = vpop.f32.mrb[170].mxu1  ;;  %v5985_v35 = vadd.f32 %v7550_v31, %v5910_v19 }
 0x8be   :  { %v7552_v59 = vpop.f32.mrb[171].mxu1 }
 0x8bf   :  { %v7553_v27 = vadd.f32 %v7552_v59, %v7551_v32 }
 0x8c1   :  { %v5990_v36 = vadd.f32 %v7553_v27, %v5915_v23 }
 0x8d1   :  { %v8017_v33 = vpop.f32.mrb[150].mxu0 }
 0x8d2   :  { %v6065_v38 = vadd.f32 %v8017_v33, %v5990_v36  ;;  %v6059_v34 = vpop.f32.mrb[151].mxu0 }
 0x8d3   :  { %v6060_v42 = vadd.f32 %v6059_v34, %v5985_v35 }
 0x8d4   :  { %6069 = vst [vmem:[%s10025_s10 + $0x8] sm:$0xff] %v6065_v38 }
 0x8d5   :  { %6068 = vst [vmem:[%s10025_s10] sm:$0xff] %v6060_v42 }
 0x8d6   :  { %6086 = vsyncpa [#allocation4], 1 }
 0x8d7   :  { %6087 = vsyncpa [#allocation6], 1 }
 0x8d8   :  { %6088 = vsyncpa [#allocation9], 1 }
 0x8d9   :  { %6089 = vsyncpa [#allocation12], 1 }

</bundles_post_ra>
